<compile_context>
chip_gen: v7x
topology: tpu7x:2x2x1
jax: 0.10.0
libtpu: 0.0.40
codegen_flags: <defaults>
</compile_context>

<pallas_src>
import functools

import numpy as np
import jax
import jax.numpy as jnp
from jax.experimental import pallas as pl
from jax.experimental.pallas import tpu as pltpu

# ---------------- configuration (small, consistent with the module) ----------
IMAGE_SIZE = 16
PH, PW = 2, 2                       # patch_size
CHANNELS = (16, 8)                  # channels; channels[1] feeds the patchify
DEPTH = 2
HEADS = 4
DIM_HEAD = 8
FF_DIM = 64

NUM_PATCHES = (IMAGE_SIZE // PH) * (IMAGE_SIZE // PW)     # 64
PATCH_DIM = PH * PW * CHANNELS[1]                         # 32
DIM = PATCH_DIM                                           # transformer dim
INNER = HEADS * DIM_HEAD                                  # 32
SCALE = DIM_HEAD ** -0.5
EPS = 1e-5                                                # nn.LayerNorm default

# packed param order handed to the kernel
PARAM_ORDER = ("wqkv", "wo", "w1", "w2", "vecs", "b1")
# rows of the packed (DEPTH, 6, D) "vecs" operand
V_LN1G, V_LN1B, V_BO, V_LN2G, V_LN2B, V_B2 = range(6)


# ---------------- in-kernel helpers ------------------------------------------
def _layernorm(x, gamma, beta):
    mu = jnp.mean(x, axis=-1, keepdims=True)
    var = jnp.mean(jnp.square(x - mu), axis=-1, keepdims=True)
    return (x - mu) * jax.lax.rsqrt(var + EPS) * gamma + beta


def _gelu_exact(x):
    # nn.GELU() default (erf formulation)
    return 0.5 * x * (1.0 + jax.lax.erf(x * (2.0 ** -0.5)))


def _mha_out(q_src, qkv):
    # q_src: (M, 3*INNER) rows supplying Q (M == N, or M == 1 for the token-0
    # fast path).  qkv: (N, 3*INNER) rows supplying K/V.  Per-head Q/K/V are
    # static lane slices of the fused projection; head outputs are
    # lane-concatenated so a single (M,INNER)@(INNER,D) projection follows.
    outs = []
    for h in range(HEADS):                                   # static unroll
        q = q_src[:, h * DIM_HEAD:(h + 1) * DIM_HEAD]                      # (M, DH)
        k = qkv[:, INNER + h * DIM_HEAD:INNER + (h + 1) * DIM_HEAD]        # (N, DH)
        v = qkv[:, 2 * INNER + h * DIM_HEAD:2 * INNER + (h + 1) * DIM_HEAD]
        s = jax.lax.dot_general(q, k, (((1,), (1,)), ((), ())),
                                preferred_element_type=jnp.float32) * SCALE  # (M, N)
        s = s - jnp.max(s, axis=-1, keepdims=True)
        e = jnp.exp(s)
        p = e / jnp.sum(e, axis=-1, keepdims=True)           # exact reciprocal (parity)
        outs.append(jnp.dot(p, v, preferred_element_type=jnp.float32))     # (M, DH)
    return jnp.concatenate(outs, axis=-1)                    # (M, INNER)


def _ffn(x_in, w1, b1, w2, b2, ln_g, ln_b):
    xn = _layernorm(x_in, ln_g, ln_b)
    h = _gelu_exact(jnp.dot(xn, w1, preferred_element_type=jnp.float32) + b1)
    return x_in + jnp.dot(h, w2, preferred_element_type=jnp.float32) + b2


# ---------------- fused Pallas kernel -----------------------------------------
def fused_transformer_kernel(x_ref, pos_ref, wqkv_ref, wo_ref, w1_ref, w2_ref,
                             vecs_ref, b1_ref, o_ref, *, bchunk):
    # x_ref: (bchunk, N, D) tokens.  Runs the full transformer (DEPTH layers)
    # with everything VMEM-resident and emits only token 0 per batch element.
    pos = pos_ref[...]                                       # (N, D)
    for b in range(bchunk):                                  # static, bchunk is tiny
        x = x_ref[b] + pos                                   # (N, D)
        for l in range(DEPTH):                               # static unroll
            vecs = vecs_ref[l]                               # (6, D)
            ln1_g, ln1_b, bo = vecs[V_LN1G:V_LN1G + 1], vecs[V_LN1B:V_LN1B + 1], vecs[V_BO:V_BO + 1]
            ln2_g, ln2_b, b2 = vecs[V_LN2G:V_LN2G + 1], vecs[V_LN2B:V_LN2B + 1], vecs[V_B2:V_B2 + 1]
            last = (l == DEPTH - 1)

            # ---- PreNorm + Attention (fused QKV, single output proj) -------
            xn = _layernorm(x, ln1_g, ln1_b)                                   # (N, D)
            qkv = jnp.dot(xn, wqkv_ref[l], preferred_element_type=jnp.float32)  # (N, 3*INNER)

            if last:
                # token-0 fast path: only row 0 of the output is ever emitted.
                out0 = _mha_out(qkv[0:1], qkv)                                 # (1, INNER)
                x0 = x[0:1] + jnp.dot(out0, wo_ref[l],
                                      preferred_element_type=jnp.float32) + bo  # (1, D)
                x0 = _ffn(x0, w1_ref[l], b1_ref[l], w2_ref[l], b2, ln2_g, ln2_b)
                o_ref[b] = x0                                                  # (1, D)
            else:
                out = _mha_out(qkv, qkv)                                       # (N, INNER)
                x = x + jnp.dot(out, wo_ref[l],
                                preferred_element_type=jnp.float32) + bo
                x = _ffn(x, w1_ref[l], b1_ref[l], w2_ref[l], b2, ln2_g, ln2_b)


# ---------------- pallas_call wrapper -----------------------------------------
def convit_decoder_forward(img, pos_embedding, packed, *, grid_chunks=None):
    x = to_patch_embedding(img)                 # (B, N, DIM)
    B, N, D = x.shape
    if grid_chunks is None:
        # 2 chunks keeps both TensorCores busy on v7x; on single-TC v5e/v6e it
        # costs only one extra ~0.35us grid step.  Pass grid_chunks=1 there to
        # collapse the grid entirely.
        grid_chunks = 2 if (B % 2 == 0 and B >= 2) else 1
    assert B % grid_chunks == 0
    bchunk = B // grid_chunks

    pos = pos_embedding[0, :N, :]               # (N, D); no cls_token in __init__
    params = [packed[k] for k in PARAM_ORDER]

    def const_spec(shape):
        nd = len(shape)
        return pl.BlockSpec(shape, lambda g, _nd=nd: (0,) * _nd)

    out = pl.pallas_call(
        functools.partial(fused_transformer_kernel, bchunk=bchunk),
        grid=(grid_chunks,),
        in_specs=[pl.BlockSpec((bchunk, N, D), lambda g: (g, 0, 0)),
                  const_spec(pos.shape)] + [const_spec(p.shape) for p in params],
        out_specs=pl.BlockSpec((bchunk, 1, D), lambda g: (g, 0, 0)),
        out_shape=jax.ShapeDtypeStruct((B, 1, D), x.dtype),
        compiler_params=pltpu.CompilerParams(dimension_semantics=("parallel",)),
    )(x, pos, *params)
    return out[:, 0, :]                          # (B, D) — self.pool != 'mean' -> x[:, 0]


# ---------------- glue (reshapes / param setup) --------------------------------
def to_patch_embedding(img):
    # Rearrange('b d (h ph) (w pw) -> b (h w) (ph pw d)') with d = channels
    B, C, H, W = img.shape
    hh, ww = H // PH, W // PW
    x = img.reshape(B, C, hh, PH, ww, PW)
    x = jnp.transpose(x, (0, 2, 4, 3, 5, 1))        # b hh ww ph pw c
    return x.reshape(B, hh * ww, PH * PW * C)       # (B, N, PATCH_DIM)


def init_params(key):
    keys = jax.random.split(key, 2 + DEPTH * 8)
    it = iter(keys)
    pos_embedding = jax.random.normal(next(it), (1, NUM_PATCHES + 1, DIM), jnp.float32)
    layers = []
    for _ in range(DEPTH):
        layer = dict(
            ln1_g=jnp.ones((1, DIM), jnp.float32),
            ln1_b=jnp.zeros((1, DIM), jnp.float32),
            wqkv=jax.random.normal(next(it), (DIM, 3 * INNER), jnp.float32) / np.sqrt(DIM),
            wo=jax.random.normal(next(it), (INNER, DIM), jnp.float32) / np.sqrt(INNER),
            bo=jax.random.normal(next(it), (1, DIM), jnp.float32) * 0.02,
            ln2_g=jnp.ones((1, DIM), jnp.float32),
            ln2_b=jnp.zeros((1, DIM), jnp.float32),
            w1=jax.random.normal(next(it), (DIM, FF_DIM), jnp.float32) / np.sqrt(DIM),
            b1=jax.random.normal(next(it), (1, FF_DIM), jnp.float32) * 0.02,
            w2=jax.random.normal(next(it), (FF_DIM, DIM), jnp.float32) / np.sqrt(FF_DIM),
            b2=jax.random.normal(next(it), (1, DIM), jnp.float32) * 0.02,
        )
        layers.append(layer)
    return pos_embedding, layers


def pack_params(layers):
    # Keep the fused (D, 3*INNER) qkv and (INNER, D) out-proj weights intact
    # (no per-head splitting) and pack all per-layer (1, D) vectors into a
    # single (DEPTH, 6, D) operand so the kernel has few, dense operands.
    def stack(key):
        return jnp.stack([L[key] for L in layers], axis=0)

    vecs = jnp.stack([jnp.concatenate([L["ln1_g"], L["ln1_b"], L["bo"],
                                       L["ln2_g"], L["ln2_b"], L["b2"]], axis=0)
                      for L in layers], axis=0)                 # (DEPTH, 6, D)
    return dict(
        wqkv=stack("wqkv"),                                     # (DEPTH, D, 3*INNER)
        wo=stack("wo"),                                         # (DEPTH, INNER, D)
        w1=stack("w1"),                                         # (DEPTH, D, FF)
        w2=stack("w2"),                                         # (DEPTH, FF, D)
        vecs=vecs,                                              # (DEPTH, 6, D)
        b1=stack("b1"),                                         # (DEPTH, 1, FF)
    )


# ---------------- pure-JAX reference (for correctness check) ------------------
def _ref_forward(img, pos_embedding, layers):
    x = to_patch_embedding(img)
    x = x + pos_embedding[:, : x.shape[1]]
    for L in layers:
        xn = _layernorm(x, L["ln1_g"][0], L["ln1_b"][0])
        qkv = xn @ L["wqkv"]
        q, k, v = jnp.split(qkv, 3, axis=-1)
        B, N, _ = q.shape
        q = q.reshape(B, N, HEADS, DIM_HEAD).transpose(0, 2, 1, 3)
        k = k.reshape(B, N, HEADS, DIM_HEAD).transpose(0, 2, 1, 3)
        v = v.reshape(B, N, HEADS, DIM_HEAD).transpose(0, 2, 1, 3)
        dots = jnp.einsum("bhnd,bhmd->bhnm", q, k) * SCALE
        attn = jax.nn.softmax(dots, axis=-1)
        out = jnp.einsum("bhnm,bhmd->bhnd", attn, v)
        out = out.transpose(0, 2, 1, 3).reshape(B, N, INNER)
        x = x + (out @ L["wo"] + L["bo"][0])
        xn = _layernorm(x, L["ln2_g"][0], L["ln2_b"][0])
        h = _gelu_exact(xn @ L["w1"] + L["b1"][0])
        x = x + (h @ L["w2"] + L["b2"][0])
    return x[:, 0]


# ---------------- main --------------------------------------------------------
if __name__ == "__main__":
    key = jax.random.PRNGKey(0)
    k_img, k_par = jax.random.split(key)
    B = 2
    img = jax.random.normal(k_img, (B, CHANNELS[1], IMAGE_SIZE, IMAGE_SIZE), jnp.float32)
    pos_embedding, layers = init_params(k_par)
    packed = pack_params(layers)

    out = convit_decoder_forward(img, pos_embedding, packed)
    out = jax.block_until_ready(out)

    ref = jax.block_until_ready(_ref_forward(img, pos_embedding, layers))
    assert out.shape == (B, DIM)
    np.testing.assert_allclose(np.asarray(out), np.asarray(ref), rtol=1e-4, atol=1e-4)
    print("KERNEL_OK")
</pallas_src>

<mosaic_0001>
module attributes {stable_mosaic.version = 11 : i64} {
  func.func @fused_transformer_kernel(%arg0: i32, %arg1: memref<1x64x32xf32, #tpu.memory_space<vmem>>, %arg2: memref<64x32xf32, #tpu.memory_space<vmem>>, %arg3: memref<2x32x96xf32, #tpu.memory_space<vmem>>, %arg4: memref<2x32x32xf32, #tpu.memory_space<vmem>>, %arg5: memref<2x32x64xf32, #tpu.memory_space<vmem>>, %arg6: memref<2x64x32xf32, #tpu.memory_space<vmem>>, %arg7: memref<2x6x32xf32, #tpu.memory_space<vmem>>, %arg8: memref<2x1x64xf32, #tpu.memory_space<vmem>>, %arg9: memref<1x1x32xf32, #tpu.memory_space<vmem>>) attributes {dimension_semantics = [#tpu.dimension_semantics<parallel>], iteration_bounds = array<i64: 2>, scalar_prefetch = 0 : i64, scratch_operands = 0 : i64, tpu.core_type = #tpu.core_type<tc>, window_params = [{transform_indices = @transform_0, window_bounds = array<i64: 1, 64, 32>}, {pipeline_mode = #tpu.pipeline_mode<synchronous>, transform_indices = @transform_1, window_bounds = array<i64: 64, 32>}, {pipeline_mode = #tpu.pipeline_mode<synchronous>, transform_indices = @transform_2, window_bounds = array<i64: 2, 32, 96>}, {pipeline_mode = #tpu.pipeline_mode<synchronous>, transform_indices = @transform_3, window_bounds = array<i64: 2, 32, 32>}, {pipeline_mode = #tpu.pipeline_mode<synchronous>, transform_indices = @transform_4, window_bounds = array<i64: 2, 32, 64>}, {pipeline_mode = #tpu.pipeline_mode<synchronous>, transform_indices = @transform_5, window_bounds = array<i64: 2, 64, 32>}, {pipeline_mode = #tpu.pipeline_mode<synchronous>, transform_indices = @transform_6, window_bounds = array<i64: 2, 6, 32>}, {pipeline_mode = #tpu.pipeline_mode<synchronous>, transform_indices = @transform_7, window_bounds = array<i64: 2, 1, 64>}, {transform_indices = @transform_8, window_bounds = array<i64: 1, 1, 32>}]} {
    %c0 = arith.constant 0 : index
    %c0_0 = arith.constant 0 : index
    %0 = vector.load %arg2[%c0, %c0_0] : memref<64x32xf32, #tpu.memory_space<vmem>>, vector<64x32xf32>
    %c0_1 = arith.constant 0 : index
    %c0_2 = arith.constant 0 : index
    %c0_3 = arith.constant 0 : index
    %1 = vector.load %arg1[%c0_1, %c0_2, %c0_3] : memref<1x64x32xf32, #tpu.memory_space<vmem>>, vector<1x64x32xf32>
    %2 = vector.shape_cast %1 : vector<1x64x32xf32> to vector<64x32xf32>
    %3 = arith.addf %2, %0 : vector<64x32xf32>
    %c0_4 = arith.constant 0 : index
    %c0_5 = arith.constant 0 : index
    %c0_6 = arith.constant 0 : index
    %4 = vector.load %arg7[%c0_4, %c0_5, %c0_6] : memref<2x6x32xf32, #tpu.memory_space<vmem>>, vector<1x6x32xf32>
    %5 = vector.shape_cast %4 : vector<1x6x32xf32> to vector<6x32xf32>
    %6 = vector.extract_strided_slice %5 {offsets = [0, 0], sizes = [1, 32], strides = [1, 1]} : vector<6x32xf32> to vector<1x32xf32>
    %7 = vector.extract_strided_slice %5 {offsets = [1, 0], sizes = [1, 32], strides = [1, 1]} : vector<6x32xf32> to vector<1x32xf32>
    %8 = vector.extract_strided_slice %5 {offsets = [2, 0], sizes = [1, 32], strides = [1, 1]} : vector<6x32xf32> to vector<1x32xf32>
    %9 = vector.extract_strided_slice %5 {offsets = [3, 0], sizes = [1, 32], strides = [1, 1]} : vector<6x32xf32> to vector<1x32xf32>
    %10 = vector.extract_strided_slice %5 {offsets = [4, 0], sizes = [1, 32], strides = [1, 1]} : vector<6x32xf32> to vector<1x32xf32>
    %11 = vector.extract_strided_slice %5 {offsets = [5, 0], sizes = [1, 32], strides = [1, 1]} : vector<6x32xf32> to vector<1x32xf32>
    %cst = arith.constant dense<0.000000e+00> : vector<64xf32>
    %12 = vector.multi_reduction <add>, %3, %cst [1] : vector<64x32xf32> to vector<64xf32>
    %13 = vector.shape_cast %12 : vector<64xf32> to vector<64x1xf32>
    %cst_7 = arith.constant 3.200000e+01 : f32
    %14 = vector.broadcast %cst_7 : f32 to vector<64x1xf32>
    %15 = arith.divf %13, %14 : vector<64x1xf32>
    %16 = vector.broadcast %15 : vector<64x1xf32> to vector<64x32xf32>
    %17 = arith.subf %3, %16 : vector<64x32xf32>
    %18 = arith.mulf %17, %17 : vector<64x32xf32>
    %cst_8 = arith.constant dense<0.000000e+00> : vector<64xf32>
    %19 = vector.multi_reduction <add>, %18, %cst_8 [1] : vector<64x32xf32> to vector<64xf32>
    %20 = vector.shape_cast %19 : vector<64xf32> to vector<64x1xf32>
    %cst_9 = arith.constant 3.200000e+01 : f32
    %21 = vector.broadcast %cst_9 : f32 to vector<64x1xf32>
    %22 = arith.divf %20, %21 : vector<64x1xf32>
    %23 = vector.broadcast %15 : vector<64x1xf32> to vector<64x32xf32>
    %24 = arith.subf %3, %23 : vector<64x32xf32>
    %cst_10 = arith.constant 9.99999974E-6 : f32
    %25 = vector.broadcast %cst_10 : f32 to vector<64x1xf32>
    %26 = arith.addf %22, %25 : vector<64x1xf32>
    %27 = math.rsqrt %26 : vector<64x1xf32>
    %28 = vector.broadcast %27 : vector<64x1xf32> to vector<64x32xf32>
    %29 = arith.mulf %24, %28 : vector<64x32xf32>
    %30 = vector.broadcast %6 : vector<1x32xf32> to vector<64x32xf32>
    %31 = arith.mulf %29, %30 : vector<64x32xf32>
    %32 = vector.broadcast %7 : vector<1x32xf32> to vector<64x32xf32>
    %33 = arith.addf %31, %32 : vector<64x32xf32>
    %c0_11 = arith.constant 0 : index
    %c0_12 = arith.constant 0 : index
    %c0_13 = arith.constant 0 : index
    %34 = vector.load %arg3[%c0_11, %c0_12, %c0_13] : memref<2x32x96xf32, #tpu.memory_space<vmem>>, vector<1x32x96xf32>
    %35 = vector.shape_cast %34 : vector<1x32x96xf32> to vector<32x96xf32>
    %cst_14 = arith.constant dense<0.000000e+00> : vector<64x96xf32>
    %36 = tpu.matmul %33, %35, %cst_14 {dimension_numbers = #tpu.dot_dimension_numbers<[1], [0], [0], [1], [0, 0, 1, 1], [], []>} : vector<64x32xf32>, vector<32x96xf32>, vector<64x96xf32> -> vector<64x96xf32>
    %37 = vector.extract_strided_slice %36 {offsets = [0, 0], sizes = [64, 8], strides = [1, 1]} : vector<64x96xf32> to vector<64x8xf32>
    %38 = vector.extract_strided_slice %36 {offsets = [0, 32], sizes = [64, 8], strides = [1, 1]} : vector<64x96xf32> to vector<64x8xf32>
    %39 = vector.extract_strided_slice %36 {offsets = [0, 64], sizes = [64, 8], strides = [1, 1]} : vector<64x96xf32> to vector<64x8xf32>
    %cst_15 = arith.constant dense<0.000000e+00> : vector<64x64xf32>
    %40 = tpu.matmul %37, %38, %cst_15 {dimension_numbers = #tpu.dot_dimension_numbers<[1], [1], [0], [0], [0, 0, 1, 0], [], []>} : vector<64x8xf32>, vector<64x8xf32>, vector<64x64xf32> -> vector<64x64xf32>
    %cst_16 = arith.constant 0.353553385 : f32
    %41 = vector.broadcast %cst_16 : f32 to vector<64x64xf32>
    %42 = arith.mulf %40, %41 : vector<64x64xf32>
    %cst_17 = arith.constant dense<0xFF800000> : vector<64xf32>
    %43 = vector.multi_reduction <maximumf>, %42, %cst_17 [1] : vector<64x64xf32> to vector<64xf32>
    %44 = vector.shape_cast %43 : vector<64xf32> to vector<64x1xf32>
    %45 = vector.broadcast %44 : vector<64x1xf32> to vector<64x64xf32>
    %46 = arith.subf %42, %45 : vector<64x64xf32>
    %47 = math.exp %46 : vector<64x64xf32>
    %cst_18 = arith.constant dense<0.000000e+00> : vector<64xf32>
    %48 = vector.multi_reduction <add>, %47, %cst_18 [1] : vector<64x64xf32> to vector<64xf32>
    %49 = vector.shape_cast %48 : vector<64xf32> to vector<64x1xf32>
    %50 = vector.broadcast %49 : vector<64x1xf32> to vector<64x64xf32>
    %51 = arith.divf %47, %50 : vector<64x64xf32>
    %cst_19 = arith.constant dense<0.000000e+00> : vector<64x8xf32>
    %52 = tpu.matmul %51, %39, %cst_19 {dimension_numbers = #tpu.dot_dimension_numbers<[1], [0], [0], [1], [0, 0, 1, 1], [], []>} : vector<64x64xf32>, vector<64x8xf32>, vector<64x8xf32> -> vector<64x8xf32>
    %53 = vector.extract_strided_slice %36 {offsets = [0, 8], sizes = [64, 8], strides = [1, 1]} : vector<64x96xf32> to vector<64x8xf32>
    %54 = vector.extract_strided_slice %36 {offsets = [0, 40], sizes = [64, 8], strides = [1, 1]} : vector<64x96xf32> to vector<64x8xf32>
    %55 = vector.extract_strided_slice %36 {offsets = [0, 72], sizes = [64, 8], strides = [1, 1]} : vector<64x96xf32> to vector<64x8xf32>
    %cst_20 = arith.constant dense<0.000000e+00> : vector<64x64xf32>
    %56 = tpu.matmul %53, %54, %cst_20 {dimension_numbers = #tpu.dot_dimension_numbers<[1], [1], [0], [0], [0, 0, 1, 0], [], []>} : vector<64x8xf32>, vector<64x8xf32>, vector<64x64xf32> -> vector<64x64xf32>
    %cst_21 = arith.constant 0.353553385 : f32
    %57 = vector.broadcast %cst_21 : f32 to vector<64x64xf32>
    %58 = arith.mulf %56, %57 : vector<64x64xf32>
    %cst_22 = arith.constant dense<0xFF800000> : vector<64xf32>
    %59 = vector.multi_reduction <maximumf>, %58, %cst_22 [1] : vector<64x64xf32> to vector<64xf32>
    %60 = vector.shape_cast %59 : vector<64xf32> to vector<64x1xf32>
    %61 = vector.broadcast %60 : vector<64x1xf32> to vector<64x64xf32>
    %62 = arith.subf %58, %61 : vector<64x64xf32>
    %63 = math.exp %62 : vector<64x64xf32>
    %cst_23 = arith.constant dense<0.000000e+00> : vector<64xf32>
    %64 = vector.multi_reduction <add>, %63, %cst_23 [1] : vector<64x64xf32> to vector<64xf32>
    %65 = vector.shape_cast %64 : vector<64xf32> to vector<64x1xf32>
    %66 = vector.broadcast %65 : vector<64x1xf32> to vector<64x64xf32>
    %67 = arith.divf %63, %66 : vector<64x64xf32>
    %cst_24 = arith.constant dense<0.000000e+00> : vector<64x8xf32>
    %68 = tpu.matmul %67, %55, %cst_24 {dimension_numbers = #tpu.dot_dimension_numbers<[1], [0], [0], [1], [0, 0, 1, 1], [], []>} : vector<64x64xf32>, vector<64x8xf32>, vector<64x8xf32> -> vector<64x8xf32>
    %69 = vector.extract_strided_slice %36 {offsets = [0, 16], sizes = [64, 8], strides = [1, 1]} : vector<64x96xf32> to vector<64x8xf32>
    %70 = vector.extract_strided_slice %36 {offsets = [0, 48], sizes = [64, 8], strides = [1, 1]} : vector<64x96xf32> to vector<64x8xf32>
    %71 = vector.extract_strided_slice %36 {offsets = [0, 80], sizes = [64, 8], strides = [1, 1]} : vector<64x96xf32> to vector<64x8xf32>
    %cst_25 = arith.constant dense<0.000000e+00> : vector<64x64xf32>
    %72 = tpu.matmul %69, %70, %cst_25 {dimension_numbers = #tpu.dot_dimension_numbers<[1], [1], [0], [0], [0, 0, 1, 0], [], []>} : vector<64x8xf32>, vector<64x8xf32>, vector<64x64xf32> -> vector<64x64xf32>
    %cst_26 = arith.constant 0.353553385 : f32
    %73 = vector.broadcast %cst_26 : f32 to vector<64x64xf32>
    %74 = arith.mulf %72, %73 : vector<64x64xf32>
    %cst_27 = arith.constant dense<0xFF800000> : vector<64xf32>
    %75 = vector.multi_reduction <maximumf>, %74, %cst_27 [1] : vector<64x64xf32> to vector<64xf32>
    %76 = vector.shape_cast %75 : vector<64xf32> to vector<64x1xf32>
    %77 = vector.broadcast %76 : vector<64x1xf32> to vector<64x64xf32>
    %78 = arith.subf %74, %77 : vector<64x64xf32>
    %79 = math.exp %78 : vector<64x64xf32>
    %cst_28 = arith.constant dense<0.000000e+00> : vector<64xf32>
    %80 = vector.multi_reduction <add>, %79, %cst_28 [1] : vector<64x64xf32> to vector<64xf32>
    %81 = vector.shape_cast %80 : vector<64xf32> to vector<64x1xf32>
    %82 = vector.broadcast %81 : vector<64x1xf32> to vector<64x64xf32>
    %83 = arith.divf %79, %82 : vector<64x64xf32>
    %cst_29 = arith.constant dense<0.000000e+00> : vector<64x8xf32>
    %84 = tpu.matmul %83, %71, %cst_29 {dimension_numbers = #tpu.dot_dimension_numbers<[1], [0], [0], [1], [0, 0, 1, 1], [], []>} : vector<64x64xf32>, vector<64x8xf32>, vector<64x8xf32> -> vector<64x8xf32>
    %85 = vector.extract_strided_slice %36 {offsets = [0, 24], sizes = [64, 8], strides = [1, 1]} : vector<64x96xf32> to vector<64x8xf32>
    %86 = vector.extract_strided_slice %36 {offsets = [0, 56], sizes = [64, 8], strides = [1, 1]} : vector<64x96xf32> to vector<64x8xf32>
    %87 = vector.extract_strided_slice %36 {offsets = [0, 88], sizes = [64, 8], strides = [1, 1]} : vector<64x96xf32> to vector<64x8xf32>
    %cst_30 = arith.constant dense<0.000000e+00> : vector<64x64xf32>
    %88 = tpu.matmul %85, %86, %cst_30 {dimension_numbers = #tpu.dot_dimension_numbers<[1], [1], [0], [0], [0, 0, 1, 0], [], []>} : vector<64x8xf32>, vector<64x8xf32>, vector<64x64xf32> -> vector<64x64xf32>
    %cst_31 = arith.constant 0.353553385 : f32
    %89 = vector.broadcast %cst_31 : f32 to vector<64x64xf32>
    %90 = arith.mulf %88, %89 : vector<64x64xf32>
    %cst_32 = arith.constant dense<0xFF800000> : vector<64xf32>
    %91 = vector.multi_reduction <maximumf>, %90, %cst_32 [1] : vector<64x64xf32> to vector<64xf32>
    %92 = vector.shape_cast %91 : vector<64xf32> to vector<64x1xf32>
    %93 = vector.broadcast %92 : vector<64x1xf32> to vector<64x64xf32>
    %94 = arith.subf %90, %93 : vector<64x64xf32>
    %95 = math.exp %94 : vector<64x64xf32>
    %cst_33 = arith.constant dense<0.000000e+00> : vector<64xf32>
    %96 = vector.multi_reduction <add>, %95, %cst_33 [1] : vector<64x64xf32> to vector<64xf32>
    %97 = vector.shape_cast %96 : vector<64xf32> to vector<64x1xf32>
    %98 = vector.broadcast %97 : vector<64x1xf32> to vector<64x64xf32>
    %99 = arith.divf %95, %98 : vector<64x64xf32>
    %cst_34 = arith.constant dense<0.000000e+00> : vector<64x8xf32>
    %100 = tpu.matmul %99, %87, %cst_34 {dimension_numbers = #tpu.dot_dimension_numbers<[1], [0], [0], [1], [0, 0, 1, 1], [], []>} : vector<64x64xf32>, vector<64x8xf32>, vector<64x8xf32> -> vector<64x8xf32>
    %101 = tpu.concatenate %52, %68, %84, %100 in 1 : vector<64x8xf32>, vector<64x8xf32>, vector<64x8xf32>, vector<64x8xf32> -> vector<64x32xf32>
    %c0_35 = arith.constant 0 : index
    %c0_36 = arith.constant 0 : index
    %c0_37 = arith.constant 0 : index
    %102 = vector.load %arg4[%c0_35, %c0_36, %c0_37] : memref<2x32x32xf32, #tpu.memory_space<vmem>>, vector<1x32x32xf32>
    %103 = vector.shape_cast %102 : vector<1x32x32xf32> to vector<32x32xf32>
    %cst_38 = arith.constant dense<0.000000e+00> : vector<64x32xf32>
    %104 = tpu.matmul %101, %103, %cst_38 {dimension_numbers = #tpu.dot_dimension_numbers<[1], [0], [0], [1], [0, 0, 1, 1], [], []>} : vector<64x32xf32>, vector<32x32xf32>, vector<64x32xf32> -> vector<64x32xf32>
    %105 = arith.addf %3, %104 : vector<64x32xf32>
    %106 = vector.broadcast %8 : vector<1x32xf32> to vector<64x32xf32>
    %107 = arith.addf %105, %106 : vector<64x32xf32>
    %c0_39 = arith.constant 0 : index
    %c0_40 = arith.constant 0 : index
    %c0_41 = arith.constant 0 : index
    %108 = vector.load %arg5[%c0_39, %c0_40, %c0_41] : memref<2x32x64xf32, #tpu.memory_space<vmem>>, vector<1x32x64xf32>
    %109 = vector.shape_cast %108 : vector<1x32x64xf32> to vector<32x64xf32>
    %c0_42 = arith.constant 0 : index
    %c0_43 = arith.constant 0 : index
    %c0_44 = arith.constant 0 : index
    %110 = vector.load %arg8[%c0_42, %c0_43, %c0_44] : memref<2x1x64xf32, #tpu.memory_space<vmem>>, vector<1x1x64xf32>
    %111 = vector.shape_cast %110 : vector<1x1x64xf32> to vector<1x64xf32>
    %c0_45 = arith.constant 0 : index
    %c0_46 = arith.constant 0 : index
    %c0_47 = arith.constant 0 : index
    %112 = vector.load %arg6[%c0_45, %c0_46, %c0_47] : memref<2x64x32xf32, #tpu.memory_space<vmem>>, vector<1x64x32xf32>
    %113 = vector.shape_cast %112 : vector<1x64x32xf32> to vector<64x32xf32>
    %cst_48 = arith.constant dense<0.000000e+00> : vector<64xf32>
    %114 = vector.multi_reduction <add>, %107, %cst_48 [1] : vector<64x32xf32> to vector<64xf32>
    %115 = vector.shape_cast %114 : vector<64xf32> to vector<64x1xf32>
    %cst_49 = arith.constant 3.200000e+01 : f32
    %116 = vector.broadcast %cst_49 : f32 to vector<64x1xf32>
    %117 = arith.divf %115, %116 : vector<64x1xf32>
    %118 = vector.broadcast %117 : vector<64x1xf32> to vector<64x32xf32>
    %119 = arith.subf %107, %118 : vector<64x32xf32>
    %120 = arith.mulf %119, %119 : vector<64x32xf32>
    %cst_50 = arith.constant dense<0.000000e+00> : vector<64xf32>
    %121 = vector.multi_reduction <add>, %120, %cst_50 [1] : vector<64x32xf32> to vector<64xf32>
    %122 = vector.shape_cast %121 : vector<64xf32> to vector<64x1xf32>
    %cst_51 = arith.constant 3.200000e+01 : f32
    %123 = vector.broadcast %cst_51 : f32 to vector<64x1xf32>
    %124 = arith.divf %122, %123 : vector<64x1xf32>
    %125 = vector.broadcast %117 : vector<64x1xf32> to vector<64x32xf32>
    %126 = arith.subf %107, %125 : vector<64x32xf32>
    %cst_52 = arith.constant 9.99999974E-6 : f32
    %127 = vector.broadcast %cst_52 : f32 to vector<64x1xf32>
    %128 = arith.addf %124, %127 : vector<64x1xf32>
    %129 = math.rsqrt %128 : vector<64x1xf32>
    %130 = vector.broadcast %129 : vector<64x1xf32> to vector<64x32xf32>
    %131 = arith.mulf %126, %130 : vector<64x32xf32>
    %132 = vector.broadcast %9 : vector<1x32xf32> to vector<64x32xf32>
    %133 = arith.mulf %131, %132 : vector<64x32xf32>
    %134 = vector.broadcast %10 : vector<1x32xf32> to vector<64x32xf32>
    %135 = arith.addf %133, %134 : vector<64x32xf32>
    %cst_53 = arith.constant dense<0.000000e+00> : vector<64x64xf32>
    %136 = tpu.matmul %135, %109, %cst_53 {dimension_numbers = #tpu.dot_dimension_numbers<[1], [0], [0], [1], [0, 0, 1, 1], [], []>} : vector<64x32xf32>, vector<32x64xf32>, vector<64x64xf32> -> vector<64x64xf32>
    %137 = vector.broadcast %111 : vector<1x64xf32> to vector<64x64xf32>
    %138 = arith.addf %136, %137 : vector<64x64xf32>
    %cst_54 = arith.constant 5.000000e-01 : f32
    %139 = vector.broadcast %cst_54 : f32 to vector<64x64xf32>
    %140 = arith.mulf %139, %138 : vector<64x64xf32>
    %cst_55 = arith.constant 0.707106769 : f32
    %141 = vector.broadcast %cst_55 : f32 to vector<64x64xf32>
    %142 = arith.mulf %138, %141 : vector<64x64xf32>
    %143 = math.erf %142 : vector<64x64xf32>
    %cst_56 = arith.constant 1.000000e+00 : f32
    %144 = vector.broadcast %cst_56 : f32 to vector<64x64xf32>
    %145 = arith.addf %144, %143 : vector<64x64xf32>
    %146 = arith.mulf %140, %145 : vector<64x64xf32>
    %cst_57 = arith.constant dense<0.000000e+00> : vector<64x32xf32>
    %147 = tpu.matmul %146, %113, %cst_57 {dimension_numbers = #tpu.dot_dimension_numbers<[1], [0], [0], [1], [0, 0, 1, 1], [], []>} : vector<64x64xf32>, vector<64x32xf32>, vector<64x32xf32> -> vector<64x32xf32>
    %148 = arith.addf %107, %147 : vector<64x32xf32>
    %149 = vector.broadcast %11 : vector<1x32xf32> to vector<64x32xf32>
    %150 = arith.addf %148, %149 : vector<64x32xf32>
    %c1 = arith.constant 1 : index
    %c0_58 = arith.constant 0 : index
    %c0_59 = arith.constant 0 : index
    %151 = vector.load %arg7[%c1, %c0_58, %c0_59] : memref<2x6x32xf32, #tpu.memory_space<vmem>>, vector<1x6x32xf32>
    %152 = vector.shape_cast %151 : vector<1x6x32xf32> to vector<6x32xf32>
    %153 = vector.extract_strided_slice %152 {offsets = [0, 0], sizes = [1, 32], strides = [1, 1]} : vector<6x32xf32> to vector<1x32xf32>
    %154 = vector.extract_strided_slice %152 {offsets = [1, 0], sizes = [1, 32], strides = [1, 1]} : vector<6x32xf32> to vector<1x32xf32>
    %155 = vector.extract_strided_slice %152 {offsets = [2, 0], sizes = [1, 32], strides = [1, 1]} : vector<6x32xf32> to vector<1x32xf32>
    %156 = vector.extract_strided_slice %152 {offsets = [3, 0], sizes = [1, 32], strides = [1, 1]} : vector<6x32xf32> to vector<1x32xf32>
    %157 = vector.extract_strided_slice %152 {offsets = [4, 0], sizes = [1, 32], strides = [1, 1]} : vector<6x32xf32> to vector<1x32xf32>
    %158 = vector.extract_strided_slice %152 {offsets = [5, 0], sizes = [1, 32], strides = [1, 1]} : vector<6x32xf32> to vector<1x32xf32>
    %cst_60 = arith.constant dense<0.000000e+00> : vector<64xf32>
    %159 = vector.multi_reduction <add>, %150, %cst_60 [1] : vector<64x32xf32> to vector<64xf32>
    %160 = vector.shape_cast %159 : vector<64xf32> to vector<64x1xf32>
    %cst_61 = arith.constant 3.200000e+01 : f32
    %161 = vector.broadcast %cst_61 : f32 to vector<64x1xf32>
    %162 = arith.divf %160, %161 : vector<64x1xf32>
    %163 = vector.broadcast %162 : vector<64x1xf32> to vector<64x32xf32>
    %164 = arith.subf %150, %163 : vector<64x32xf32>
    %165 = arith.mulf %164, %164 : vector<64x32xf32>
    %cst_62 = arith.constant dense<0.000000e+00> : vector<64xf32>
    %166 = vector.multi_reduction <add>, %165, %cst_62 [1] : vector<64x32xf32> to vector<64xf32>
    %167 = vector.shape_cast %166 : vector<64xf32> to vector<64x1xf32>
    %cst_63 = arith.constant 3.200000e+01 : f32
    %168 = vector.broadcast %cst_63 : f32 to vector<64x1xf32>
    %169 = arith.divf %167, %168 : vector<64x1xf32>
    %170 = vector.broadcast %162 : vector<64x1xf32> to vector<64x32xf32>
    %171 = arith.subf %150, %170 : vector<64x32xf32>
    %cst_64 = arith.constant 9.99999974E-6 : f32
    %172 = vector.broadcast %cst_64 : f32 to vector<64x1xf32>
    %173 = arith.addf %169, %172 : vector<64x1xf32>
    %174 = math.rsqrt %173 : vector<64x1xf32>
    %175 = vector.broadcast %174 : vector<64x1xf32> to vector<64x32xf32>
    %176 = arith.mulf %171, %175 : vector<64x32xf32>
    %177 = vector.broadcast %153 : vector<1x32xf32> to vector<64x32xf32>
    %178 = arith.mulf %176, %177 : vector<64x32xf32>
    %179 = vector.broadcast %154 : vector<1x32xf32> to vector<64x32xf32>
    %180 = arith.addf %178, %179 : vector<64x32xf32>
    %c1_65 = arith.constant 1 : index
    %c0_66 = arith.constant 0 : index
    %c0_67 = arith.constant 0 : index
    %181 = vector.load %arg3[%c1_65, %c0_66, %c0_67] : memref<2x32x96xf32, #tpu.memory_space<vmem>>, vector<1x32x96xf32>
    %182 = vector.shape_cast %181 : vector<1x32x96xf32> to vector<32x96xf32>
    %cst_68 = arith.constant dense<0.000000e+00> : vector<64x96xf32>
    %183 = tpu.matmul %180, %182, %cst_68 {dimension_numbers = #tpu.dot_dimension_numbers<[1], [0], [0], [1], [0, 0, 1, 1], [], []>} : vector<64x32xf32>, vector<32x96xf32>, vector<64x96xf32> -> vector<64x96xf32>
    %184 = vector.extract_strided_slice %183 {offsets = [0, 0], sizes = [1, 96], strides = [1, 1]} : vector<64x96xf32> to vector<1x96xf32>
    %185 = vector.extract_strided_slice %184 {offsets = [0, 0], sizes = [1, 8], strides = [1, 1]} : vector<1x96xf32> to vector<1x8xf32>
    %186 = vector.extract_strided_slice %183 {offsets = [0, 32], sizes = [64, 8], strides = [1, 1]} : vector<64x96xf32> to vector<64x8xf32>
    %187 = vector.extract_strided_slice %183 {offsets = [0, 64], sizes = [64, 8], strides = [1, 1]} : vector<64x96xf32> to vector<64x8xf32>
    %cst_69 = arith.constant dense<0.000000e+00> : vector<1x64xf32>
    %188 = tpu.matmul %185, %186, %cst_69 {dimension_numbers = #tpu.dot_dimension_numbers<[1], [1], [0], [0], [0, 0, 1, 0], [], []>} : vector<1x8xf32>, vector<64x8xf32>, vector<1x64xf32> -> vector<1x64xf32>
    %cst_70 = arith.constant 0.353553385 : f32
    %189 = vector.broadcast %cst_70 : f32 to vector<1x64xf32>
    %190 = arith.mulf %188, %189 : vector<1x64xf32>
    %cst_71 = arith.constant dense<0xFF800000> : vector<1xf32>
    %191 = vector.multi_reduction <maximumf>, %190, %cst_71 [1] : vector<1x64xf32> to vector<1xf32>
    %192 = vector.shape_cast %191 : vector<1xf32> to vector<1x1xf32>
    %193 = vector.broadcast %192 : vector<1x1xf32> to vector<1x64xf32>
    %194 = arith.subf %190, %193 : vector<1x64xf32>
    %195 = math.exp %194 : vector<1x64xf32>
    %cst_72 = arith.constant dense<0.000000e+00> : vector<1xf32>
    %196 = vector.multi_reduction <add>, %195, %cst_72 [1] : vector<1x64xf32> to vector<1xf32>
    %197 = vector.shape_cast %196 : vector<1xf32> to vector<1x1xf32>
    %198 = vector.broadcast %197 : vector<1x1xf32> to vector<1x64xf32>
    %199 = arith.divf %195, %198 : vector<1x64xf32>
    %cst_73 = arith.constant dense<0.000000e+00> : vector<1x8xf32>
    %200 = tpu.matmul %199, %187, %cst_73 {dimension_numbers = #tpu.dot_dimension_numbers<[1], [0], [0], [1], [0, 0, 1, 1], [], []>} : vector<1x64xf32>, vector<64x8xf32>, vector<1x8xf32> -> vector<1x8xf32>
    %201 = vector.extract_strided_slice %184 {offsets = [0, 8], sizes = [1, 8], strides = [1, 1]} : vector<1x96xf32> to vector<1x8xf32>
    %202 = vector.extract_strided_slice %183 {offsets = [0, 40], sizes = [64, 8], strides = [1, 1]} : vector<64x96xf32> to vector<64x8xf32>
    %203 = vector.extract_strided_slice %183 {offsets = [0, 72], sizes = [64, 8], strides = [1, 1]} : vector<64x96xf32> to vector<64x8xf32>
    %cst_74 = arith.constant dense<0.000000e+00> : vector<1x64xf32>
    %204 = tpu.matmul %201, %202, %cst_74 {dimension_numbers = #tpu.dot_dimension_numbers<[1], [1], [0], [0], [0, 0, 1, 0], [], []>} : vector<1x8xf32>, vector<64x8xf32>, vector<1x64xf32> -> vector<1x64xf32>
    %cst_75 = arith.constant 0.353553385 : f32
    %205 = vector.broadcast %cst_75 : f32 to vector<1x64xf32>
    %206 = arith.mulf %204, %205 : vector<1x64xf32>
    %cst_76 = arith.constant dense<0xFF800000> : vector<1xf32>
    %207 = vector.multi_reduction <maximumf>, %206, %cst_76 [1] : vector<1x64xf32> to vector<1xf32>
    %208 = vector.shape_cast %207 : vector<1xf32> to vector<1x1xf32>
    %209 = vector.broadcast %208 : vector<1x1xf32> to vector<1x64xf32>
    %210 = arith.subf %206, %209 : vector<1x64xf32>
    %211 = math.exp %210 : vector<1x64xf32>
    %cst_77 = arith.constant dense<0.000000e+00> : vector<1xf32>
    %212 = vector.multi_reduction <add>, %211, %cst_77 [1] : vector<1x64xf32> to vector<1xf32>
    %213 = vector.shape_cast %212 : vector<1xf32> to vector<1x1xf32>
    %214 = vector.broadcast %213 : vector<1x1xf32> to vector<1x64xf32>
    %215 = arith.divf %211, %214 : vector<1x64xf32>
    %cst_78 = arith.constant dense<0.000000e+00> : vector<1x8xf32>
    %216 = tpu.matmul %215, %203, %cst_78 {dimension_numbers = #tpu.dot_dimension_numbers<[1], [0], [0], [1], [0, 0, 1, 1], [], []>} : vector<1x64xf32>, vector<64x8xf32>, vector<1x8xf32> -> vector<1x8xf32>
    %217 = vector.extract_strided_slice %184 {offsets = [0, 16], sizes = [1, 8], strides = [1, 1]} : vector<1x96xf32> to vector<1x8xf32>
    %218 = vector.extract_strided_slice %183 {offsets = [0, 48], sizes = [64, 8], strides = [1, 1]} : vector<64x96xf32> to vector<64x8xf32>
    %219 = vector.extract_strided_slice %183 {offsets = [0, 80], sizes = [64, 8], strides = [1, 1]} : vector<64x96xf32> to vector<64x8xf32>
    %cst_79 = arith.constant dense<0.000000e+00> : vector<1x64xf32>
    %220 = tpu.matmul %217, %218, %cst_79 {dimension_numbers = #tpu.dot_dimension_numbers<[1], [1], [0], [0], [0, 0, 1, 0], [], []>} : vector<1x8xf32>, vector<64x8xf32>, vector<1x64xf32> -> vector<1x64xf32>
    %cst_80 = arith.constant 0.353553385 : f32
    %221 = vector.broadcast %cst_80 : f32 to vector<1x64xf32>
    %222 = arith.mulf %220, %221 : vector<1x64xf32>
    %cst_81 = arith.constant dense<0xFF800000> : vector<1xf32>
    %223 = vector.multi_reduction <maximumf>, %222, %cst_81 [1] : vector<1x64xf32> to vector<1xf32>
    %224 = vector.shape_cast %223 : vector<1xf32> to vector<1x1xf32>
    %225 = vector.broadcast %224 : vector<1x1xf32> to vector<1x64xf32>
    %226 = arith.subf %222, %225 : vector<1x64xf32>
    %227 = math.exp %226 : vector<1x64xf32>
    %cst_82 = arith.constant dense<0.000000e+00> : vector<1xf32>
    %228 = vector.multi_reduction <add>, %227, %cst_82 [1] : vector<1x64xf32> to vector<1xf32>
    %229 = vector.shape_cast %228 : vector<1xf32> to vector<1x1xf32>
    %230 = vector.broadcast %229 : vector<1x1xf32> to vector<1x64xf32>
    %231 = arith.divf %227, %230 : vector<1x64xf32>
    %cst_83 = arith.constant dense<0.000000e+00> : vector<1x8xf32>
    %232 = tpu.matmul %231, %219, %cst_83 {dimension_numbers = #tpu.dot_dimension_numbers<[1], [0], [0], [1], [0, 0, 1, 1], [], []>} : vector<1x64xf32>, vector<64x8xf32>, vector<1x8xf32> -> vector<1x8xf32>
    %233 = vector.extract_strided_slice %184 {offsets = [0, 24], sizes = [1, 8], strides = [1, 1]} : vector<1x96xf32> to vector<1x8xf32>
    %234 = vector.extract_strided_slice %183 {offsets = [0, 56], sizes = [64, 8], strides = [1, 1]} : vector<64x96xf32> to vector<64x8xf32>
    %235 = vector.extract_strided_slice %183 {offsets = [0, 88], sizes = [64, 8], strides = [1, 1]} : vector<64x96xf32> to vector<64x8xf32>
    %cst_84 = arith.constant dense<0.000000e+00> : vector<1x64xf32>
    %236 = tpu.matmul %233, %234, %cst_84 {dimension_numbers = #tpu.dot_dimension_numbers<[1], [1], [0], [0], [0, 0, 1, 0], [], []>} : vector<1x8xf32>, vector<64x8xf32>, vector<1x64xf32> -> vector<1x64xf32>
    %cst_85 = arith.constant 0.353553385 : f32
    %237 = vector.broadcast %cst_85 : f32 to vector<1x64xf32>
    %238 = arith.mulf %236, %237 : vector<1x64xf32>
    %cst_86 = arith.constant dense<0xFF800000> : vector<1xf32>
    %239 = vector.multi_reduction <maximumf>, %238, %cst_86 [1] : vector<1x64xf32> to vector<1xf32>
    %240 = vector.shape_cast %239 : vector<1xf32> to vector<1x1xf32>
    %241 = vector.broadcast %240 : vector<1x1xf32> to vector<1x64xf32>
    %242 = arith.subf %238, %241 : vector<1x64xf32>
    %243 = math.exp %242 : vector<1x64xf32>
    %cst_87 = arith.constant dense<0.000000e+00> : vector<1xf32>
    %244 = vector.multi_reduction <add>, %243, %cst_87 [1] : vector<1x64xf32> to vector<1xf32>
    %245 = vector.shape_cast %244 : vector<1xf32> to vector<1x1xf32>
    %246 = vector.broadcast %245 : vector<1x1xf32> to vector<1x64xf32>
    %247 = arith.divf %243, %246 : vector<1x64xf32>
    %cst_88 = arith.constant dense<0.000000e+00> : vector<1x8xf32>
    %248 = tpu.matmul %247, %235, %cst_88 {dimension_numbers = #tpu.dot_dimension_numbers<[1], [0], [0], [1], [0, 0, 1, 1], [], []>} : vector<1x64xf32>, vector<64x8xf32>, vector<1x8xf32> -> vector<1x8xf32>
    %249 = tpu.concatenate %200, %216, %232, %248 in 1 : vector<1x8xf32>, vector<1x8xf32>, vector<1x8xf32>, vector<1x8xf32> -> vector<1x32xf32>
    %250 = vector.extract_strided_slice %150 {offsets = [0, 0], sizes = [1, 32], strides = [1, 1]} : vector<64x32xf32> to vector<1x32xf32>
    %c1_89 = arith.constant 1 : index
    %c0_90 = arith.constant 0 : index
    %c0_91 = arith.constant 0 : index
    %251 = vector.load %arg4[%c1_89, %c0_90, %c0_91] : memref<2x32x32xf32, #tpu.memory_space<vmem>>, vector<1x32x32xf32>
    %252 = vector.shape_cast %251 : vector<1x32x32xf32> to vector<32x32xf32>
    %cst_92 = arith.constant dense<0.000000e+00> : vector<1x32xf32>
    %253 = tpu.matmul %249, %252, %cst_92 {dimension_numbers = #tpu.dot_dimension_numbers<[1], [0], [0], [1], [0, 0, 1, 1], [], []>} : vector<1x32xf32>, vector<32x32xf32>, vector<1x32xf32> -> vector<1x32xf32>
    %254 = arith.addf %250, %253 : vector<1x32xf32>
    %255 = arith.addf %254, %155 : vector<1x32xf32>
    %c1_93 = arith.constant 1 : index
    %c0_94 = arith.constant 0 : index
    %c0_95 = arith.constant 0 : index
    %256 = vector.load %arg5[%c1_93, %c0_94, %c0_95] : memref<2x32x64xf32, #tpu.memory_space<vmem>>, vector<1x32x64xf32>
    %257 = vector.shape_cast %256 : vector<1x32x64xf32> to vector<32x64xf32>
    %c1_96 = arith.constant 1 : index
    %c0_97 = arith.constant 0 : index
    %c0_98 = arith.constant 0 : index
    %258 = vector.load %arg8[%c1_96, %c0_97, %c0_98] : memref<2x1x64xf32, #tpu.memory_space<vmem>>, vector<1x1x64xf32>
    %259 = vector.shape_cast %258 : vector<1x1x64xf32> to vector<1x64xf32>
    %c1_99 = arith.constant 1 : index
    %c0_100 = arith.constant 0 : index
    %c0_101 = arith.constant 0 : index
    %260 = vector.load %arg6[%c1_99, %c0_100, %c0_101] : memref<2x64x32xf32, #tpu.memory_space<vmem>>, vector<1x64x32xf32>
    %261 = vector.shape_cast %260 : vector<1x64x32xf32> to vector<64x32xf32>
    %cst_102 = arith.constant dense<0.000000e+00> : vector<1xf32>
    %262 = vector.multi_reduction <add>, %255, %cst_102 [1] : vector<1x32xf32> to vector<1xf32>
    %263 = vector.shape_cast %262 : vector<1xf32> to vector<1x1xf32>
    %cst_103 = arith.constant 3.200000e+01 : f32
    %264 = vector.broadcast %cst_103 : f32 to vector<1x1xf32>
    %265 = arith.divf %263, %264 : vector<1x1xf32>
    %266 = vector.broadcast %265 : vector<1x1xf32> to vector<1x32xf32>
    %267 = arith.subf %255, %266 : vector<1x32xf32>
    %268 = arith.mulf %267, %267 : vector<1x32xf32>
    %cst_104 = arith.constant dense<0.000000e+00> : vector<1xf32>
    %269 = vector.multi_reduction <add>, %268, %cst_104 [1] : vector<1x32xf32> to vector<1xf32>
    %270 = vector.shape_cast %269 : vector<1xf32> to vector<1x1xf32>
    %cst_105 = arith.constant 3.200000e+01 : f32
    %271 = vector.broadcast %cst_105 : f32 to vector<1x1xf32>
    %272 = arith.divf %270, %271 : vector<1x1xf32>
    %273 = vector.broadcast %265 : vector<1x1xf32> to vector<1x32xf32>
    %274 = arith.subf %255, %273 : vector<1x32xf32>
    %cst_106 = arith.constant 9.99999974E-6 : f32
    %275 = vector.broadcast %cst_106 : f32 to vector<1x1xf32>
    %276 = arith.addf %272, %275 : vector<1x1xf32>
    %277 = math.rsqrt %276 : vector<1x1xf32>
    %278 = vector.broadcast %277 : vector<1x1xf32> to vector<1x32xf32>
    %279 = arith.mulf %274, %278 : vector<1x32xf32>
    %280 = arith.mulf %279, %156 : vector<1x32xf32>
    %281 = arith.addf %280, %157 : vector<1x32xf32>
    %cst_107 = arith.constant dense<0.000000e+00> : vector<1x64xf32>
    %282 = tpu.matmul %281, %257, %cst_107 {dimension_numbers = #tpu.dot_dimension_numbers<[1], [0], [0], [1], [0, 0, 1, 1], [], []>} : vector<1x32xf32>, vector<32x64xf32>, vector<1x64xf32> -> vector<1x64xf32>
    %283 = arith.addf %282, %259 : vector<1x64xf32>
    %cst_108 = arith.constant 5.000000e-01 : f32
    %284 = vector.broadcast %cst_108 : f32 to vector<1x64xf32>
    %285 = arith.mulf %284, %283 : vector<1x64xf32>
    %cst_109 = arith.constant 0.707106769 : f32
    %286 = vector.broadcast %cst_109 : f32 to vector<1x64xf32>
    %287 = arith.mulf %283, %286 : vector<1x64xf32>
    %288 = math.erf %287 : vector<1x64xf32>
    %cst_110 = arith.constant 1.000000e+00 : f32
    %289 = vector.broadcast %cst_110 : f32 to vector<1x64xf32>
    %290 = arith.addf %289, %288 : vector<1x64xf32>
    %291 = arith.mulf %285, %290 : vector<1x64xf32>
    %cst_111 = arith.constant dense<0.000000e+00> : vector<1x32xf32>
    %292 = tpu.matmul %291, %261, %cst_111 {dimension_numbers = #tpu.dot_dimension_numbers<[1], [0], [0], [1], [0, 0, 1, 1], [], []>} : vector<1x64xf32>, vector<64x32xf32>, vector<1x32xf32> -> vector<1x32xf32>
    %293 = arith.addf %255, %292 : vector<1x32xf32>
    %294 = arith.addf %293, %158 : vector<1x32xf32>
    %c0_112 = arith.constant 0 : index
    %c0_113 = arith.constant 0 : index
    %c0_114 = arith.constant 0 : index
    %295 = vector.load %arg9[%c0_112, %c0_113, %c0_114] : memref<1x1x32xf32, #tpu.memory_space<vmem>>, vector<1x1x32xf32>
    %296 = vector.shape_cast %295 : vector<1x1x32xf32> to vector<1x32xf32>
    %297 = vector.shape_cast %294 : vector<1x32xf32> to vector<1x1x32xf32>
    tpu.vector_store %arg9[%c0_112, %c0_113, %c0_114], %297 {strides = array<i32>} : memref<1x1x32xf32, #tpu.memory_space<vmem>>, vector<1x1x32xf32>,
    return
  }
  func.func @transform_0(%arg0: i32) -> (i32, i32, i32) {
    %c0_i32 = arith.constant 0 : i32
    %c0_i32_0 = arith.constant 0 : i32
    %c0_i32_1 = arith.constant 0 : i32
    return %arg0, %c0_i32, %c0_i32_0 : i32, i32, i32
  }
  func.func @transform_1(%arg0: i32) -> (i32, i32) {
    %c0_i32 = arith.constant 0 : i32
    %c0_i32_0 = arith.constant 0 : i32
    %c0_i32_1 = arith.constant 0 : i32
    return %c0_i32, %c0_i32_0 : i32, i32
  }
  func.func @transform_2(%arg0: i32) -> (i32, i32, i32) {
    %c0_i32 = arith.constant 0 : i32
    %c0_i32_0 = arith.constant 0 : i32
    %c0_i32_1 = arith.constant 0 : i32
    %c0_i32_2 = arith.constant 0 : i32
    return %c0_i32, %c0_i32_0, %c0_i32_1 : i32, i32, i32
  }
  func.func @transform_3(%arg0: i32) -> (i32, i32, i32) {
    %c0_i32 = arith.constant 0 : i32
    %c0_i32_0 = arith.constant 0 : i32
    %c0_i32_1 = arith.constant 0 : i32
    %c0_i32_2 = arith.constant 0 : i32
    return %c0_i32, %c0_i32_0, %c0_i32_1 : i32, i32, i32
  }
  func.func @transform_4(%arg0: i32) -> (i32, i32, i32) {
    %c0_i32 = arith.constant 0 : i32
    %c0_i32_0 = arith.constant 0 : i32
    %c0_i32_1 = arith.constant 0 : i32
    %c0_i32_2 = arith.constant 0 : i32
    return %c0_i32, %c0_i32_0, %c0_i32_1 : i32, i32, i32
  }
  func.func @transform_5(%arg0: i32) -> (i32, i32, i32) {
    %c0_i32 = arith.constant 0 : i32
    %c0_i32_0 = arith.constant 0 : i32
    %c0_i32_1 = arith.constant 0 : i32
    %c0_i32_2 = arith.constant 0 : i32
    return %c0_i32, %c0_i32_0, %c0_i32_1 : i32, i32, i32
  }
  func.func @transform_6(%arg0: i32) -> (i32, i32, i32) {
    %c0_i32 = arith.constant 0 : i32
    %c0_i32_0 = arith.constant 0 : i32
    %c0_i32_1 = arith.constant 0 : i32
    %c0_i32_2 = arith.constant 0 : i32
    return %c0_i32, %c0_i32_0, %c0_i32_1 : i32, i32, i32
  }
  func.func @transform_7(%arg0: i32) -> (i32, i32, i32) {
    %c0_i32 = arith.constant 0 : i32
    %c0_i32_0 = arith.constant 0 : i32
    %c0_i32_1 = arith.constant 0 : i32
    %c0_i32_2 = arith.constant 0 : i32
    return %c0_i32, %c0_i32_0, %c0_i32_1 : i32, i32, i32
  }
  func.func @transform_8(%arg0: i32) -> (i32, i32, i32) {
    %c0_i32 = arith.constant 0 : i32
    %c0_i32_0 = arith.constant 0 : i32
    %c0_i32_1 = arith.constant 0 : i32
    return %arg0, %c0_i32, %c0_i32_0 : i32, i32, i32
  }
}

</mosaic_0001>

<bundles_post_ra>
// kernel: tpu_custom_call.1
= control target key start
LH: loop header
LB: loop body
LE: loop exit
PB: predicated region body
PF: predicated region fallthrough
CT: control target
= control target key end

     0   :  { %13 = vsyncpa [#allocation3], 0  ;;  %s7996_s0 = inlined_call_operand.vmem [shape: f32[2,64,32], index: 0, kind: input, shape index: {}]   ;;  %s7997_s1 = inlined_call_operand.vmem [shape: f32[64,32], index: 1, kind: input, shape index: {}]   ;;  %s7998_s2 = inlined_call_operand.vmem [shape: f32[2,32,96], index: 2, kind: input, shape index: {}]   ;;  %s7999_s3 = inlined_call_operand.vmem [shape: f32[2,32,32], index: 3, kind: input, shape index: {}]   ;;  %s8000_s4 = inlined_call_operand.vmem [shape: f32[2,32,64], index: 4, kind: input, shape index: {}]   ;;  %s8001_s5 = inlined_call_operand.vmem [shape: f32[2,64,32], index: 5, kind: input, shape index: {}]   ;;  %s8002_s6 = inlined_call_operand.vmem [shape: f32[2,6,32], index: 6, kind: input, shape index: {}]   ;;  %s8003_s7 = inlined_call_operand.vmem [shape: f32[2,1,64], index: 7, kind: input, shape index: {}]   ;;  %s8004_s8 = inlined_call_operand.hbm [shape: f32[2,1,32], index: 8, kind: output, shape index: {}]  }
   0x1   :  { %15 = vsyncpa [#allocation3 + $0x1], 0  ;;  %s6567_s27 = smov 0   ;;  %s6569_s28 = smov 0  }
   0x2   :  { %s6571_s29 = smov 0   ;;  %s6573_s30 = smov 0  }
   0x3 LB: > { %s6588_s9 = sadd.s32 4294967295, %s6502_s30   ;;  %s4486_s10 = sadd.s32 4294967294, %s6502_s30   ;;  %s6502_s30 = sphi %s6573_s30, %s8037_s30   ;;  %s6498_s29 = sphi %s6571_s29, %s8036_s29   ;;  %s6494_s28 = sphi %s6569_s28, %s8035_s28   ;;  %s6490_s27 = sphi %s6567_s27, %s8034_s27  }
   0x4   : > { %s6592_s11 = sadd.s32 1, %s6502_s30   ;;  %s201_s12 = sadd.s32 1, %s6498_s29 }
   0x5   : > { %s198_s13 = ssub.s32 %s6502_s30, %s6592_s11  ;;  %p211_p0 = scmp.ne.s32.totalorder %s6498_s29, %s6494_s28 }
   0x6   : > { %p199_p1 = scmp.eq.s32.totalorder %s198_s13, 0  ;;  %p212_p2 = scmp.eq.s32.totalorder %s6588_s9, 1 }
   0x7   : > { %p217_p3 = scmp.ne.s32.totalorder %s6494_s28, %s6490_s27  ;;  %p218_p4 = scmp.eq.s32.totalorder %s4486_s10, 1 }
   0x8   : > { %s6603_s14 = scalar_select %p199_p1, %s6498_s29, %s201_s12  }
   0x9   : > { %p6605_p5 = por %p212_p2, %p211_p0  ;;  %p6609_p6 = por %p218_p4, %p217_p3 }
   0xa   : > { %p4489_p7 = scmp.ge.s32.totalorder %s6502_s30, 1  ;;  %p265_p8 = scmp.lt.s32.totalorder %s6502_s30, 3 }
   0xc   : > { %p266_p9 = pnand %p4489_p7, %p265_p8 }
   0xd   : > { %p298_p10 = scmp.lt.s32.totalorder (!%p266_p9), %s6588_s9, 1  ;;  %v303_v0 = vld [vmem:[%s7997_s1] sm:$0xff] (!%p266_p9)  ;;  %v305_v1 = vld [vmem:[%s7997_s1 + $0x10] sm:$0xff] (!%p266_p9)  ;;  %v304_v2 = vld [vmem:[%s7997_s1 + $0x8] sm:$0xff] (!%p266_p9)  ;;  %vm328_vm0 = vcmask (!%p266_p9), 261120   ;;  %vm615_vm1 = vcmask (!%p266_p9), 64512  }
   0xe   : > { %269 = sbr.rel (%p266_p9) target bundleno = 8586 (0x218a), region = 52  ;;  %v306_v3 = vld [vmem:[%s7997_s1 + $0x18] sm:$0xff] (!%p266_p9)  ;;  %v307_v11 = vld [vmem:[%s7997_s1 + $0x20] sm:$0xff] (!%p266_p9)  ;;  %v308_v14 = vld [vmem:[%s7997_s1 + $0x28] sm:$0xff] (!%p266_p9)  ;;  %s6504_s22 = smov (!%p266_p9), 96   ;;  %vm761_vm3 = vcmask (!%p266_p9), 523264  }
   0xf   : > { %v309_v22 = vld [vmem:[%s7997_s1 + $0x30] sm:$0xff] (!%p266_p9)  ;;  %v310_v24 = vld [vmem:[%s7997_s1 + $0x38] sm:$0xff] (!%p266_p9)  ;;  %vm6807_vm2 = vmpackc.low (!%p266_p9), %vm615_vm1, %vm615_vm1  ;;  %s6505_s23 = smov (!%p266_p9), 64   ;;  %s6506_s24 = smov (!%p266_p9), 88   ;;  %vm2361_vm4 = vcmask (!%p266_p9), 130048   ;;  %vm2370_vm5 = vcmask (!%p266_p9), 195584  }
  0x10   : > { %s8018_s25 = smov (!%p266_p9), 120   ;;  %s8016_s26 = smov (!%p266_p9), 56   ;;  %vm6519_vm6 = vmmov (!%p266_p9), 0   ;;  %vm3374_vm7 = vcmask (!%p266_p9), 516096   ;;  %vm4242_vm8 = vcmask (!%p266_p9), 253952  }
  0x11   : > { %s8013_s12 = smov (!%p266_p9), 112   ;;  %s8011_s13 = smov (!%p266_p9), 48  }
  0x12   : > { %s8008_s19 = smov (!%p266_p9), 104   ;;  %s6515_s20 = smov (!%p266_p9), 8  }
  0x13   : > { %s6516_s21 = smov (!%p266_p9), 16  }
  0x15   : > { %s299_s17 = scalar_select %p298_p10, %s6588_s9, 1 }
  0x17   : > { %s4697_s18 = sshll.u32 %s299_s17, 6  ;;  %s8009_s17 = smov 72  }
  0x18   : > { %s302_s10 = scalar_lea.vmem %s7996_s0, %s4697_s18  ;;  %s8006_s18 = smov 40  }
  0x19   : > { %v311_v4 = vld [vmem:[%s302_s10] sm:$0xff]  ;;  %v313_v5 = vld [vmem:[%s302_s10 + $0x10] sm:$0xff]  ;;  %v312_v6 = vld [vmem:[%s302_s10 + $0x8] sm:$0xff] }
  0x1a   : > { %v6632_v7 = vadd.f32 %v311_v4, %v303_v0  ;;  %v6634_v8 = vadd.f32 %v313_v5, %v305_v1  ;;  %v6636_v9 = vadd.f32 %v312_v6, %v304_v2  ;;  %v314_v10 = vld [vmem:[%s302_s10 + $0x18] sm:$0xff]  ;;  %v315_v13 = vld [vmem:[%s302_s10 + $0x20] sm:$0xff]  ;;  %v316_v15 = vld [vmem:[%s302_s10 + $0x28] sm:$0xff] }
  0x1b   : > { %v6641_v12 = vadd.f32 %v314_v10, %v306_v3  ;;  %v6654_v20 = vadd.f32 %v315_v13, %v307_v11  ;;  %v6656_v21 = vadd.f32 %v316_v15, %v308_v14  ;;  %v317_v23 = vld [vmem:[%s302_s10 + $0x30] sm:$0xff]  ;;  %v318_v25 = vld [vmem:[%s302_s10 + $0x38] sm:$0xff]  ;;  %v458_v11 = vld [vmem:[%s7998_s2] sm:$0xff]  ;;  %s8014_s10 = smov 80  }
  0x1c   : > { %v329_v16 = vsel %vm328_vm0, %v6632_v7, 0.0  ;;  %v335_v17 = vsel %vm328_vm0, %v6634_v8, 0.0  ;;  %v332_v18 = vsel %vm328_vm0, %v6636_v9, 0.0  ;;  %v6668_v28 = vadd.f32 %v317_v23, %v309_v22  ;;  %v459_v13 = vld [vmem:[%s7998_s2 + $0x8] sm:$0xff]  ;;  %v460_v15 = vld [vmem:[%s7998_s2 + $0x10] sm:$0xff] }
  0x1d   : > { %330 = vadd.xlane.f32.xlu0 %v329_v16  ;;  %336 = vadd.xlane.f32.xlu1 %v335_v17  ;;  %v338_v19 = vsel %vm328_vm0, %v6641_v12, 0.0  ;;  %v341_v26 = vsel %vm328_vm0, %v6654_v20, 0.0  ;;  %v344_v27 = vsel %vm328_vm0, %v6656_v21, 0.0  ;;  %v6670_v29 = vadd.f32 %v318_v25, %v310_v24  ;;  %v461_v16 = vld [vmem:[%s7998_s2 + $0x18] sm:$0xff] }
  0x1e   : > { %v347_v30 = vsel %vm328_vm0, %v6668_v28, 0.0  ;;  %v5506_v14 = vpack.c.bf16 %v459_v13, %v458_v11  ;;  %v5510_v17 = vpack.c.bf16 %v461_v16, %v460_v15  ;;  %v434_v22 = vlaneseq }
  0x1f   : > { %v350_v31 = vsel %vm328_vm0, %v6670_v29, 0.0 }
  0x20   : > { %5507 = vmatprep.subr.bf16.mxu0 %v5506_v14 }
  0x21   : > { %333 = vadd.xlane.f32.xlu0 %v332_v18  ;;  %339 = vadd.xlane.f32.xlu1 %v338_v19 }
  0x22   : > { %5509 = vmatpush3.bf16.msra.mxu0 %v5506_v14 }
  0x23   : > { %5511 = vmatprep.subr.bf16.mxu0 %v5510_v17 }
  0x25   : > { %342 = vadd.xlane.f32.xlu0 %v341_v26  ;;  %345 = vadd.xlane.f32.xlu1 %v344_v27 }
  0x26   : > { %5513 = vmatpush3.bf16.msra.mxu0 %v5510_v17 }
  0x29   : > { %348 = vadd.xlane.f32.xlu0 %v347_v30  ;;  %351 = vadd.xlane.f32.xlu1 %v350_v31  ;;  %v6736_v30 = vshrl.u32 %v434_v22, 7 }
  0xaa   : > { %v331_v32 = vpop.xlane.xlu0 %330  ;;  %v337_v33 = vpop.xlane.xlu1 %336 }
  0xab   : > { %v354_v34 = vmul.f32 0.03125, %v331_v32  ;;  %v356_v35 = vmul.f32 0.03125, %v337_v33 }
  0xad   : > { %v6677_v36 = vsub.f32 %v6632_v7, %v354_v34  ;;  %v6680_v37 = vsub.f32 %v6634_v8, %v356_v35 }
  0xae   : > { %v334_v38 = vpop.xlane.xlu0 %333  ;;  %v340_v39 = vpop.xlane.xlu1 %339 }
  0xaf   : > { %v355_v40 = vmul.f32 0.03125, %v334_v38  ;;  %v357_v41 = vmul.f32 0.03125, %v340_v39  ;;  %v370_v42 = vmul.f32 %v6677_v36, %v6677_v36  ;;  %v372_v43 = vmul.f32 %v6680_v37, %v6680_v37 }
  0xb0   : > { %v436_v39 = vsub.s32 0, %v6736_v30 }
  0xb1   : > { %v6687_v44 = vsub.f32 %v6636_v9, %v355_v40  ;;  %v6690_v45 = vsub.f32 %v6641_v12, %v357_v41  ;;  %v378_v46 = vsel %vm328_vm0, %v370_v42, 0.0  ;;  %v384_v49 = vsel %vm328_vm0, %v372_v43, 0.0  ;;  %v327_v42 = vld [vmem:[%s8002_s6] sm:$0x3f] }
  0xb2   : > { %379 = vadd.xlane.f32.xlu0 %v378_v46  ;;  %v343_v47 = vpop.xlane.xlu0 %342  ;;  %v346_v48 = vpop.xlane.xlu1 %345 }
  0xb3   : > { %v358_v50 = vmul.f32 0.03125, %v343_v47  ;;  %v359_v51 = vmul.f32 0.03125, %v346_v48  ;;  %v371_v52 = vmul.f32 %v6687_v44, %v6687_v44  ;;  %v373_v53 = vmul.f32 %v6690_v45, %v6690_v45 }
  0xb4   : > { %v8005_v47 = vsub.s32 1, %v6736_v30 }
  0xb5   : > { %v6699_v54 = vsub.f32 %v6654_v20, %v358_v50  ;;  %v6702_v55 = vsub.f32 %v6656_v21, %v359_v51  ;;  %v381_v56 = vsel %vm328_vm0, %v371_v52, 0.0  ;;  %v387_v59 = vsel %vm328_vm0, %v373_v53, 0.0 }
  0xb6   : > { %385 = vadd.xlane.f32.xlu0 %v384_v49  ;;  %382 = vadd.xlane.f32.xlu1 %v381_v56  ;;  %v349_v57 = vpop.xlane.xlu0 %348  ;;  %v352_v58 = vpop.xlane.xlu1 %351  ;;  %v437_v50 = vrot.slane %v327_v42, %v436_v39 }
  0xb7   : > { %v360_v60 = vmul.f32 0.03125, %v349_v57  ;;  %v361_v61 = vmul.f32 0.03125, %v352_v58  ;;  %v374_v62 = vmul.f32 %v6699_v54, %v6699_v54  ;;  %v375_v63 = vmul.f32 %v6702_v55, %v6702_v55 }
  0xb8   : > { %v449_v58 = vrot.slane %v327_v42, %v8005_v47 }
  0xb9   : > { %v6711_v0 = vsub.f32 %v6668_v28, %v360_v60  ;;  %v6714_v1 = vsub.f32 %v6670_v29, %v361_v61  ;;  %v390_v2 = vsel %vm328_vm0, %v374_v62, 0.0  ;;  %v393_v3 = vsel %vm328_vm0, %v375_v63, 0.0 }
  0xba   : > { %388 = vadd.xlane.f32.xlu1 %v387_v59  ;;  %391 = vadd.xlane.f32.xlu0 %v390_v2 }
  0xbb   : > { %v376_v4 = vmul.f32 %v6711_v0, %v6711_v0  ;;  %v377_v5 = vmul.f32 %v6714_v1, %v6714_v1 }
  0xbd   : > { %v396_v6 = vsel %vm328_vm0, %v376_v4, 0.0  ;;  %v399_v10 = vsel %vm328_vm0, %v377_v5, 0.0 }
  0xbe   : > { %394 = vadd.xlane.f32.xlu1 %v393_v3  ;;  %397 = vadd.xlane.f32.xlu0 %v396_v6 }
  0xc2   : > { %400 = vadd.xlane.f32.xlu1 %v399_v10 }
 0x13f   : > { %v380_v18 = vpop.xlane.xlu0 %379 }
 0x140   : > { %v402_v19 = vmul.f32 0.03125, %v380_v18 }
 0x142   : > { %v410_v23 = vadd.f32 1e-05, %v402_v19 }
 0x143   : > { %v383_v24 = vpop.xlane.xlu1 %382  ;;  %v386_v25 = vpop.xlane.xlu0 %385 }
 0x144   : > { %6226 = vrsqrt.f32 %v410_v23  ;;  %v403_v26 = vmul.f32 0.03125, %v383_v24  ;;  %v404_v27 = vmul.f32 0.03125, %v386_v25 }
 0x146   : > { %v411_v31 = vadd.f32 1e-05, %v403_v26  ;;  %v412_v32 = vadd.f32 1e-05, %v404_v27 }
 0x147   : > { %v389_v33 = vpop.xlane.xlu1 %388  ;;  %v392_v34 = vpop.xlane.xlu0 %391 }
 0x148   : > { %6228 = vrsqrt.f32 %v411_v31  ;;  %v405_v35 = vmul.f32 0.03125, %v389_v33  ;;  %v406_v38 = vmul.f32 0.03125, %v392_v34 }
 0x149   : > { %6230 = vrsqrt.f32 %v412_v32 }
 0x14a   : > { %v413_v40 = vadd.f32 1e-05, %v405_v35  ;;  %v414_v41 = vadd.f32 1e-05, %v406_v38 }
 0x14b   : > { %v395_v43 = vpop.xlane.xlu1 %394  ;;  %v398_v46 = vpop.xlane.xlu0 %397 }
 0x14c   : > { %6232 = vrsqrt.f32 %v413_v40  ;;  %v407_v48 = vmul.f32 0.03125, %v395_v43  ;;  %v408_v49 = vmul.f32 0.03125, %v398_v46 }
 0x14d   : > { %6234 = vrsqrt.f32 %v414_v41 }
 0x14e   : > { %v6227_v51 = vpop.eup %6226  ;;  %v415_v52 = vadd.f32 1e-05, %v407_v48  ;;  %v416_v53 = vadd.f32 1e-05, %v408_v49 }
 0x14f   : > { %v401_v56 = vpop.xlane.xlu1 %400  ;;  %v426_v57 = vmul.f32 %v6227_v51, %v6677_v36 }
 0x150   : > { %6236 = vrsqrt.f32 %v415_v52  ;;  %v409_v59 = vmul.f32 0.03125, %v401_v56 }
 0x151   : > { %6238 = vrsqrt.f32 %v416_v53  ;;  %v438_v60 = vmul.f32 %v437_v50, %v426_v57 }
 0x152   : > { %v6229_v61 = vpop.eup %6228  ;;  %v417_v62 = vadd.f32 1e-05, %v409_v59 }
 0x153   : > { %v6231_v63 = vpop.eup %6230  ;;  %v450_v2 = vadd.f32 %v449_v58, %v438_v60  ;;  %v427_v3 = vmul.f32 %v6229_v61, %v6687_v44 }
 0x154   : > { %6240 = vrsqrt.f32 %v417_v62  ;;  %v428_v4 = vmul.f32 %v6231_v63, %v6680_v37 }
 0x155   : > { %4989 = vmatprep.mubr.msk.f32.mxu0 %vm328_vm0, %v450_v2  ;;  %v439_v5 = vmul.f32 %v437_v50, %v427_v3 }
 0x156   : > { %v6233_v36 = vpop.eup %6232  ;;  %v440_v6 = vmul.f32 %v437_v50, %v428_v4 }
 0x157   : > { %v6235_v10 = vpop.eup %6234  ;;  %v451_v11 = vadd.f32 %v449_v58, %v439_v5  ;;  %v429_v13 = vmul.f32 %v6233_v36, %v6690_v45 }
 0x158   : > { %v452_v14 = vadd.f32 %v449_v58, %v440_v6  ;;  %v430_v15 = vmul.f32 %v6235_v10, %v6699_v54 }
 0x159   : > { %4990 = vmatmul.mubr.msk.f32.vlgmr.msra.gmra.mrb[0].mxu0 %vm328_vm0, %v451_v11  ;;  %v441_v16 = vmul.f32 %v437_v50, %v429_v13 }
 0x15a   : > { %v6237_v17 = vpop.eup %6236  ;;  %4992 = vmatprep.mubr.msk.f32.mxu0 %vm328_vm0, %v452_v14  ;;  %v442_v44 = vmul.f32 %v437_v50, %v430_v15 }
 0x15b   : > { %v6239_v37 = vpop.eup %6238  ;;  %v453_v18 = vadd.f32 %v449_v58, %v441_v16  ;;  %v431_v19 = vmul.f32 %v6237_v17, %v6702_v55 }
 0x15c   : > { %v454_v22 = vadd.f32 %v449_v58, %v442_v44  ;;  %v432_v23 = vmul.f32 %v6239_v37, %v6711_v0 }
 0x15d   : > { %4993 = vmatmul.mubr.msk.f32.gmra.mrb[2].mxu0 %vm328_vm0, %v453_v18  ;;  %v443_v45 = vmul.f32 %v437_v50, %v431_v19 }
 0x15e   : > { %v6241_v24 = vpop.eup %6240  ;;  %4995 = vmatprep.mubr.msk.f32.mxu0 %vm328_vm0, %v454_v22  ;;  %v444_v54 = vmul.f32 %v437_v50, %v432_v23 }
 0x15f   : > { %v455_v25 = vadd.f32 %v449_v58, %v443_v45  ;;  %v433_v26 = vmul.f32 %v6241_v24, %v6714_v1 }
 0x160   : > { %v456_v27 = vadd.f32 %v449_v58, %v444_v54 }
 0x161   : > { %4996 = vmatmul.mubr.msk.f32.gmra.mrb[4].mxu0 %vm328_vm0, %v455_v25  ;;  %v445_v31 = vmul.f32 %v437_v50, %v433_v26 }
 0x162   : > { %4998 = vmatprep.mubr.msk.f32.mxu0 %vm328_vm0, %v456_v27 }
 0x163   : > { %v457_v55 = vadd.f32 %v449_v58, %v445_v31 }
 0x165   : > { %4999 = vmatmul.mubr.msk.f32.gmra.mrb[6].mxu0 %vm328_vm0, %v457_v55 }
 0x22c   : > { %v6763_v0 = vpop.f32.mrb[0].mxu0 }
 0x22d   : > { %v6765_v32 = vpop.f32.mrb[1].mxu0 }
 0x22e   : > { %5017 = vmatprep.mubr.msk.f32.mxu1 %vm615_vm1, %v6765_v32  ;;  %v6771_v1 = vpack.i.bf16 %v6763_v0, %v6765_v32 }
 0x230   : > { %5907 = vrot.lane.b32.xlu0 %v6771_v1, %s6504_s22  ;;  %v6775_v33 = vpop.f32.mrb[2].mxu0 }
 0x231   : > { %v6777_v34 = vpop.f32.mrb[3].mxu0 }
 0x232   : > { %v6781_v35 = vpack.i.bf16 %v6775_v33, %v6777_v34 }
 0x234   : > { %5912 = vrot.lane.b32.xlu1 %v6781_v35, %s6504_s22  ;;  %v6785_v38 = vpop.f32.mrb[4].mxu0 }
 0x235   : > { %v6787_v40 = vpop.f32.mrb[5].mxu0 }
 0x236   : > { %v6791_v41 = vpack.i.bf16 %v6785_v38, %v6787_v40 }
 0x238   : > { %5917 = vrot.lane.b32.xlu1 %v6791_v41, %s6504_s22  ;;  %v6795_v42 = vpop.f32.mrb[6].mxu0 }
 0x239   : > { %v6797_v43 = vpop.f32.mrb[7].mxu0 }
 0x23a   : > { %v6801_v46 = vpack.i.bf16 %v6795_v42, %v6797_v43 }
 0x23c   : > { %5922 = vrot.lane.b32.xlu1 %v6801_v46, %s6504_s22 }
 0x2a2   : > { %v5908_v48 = vpop.permute.xlu0 %5907 }
 0x2a3   : > { %v5910_v49 = vunpack.i.h.bf16 %v5908_v48  ;;  %v5909_v50 = vunpack.i.l.bf16 %v5908_v48 }
 0x2a5   : > { %v5514_v52 = vpack.c.bf16 %v5910_v49, %v5909_v50 }
 0x2a6   : > { %v5913_v53 = vpop.permute.xlu1 %5912 }
 0x2a7   : > { %v5915_v56 = vunpack.i.h.bf16 %v5913_v53  ;;  %v5914_v57 = vunpack.i.l.bf16 %v5913_v53  ;;  %5516 = vmatprep.subr.msk.bf16.mxu1 %vm6807_vm2, %v5514_v52 }
 0x2a8   : > { %5519 = vmatpush3.bf16.xpose.msk.msra.mxu1 %vm6807_vm2, %v5514_v52 }
 0x2a9   : > { %v5520_v58 = vpack.c.bf16 %v5915_v56, %v5914_v57 }
 0x2aa   : > { %v5918_v59 = vpop.permute.xlu1 %5917 }
 0x2ab   : > { %v5920_v60 = vunpack.i.h.bf16 %v5918_v59  ;;  %v5919_v61 = vunpack.i.l.bf16 %v5918_v59  ;;  %5522 = vmatprep.subr.msk.bf16.mxu1 %vm6807_vm2, %v5520_v58 }
 0x2ad   : > { %v5526_v62 = vpack.c.bf16 %v5920_v60, %v5919_v61 }
 0x2ae   : > { %v5923_v63 = vpop.permute.xlu1 %5922 }
 0x2af   : > { %v5925_v2 = vunpack.i.h.bf16 %v5923_v63  ;;  %v5924_v3 = vunpack.i.l.bf16 %v5923_v63 }
 0x2b0   : > { %5525 = vmatpush3.bf16.xpose.msk.msra.mxu1 %vm6807_vm2, %v5520_v58 }
 0x2b1   : > { %5528 = vmatprep.subr.msk.bf16.mxu1 %vm6807_vm2, %v5526_v62  ;;  %v5532_v4 = vpack.c.bf16 %v5925_v2, %v5924_v3 }
 0x2b8   : > { %5531 = vmatpush3.bf16.xpose.msk.msra.mxu1 %vm6807_vm2, %v5526_v62 }
 0x2b9   : > { %5534 = vmatprep.subr.msk.bf16.mxu1 %vm6807_vm2, %v5532_v4 }
 0x2c0   : > { %5537 = vmatpush3.bf16.xpose.msk.msra.mxu1 %vm6807_vm2, %v5532_v4 }
 0x2c7   : > { %5018 = vmatmul.mubr.msk.f32.vlgmr.msra.gmra.mrb[0].mxu1 %vm615_vm1, %v6763_v0 }
 0x2c8   : > { %5020 = vmatprep.mubr.msk.f32.mxu1 %vm615_vm1, %v6777_v34 }
 0x2cb   : > { %5021 = vmatmul.mubr.msk.f32.gmra.mrb[2].mxu1 %vm615_vm1, %v6775_v33 }
 0x2cc   : > { %5023 = vmatprep.mubr.msk.f32.mxu1 %vm615_vm1, %v6787_v40 }
 0x2cf   : > { %5024 = vmatmul.mubr.msk.f32.gmra.mrb[4].mxu1 %vm615_vm1, %v6785_v38 }
 0x2d0   : > { %5026 = vmatprep.mubr.msk.f32.mxu1 %vm615_vm1, %v6797_v43 }
 0x2d3   : > { %5027 = vmatmul.mubr.msk.f32.gmra.mrb[6].mxu1 %vm615_vm1, %v6795_v42 }
 0x39a   : > { %v5019_v5 = vpop.f32.mrb[0].mxu1 }
 0x39b   : > { %v754_v36 = vmul.f32 0.35355338, %v5019_v5  ;;  %v714_v6 = vpop.f32.mrb[1].mxu1 }
 0x39c   : > { %v753_v10 = vmul.f32 0.35355338, %v714_v6 }
 0x39d   : > { %v765_v11 = vsel %vm761_vm3, %v754_v36, -inf }
 0x39e   : > { %766 = vmax.xlane.f32.xlu1 %v765_v11  ;;  %v5022_v13 = vpop.f32.mrb[2].mxu1  ;;  %v762_v14 = vsel %vm761_vm3, %v753_v10, -inf }
 0x39f   : > { %v756_v15 = vmul.f32 0.35355338, %v5022_v13  ;;  %763 = vmax.xlane.f32.xlu0 %v762_v14  ;;  %v724_v16 = vpop.f32.mrb[3].mxu1 }
 0x3a0   : > { %v755_v44 = vmul.f32 0.35355338, %v724_v16 }
 0x3a1   : > { %v771_v17 = vsel %vm761_vm3, %v756_v15, -inf }
 0x3a2   : > { %v5025_v37 = vpop.f32.mrb[4].mxu1  ;;  %v768_v24 = vsel %vm761_vm3, %v755_v44, -inf }
 0x3a3   : > { %v758_v18 = vmul.f32 0.35355338, %v5025_v37  ;;  %772 = vmax.xlane.f32.xlu0 %v771_v17  ;;  %v734_v19 = vpop.f32.mrb[5].mxu1 }
 0x3a4   : > { %v757_v23 = vmul.f32 0.35355338, %v734_v19 }
 0x3a5   : > { %v777_v22 = vsel %vm761_vm3, %v758_v18, -inf }
 0x3a6   : > { %778 = vmax.xlane.f32.xlu1 %v777_v22  ;;  %v5028_v45 = vpop.f32.mrb[6].mxu1  ;;  %v774_v31 = vsel %vm761_vm3, %v757_v23, -inf }
 0x3a7   : > { %v6846_v54 = vmul.f32 0.35355338, %v5028_v45  ;;  %769 = vmax.xlane.f32.xlu0 %v768_v24  ;;  %v744_v25 = vpop.f32.mrb[7].mxu1 }
 0x3a8   : > { %v6850_v27 = vmul.f32 0.35355338, %v744_v25 }
 0x3a9   : > { %v783_v26 = vsel %vm761_vm3, %v6846_v54, -inf }
 0x3aa   : > { %784 = vmax.xlane.f32.xlu1 %v783_v26  ;;  %v780_v55 = vsel %vm761_vm3, %v6850_v27, -inf }
 0x3ab   : > { %775 = vmax.xlane.f32.xlu0 %v774_v31 }
 0x3af   : > { %781 = vmax.xlane.f32.xlu0 %v780_v55 }
 0x3bb   : > { %5932 = vrot.lane.b32.xlu1 %v6781_v35, %s6505_s23 }
 0x3bf   : > { %5937 = vrot.lane.b32.xlu1 %v6791_v41, %s6505_s23 }
 0x3c3   : > { %5942 = vrot.lane.b32.xlu1 %v6801_v46, %s6505_s23 }
 0x3c5   : > { %5927 = vrot.lane.b32.xlu0 %v6771_v1, %s6505_s23 }
 0x3c7   : > { %5952 = vrot.lane.b32.xlu1 %v6781_v35, %s6506_s24 }
 0x3c9   : > { %5947 = vrot.lane.b32.xlu0 %v6771_v1, %s6506_s24 }
 0x42b   : > { %v767_v48 = vpop.xlane.xlu1 %766 }
 0x42c   : > { %v787_v49 = vsub.f32 %v754_v36, %v767_v48  ;;  %v764_v50 = vpop.xlane.xlu0 %763 }
 0x42d   : > { %v786_v52 = vsub.f32 %v753_v10, %v764_v50 }
 0x42e   : > { %v796_v53 = vmul.f32 1.442695, %v787_v49 }
 0x42f   : > { %v794_v56 = vmul.f32 1.442695, %v786_v52 }
 0x430   : > { %6242 = vpow2.f32 %v796_v53  ;;  %v773_v57 = vpop.xlane.xlu0 %772 }
 0x431   : > { %6244 = vpow2.f32 %v794_v56  ;;  %v789_v58 = vsub.f32 %v756_v15, %v773_v57 }
 0x433   : > { %v800_v59 = vmul.f32 1.442695, %v789_v58  ;;  %v779_v60 = vpop.xlane.xlu1 %778 }
 0x434   : > { %v791_v61 = vsub.f32 %v758_v18, %v779_v60  ;;  %v770_v62 = vpop.xlane.xlu0 %769 }
 0x435   : > { %6246 = vpow2.f32 %v800_v59  ;;  %v788_v63 = vsub.f32 %v755_v44, %v770_v62 }
 0x436   : > { %v804_v2 = vmul.f32 1.442695, %v791_v61 }
 0x437   : > { %v798_v3 = vmul.f32 1.442695, %v788_v63  ;;  %v785_v4 = vpop.xlane.xlu1 %784 }
 0x438   : > { %v776_v5 = vpop.xlane.xlu0 %775 }
 0x439   : > { %6248 = vpow2.f32 %v798_v3  ;;  %v790_v36 = vsub.f32 %v757_v23, %v776_v5  ;;  %v793_v3 = vsub.f32 %v6846_v54, %v785_v4 }
 0x43a   : > { %v6867_v6 = vpop.eup %6242  ;;  %6250 = vpow2.f32 %v804_v2 }
 0x43b   : > { %v6869_v10 = vpop.eup %6244  ;;  %v802_v11 = vmul.f32 1.442695, %v790_v36  ;;  %v5933_v13 = vpop.permute.xlu1 %5932  ;;  %v813_v14 = vsel %vm761_vm3, %v6867_v6, 0.0  ;;  %v808_v5 = vmul.f32 1.442695, %v793_v3 }
 0x43c   : > { %814 = vadd.xlane.f32.xlu1 %v813_v14  ;;  %v782_v15 = vpop.xlane.xlu0 %781  ;;  %v810_v16 = vsel %vm761_vm3, %v6869_v10, 0.0  ;;  %v5935_v19 = vunpack.i.h.bf16 %v5933_v13  ;;  %v5934_v22 = vunpack.i.l.bf16 %v5933_v13 }
 0x43d   : > { %811 = vadd.xlane.f32.xlu0 %v810_v16  ;;  %6252 = vpow2.f32 %v802_v11  ;;  %v792_v36 = vsub.f32 %v6850_v27, %v782_v15 }
 0x43e   : > { %v5542_v49 = vpack.c.bf16 %v5935_v19, %v5934_v22  ;;  %6254 = vpow2.f32 %v808_v5 }
 0x43f   : > { %v6875_v17 = vpop.eup %6246  ;;  %v5938_v44 = vpop.permute.xlu1 %5937  ;;  %v806_v11 = vmul.f32 1.442695, %v792_v36 }
 0x440   : > { %v5928_v37 = vpop.permute.xlu0 %5927  ;;  %v819_v18 = vsel %vm761_vm3, %v6875_v17, 0.0  ;;  %v5940_v55 = vunpack.i.h.bf16 %v5938_v44  ;;  %v5939_v48 = vunpack.i.l.bf16 %v5938_v44 }
 0x441   : > { %v5930_v23 = vunpack.i.h.bf16 %v5928_v37  ;;  %v5929_v45 = vunpack.i.l.bf16 %v5928_v37  ;;  %820 = vadd.xlane.f32.xlu1 %v819_v18  ;;  %6256 = vpow2.f32 %v806_v11 }
 0x442   : > { %v5546_v58 = vpack.c.bf16 %v5940_v55, %v5939_v48 }
 0x443   : > { %v6879_v24 = vpop.eup %6248  ;;  %v5538_v25 = vpack.c.bf16 %v5930_v23, %v5929_v45  ;;  %v5943_v50 = vpop.permute.xlu1 %5942 }
 0x444   : > { %v816_v26 = vsel %vm761_vm3, %v6879_v24, 0.0  ;;  %v6883_v31 = vpop.eup %6250  ;;  %v5945_v56 = vunpack.i.h.bf16 %v5943_v50  ;;  %v5944_v57 = vunpack.i.l.bf16 %v5943_v50  ;;  %v5948_v59 = vpop.permute.xlu0 %5947 }
 0x445   : > { %817 = vadd.xlane.f32.xlu0 %v816_v26  ;;  %5539 = vmatprep.subr.bf16.mxu0 %v5538_v25  ;;  %v825_v52 = vsel %vm761_vm3, %v6883_v31, 0.0  ;;  %v5950_v61 = vunpack.i.h.bf16 %v5948_v59  ;;  %v5949_v62 = vunpack.i.l.bf16 %v5948_v59 }
 0x446   : > { %5541 = vmatpush3.bf16.msra.mxu0 %v5538_v25  ;;  %v5550_v63 = vpack.c.bf16 %v5945_v56, %v5944_v57 }
 0x447   : > { %5543 = vmatprep.subr.bf16.mxu0 %v5542_v49  ;;  %v6887_v53 = vpop.eup %6252  ;;  %v5554_v2 = vpack.c.bf16 %v5950_v61, %v5949_v62  ;;  %v5953_v14 = vpop.permute.xlu1 %5952 }
 0x448   : > { %v822_v60 = vsel %vm761_vm3, %v6887_v53, 0.0  ;;  %v6905_v54 = vpop.eup %6254  ;;  %v5955_v22 = vunpack.i.h.bf16 %v5953_v14  ;;  %v5954_v23 = vunpack.i.l.bf16 %v5953_v14 }
 0x449   : > { %826 = vadd.xlane.f32.xlu0 %v825_v52  ;;  %v831_v27 = vsel %vm761_vm3, %v6905_v54, 0.0 }
 0x44a   : > { %5545 = vmatpush3.bf16.msra.mxu0 %v5542_v49  ;;  %v5560_v55 = vpack.c.bf16 %v5955_v22, %v5954_v23 }
 0x44b   : > { %5547 = vmatprep.subr.bf16.mxu0 %v5546_v58  ;;  %v6911_v4 = vpop.eup %6256 }
 0x44c   : > { %v828_v13 = vsel %vm761_vm3, %v6911_v4, 0.0 }
 0x44d   : > { %823 = vadd.xlane.f32.xlu0 %v822_v60 }
 0x44e   : > { %5549 = vmatpush3.bf16.msra.mxu0 %v5546_v58 }
 0x44f   : > { %5551 = vmatprep.subr.bf16.mxu0 %v5550_v63 }
 0x452   : > { %5962 = vrot.lane.b32.xlu1 %v6801_v46, %s6506_s24  ;;  %5553 = vmatpush3.bf16.msra.mxu0 %v5550_v63 }
 0x453   : > { %5556 = vmatprep.subr.msk.bf16.mxu0 %vm6807_vm2, %v5554_v2 }
 0x463   : > { %5957 = vrot.lane.b32.xlu0 %v6791_v41, %s6506_s24 }
 0x467   : > { %1003 = vrot.lane.b32.xlu0 %v6765_v32, %s8018_s25 }
 0x46b   : > { %1007 = vrot.lane.b32.xlu0 %v6777_v34, %s8018_s25 }
 0x46f   : > { %1011 = vrot.lane.b32.xlu0 %v6787_v40, %s8018_s25 }
 0x473   : > { %1015 = vrot.lane.b32.xlu0 %v6797_v43, %s8018_s25 }
 0x476   : > { %832 = vadd.xlane.f32.xlu1 %v831_v27 }
 0x47a   : > { %829 = vadd.xlane.f32.xlu1 %v828_v13 }
 0x48b   : > { %1005 = vrot.lane.b32.xlu1 %v6763_v0, %s8018_s25 }
 0x48f   : > { %1009 = vrot.lane.b32.xlu1 %v6775_v33, %s8018_s25 }
 0x493   : > { %1013 = vrot.lane.b32.xlu1 %v6785_v38, %s8018_s25 }
 0x497   : > { %1017 = vrot.lane.b32.xlu1 %v6795_v42, %s8018_s25  ;;  %s8030_s25 = smov 72  }
 0x4c9   : > { %v815_v15 = vpop.xlane.xlu1 %814 }
 0x4ca   : > { %6258 = vrcp.f32 %v815_v15  ;;  %v812_v16 = vpop.xlane.xlu0 %811 }
 0x4cb   : > { %6260 = vrcp.f32 %v812_v16 }
 0x4ce   : > { %v821_v44 = vpop.xlane.xlu1 %820 }
 0x4cf   : > { %6262 = vrcp.f32 %v821_v44 }
 0x4d2   : > { %v818_v37 = vpop.xlane.xlu0 %817  ;;  %v5963_v59 = vpop.permute.xlu1 %5962 }
 0x4d3   : > { %6264 = vrcp.f32 %v818_v37  ;;  %v5965_v62 = vunpack.i.h.bf16 %v5963_v59 }
 0x4d4   : > { %v6259_v18 = vpop.eup %6258 }
 0x4d5   : > { %v6261_v19 = vpop.eup %6260  ;;  %v837_v26 = vmul.f32 %v6259_v18, %v6867_v6 }
 0x4d6   : > { %v827_v45 = vpop.xlane.xlu0 %826  ;;  %v835_v25 = vmul.f32 %v6261_v19, %v6869_v10 }
 0x4d7   : > { %6266 = vrcp.f32 %v827_v45 }
 0x4d8   : > { %5045 = vmatprep.mubr.msk.f32.mxu0 %vm761_vm3, %v835_v25 }
 0x4d9   : > { %5046 = vmatmul.mubr.msk.f32.vlgmr.msra.gmra.mrb[8].mxu0 %vm761_vm3, %v837_v26  ;;  %v6263_v49 = vpop.eup %6262 }
 0x4da   : > { %5559 = vmatpush3.bf16.xpose.msk.msra.mxu0 %vm6807_vm2, %v5554_v2  ;;  %v824_v48 = vpop.xlane.xlu0 %823  ;;  %v841_v57 = vmul.f32 %v6263_v49, %v6875_v17 }
 0x4db   : > { %6268 = vrcp.f32 %v824_v48  ;;  %5562 = vmatprep.subr.msk.bf16.mxu0 %vm6807_vm2, %v5560_v55 }
 0x4dd   : > { %v6265_v50 = vpop.eup %6264 }
 0x4de   : > { %v5958_v52 = vpop.permute.xlu0 %5957  ;;  %v839_v10 = vmul.f32 %v6265_v50, %v6879_v24  ;;  %v5964_v24 = vunpack.i.l.bf16 %v5963_v59 }
 0x4df   : > { %v5960_v6 = vunpack.i.h.bf16 %v5958_v52  ;;  %v5959_v56 = vunpack.i.l.bf16 %v5958_v52 }
 0x4e0   : > { %5048 = vmatprep.mubr.msk.f32.mxu0 %vm761_vm3, %v839_v10  ;;  %v5572_v2 = vpack.c.bf16 %v5965_v62, %v5964_v24 }
 0x4e1   : > { %v5566_v58 = vpack.c.bf16 %v5960_v6, %v5959_v56  ;;  %5049 = vmatmul.mubr.msk.f32.gmra.mrb[10].mxu0 %vm761_vm3, %v841_v57  ;;  %v6267_v60 = vpop.eup %6266 }
 0x4e2   : > { %5565 = vmatpush3.bf16.xpose.msk.msra.mxu0 %vm6807_vm2, %v5560_v55  ;;  %v845_v17 = vmul.f32 %v6267_v60, %v6883_v31 }
 0x4e3   : > { %5568 = vmatprep.subr.msk.bf16.mxu0 %vm6807_vm2, %v5566_v58 }
 0x4e5   : > { %v6269_v61 = vpop.eup %6268 }
 0x4e6   : > { %v843_v63 = vmul.f32 %v6269_v61, %v6887_v53  ;;  %v1004_v53 = vpop.permute.xlu0 %1003 }
 0x4e8   : > { %5051 = vmatprep.mubr.msk.f32.mxu0 %vm761_vm3, %v843_v63 }
 0x4e9   : > { %5052 = vmatmul.mubr.msk.f32.gmra.mrb[12].mxu0 %vm761_vm3, %v845_v17 }
 0x4ea   : > { %5571 = vmatpush3.bf16.xpose.msk.msra.mxu0 %vm6807_vm2, %v5566_v58  ;;  %v1008_v14 = vpop.permute.xlu0 %1007 }
 0x4eb   : > { %5574 = vmatprep.subr.msk.bf16.mxu0 %vm6807_vm2, %v5572_v2 }
 0x4ee   : > { %v1012_v16 = vpop.permute.xlu0 %1011 }
 0x4f2   : > { %5577 = vmatpush3.bf16.xpose.msk.msra.mxu0 %vm6807_vm2, %v5572_v2 }
 0x503   : > { %v833_v3 = vpop.xlane.xlu1 %832 }
 0x504   : > { %6270 = vrcp.f32 %v833_v3 }
 0x507   : > { %v830_v5 = vpop.xlane.xlu1 %829 }
 0x508   : > { %6272 = vrcp.f32 %v830_v5 }
 0x50b   : > { %v1006_v11 = vpop.permute.xlu1 %1005 }
 0x50e   : > { %v6271_v31 = vpop.eup %6270 }
 0x50f   : > { %v849_v13 = vmul.f32 %v6271_v31, %v6905_v54  ;;  %v1010_v15 = vpop.permute.xlu1 %1009 }
 0x512   : > { %v6273_v36 = vpop.eup %6272 }
 0x513   : > { %v847_v27 = vmul.f32 %v6273_v36, %v6911_v4  ;;  %v1014_v44 = vpop.permute.xlu1 %1013  ;;  %v1016_v4 = vpop.permute.xlu0 %1015 }
 0x515   : > { %5054 = vmatprep.mubr.msk.f32.mxu0 %vm761_vm3, %v847_v27 }
 0x516   : > { %5055 = vmatmul.mubr.msk.f32.gmra.mrb[14].mxu0 %vm761_vm3, %v849_v13 }
 0x517   : > { %5073 = vmatprep.mubr.msk.f32.mxu0 %vm615_vm1, %v1004_v53  ;;  %v1018_v54 = vpop.permute.xlu1 %1017 }
 0x51a   : > { %5074 = vmatmul.mubr.msk.f32.vlgmr.msra.gmra.mrb[16].mxu0 %vm615_vm1, %v1006_v11 }
 0x51b   : > { %5076 = vmatprep.mubr.msk.f32.mxu0 %vm615_vm1, %v1008_v14 }
 0x51e   : > { %5077 = vmatmul.mubr.msk.f32.gmra.mrb[18].mxu0 %vm615_vm1, %v1010_v15 }
 0x51f   : > { %5079 = vmatprep.mubr.msk.f32.mxu0 %vm615_vm1, %v1012_v16 }
 0x522   : > { %5080 = vmatmul.mubr.msk.f32.gmra.mrb[20].mxu0 %vm615_vm1, %v1014_v44 }
 0x523   : > { %5082 = vmatprep.mubr.msk.f32.mxu0 %vm615_vm1, %v1016_v4 }
 0x526   : > { %5083 = vmatmul.mubr.msk.f32.gmra.mrb[22].mxu0 %vm615_vm1, %v1018_v54 }
 0x5ac   : > { %v6961_v37 = vpop.f32.mrb[8].mxu0 }
 0x5ad   : > { %v6963_v18 = vpop.f32.mrb[9].mxu0 }
 0x5b4   : > { %v6965_v19 = vpop.f32.mrb[10].mxu0 }
 0x5b5   : > { %v6967_v22 = vpop.f32.mrb[11].mxu0 }
 0x5bc   : > { %v6969_v23 = vpop.f32.mrb[12].mxu0 }
 0x5bd   : > { %v6971_v45 = vpop.f32.mrb[13].mxu0 }
 0x5e9   : > { %v6973_v25 = vpop.f32.mrb[14].mxu0 }
 0x5ea   : > { %v6975_v26 = vpop.f32.mrb[15].mxu0 }
 0x5ed   : > { %v5075_v55 = vpop.f32.mrb[16].mxu0 }
 0x5ee   : > { %v1173_v48 = vmul.f32 0.35355338, %v5075_v55  ;;  %v1133_v49 = vpop.f32.mrb[17].mxu0 }
 0x5ef   : > { %v1172_v50 = vmul.f32 0.35355338, %v1133_v49 }
 0x5f0   : > { %v1183_v52 = vsel %vm761_vm3, %v1173_v48, -inf }
 0x5f1   : > { %1184 = vmax.xlane.f32.xlu1 %v1183_v52  ;;  %v5078_v10 = vpop.f32.mrb[18].mxu0  ;;  %v1180_v6 = vsel %vm761_vm3, %v1172_v50, -inf }
 0x5f2   : > { %v1175_v56 = vmul.f32 0.35355338, %v5078_v10  ;;  %1181 = vmax.xlane.f32.xlu0 %v1180_v6  ;;  %v1143_v57 = vpop.f32.mrb[19].mxu0 }
 0x5f3   : > { %v1174_v59 = vmul.f32 0.35355338, %v1143_v57 }
 0x5f4   : > { %v1189_v58 = vsel %vm761_vm3, %v1175_v56, -inf }
 0x5f5   : > { %v5081_v60 = vpop.f32.mrb[20].mxu0  ;;  %v1186_v2 = vsel %vm761_vm3, %v1174_v59, -inf }
 0x5f6   : > { %v1177_v61 = vmul.f32 0.35355338, %v5081_v60  ;;  %1190 = vmax.xlane.f32.xlu0 %v1189_v58  ;;  %v1153_v62 = vpop.f32.mrb[21].mxu0 }
 0x5f7   : > { %v1176_v63 = vmul.f32 0.35355338, %v1153_v62 }
 0x5f8   : > { %v1195_v24 = vsel %vm761_vm3, %v1177_v61, -inf }
 0x5f9   : > { %1196 = vmax.xlane.f32.xlu1 %v1195_v24  ;;  %v5084_v17 = vpop.f32.mrb[22].mxu0  ;;  %v1192_v36 = vsel %vm761_vm3, %v1176_v63, -inf }
 0x5fa   : > { %v6982_v3 = vmul.f32 0.35355338, %v5084_v17  ;;  %1187 = vmax.xlane.f32.xlu0 %v1186_v2  ;;  %v1163_v5 = vpop.f32.mrb[23].mxu0 }
 0x5fb   : > { %v6986_v31 = vmul.f32 0.35355338, %v1163_v5 }
 0x5fc   : > { %v1201_v53 = vsel %vm761_vm3, %v6982_v3, -inf }
 0x5fd   : > { %1202 = vmax.xlane.f32.xlu1 %v1201_v53  ;;  %v1198_v11 = vsel %vm761_vm3, %v6986_v31, -inf }
 0x5fe   : > { %1193 = vmax.xlane.f32.xlu0 %v1192_v36 }
 0x602   : > { %1199 = vmax.xlane.f32.xlu0 %v1198_v11 }
 0x60e   : > { %5972 = vrot.lane.b32.xlu1 %v6781_v35, %s8016_s26 }
 0x612   : > { %5977 = vrot.lane.b32.xlu1 %v6791_v41, %s8016_s26 }
 0x616   : > { %5982 = vrot.lane.b32.xlu1 %v6801_v46, %s8016_s26 }
 0x618   : > { %5967 = vrot.lane.b32.xlu0 %v6771_v1, %s8016_s26  ;;  %s8031_s26 = smov 104  }
 0x61a   : > { %5992 = vrot.lane.b32.xlu1 %v6781_v35, %s8014_s10 }
 0x61c   : > { %5987 = vrot.lane.b32.xlu0 %v6771_v1, %s8014_s10 }
 0x67e   : > { %v1185_v27 = vpop.xlane.xlu1 %1184 }
 0x67f   : > { %v1205_v13 = vsub.f32 %v1173_v48, %v1185_v27  ;;  %v1182_v14 = vpop.xlane.xlu0 %1181 }
 0x680   : > { %v1204_v15 = vsub.f32 %v1172_v50, %v1182_v14 }
 0x681   : > { %v1214_v16 = vmul.f32 1.442695, %v1205_v13 }
 0x682   : > { %v1212_v44 = vmul.f32 1.442695, %v1204_v15 }
 0x683   : > { %6274 = vpow2.f32 %v1214_v16  ;;  %v1191_v4 = vpop.xlane.xlu0 %1190 }
 0x684   : > { %6276 = vpow2.f32 %v1212_v44  ;;  %v1207_v54 = vsub.f32 %v1175_v56, %v1191_v4 }
 0x686   : > { %v1218_v55 = vmul.f32 1.442695, %v1207_v54  ;;  %v1197_v49 = vpop.xlane.xlu1 %1196 }
 0x687   : > { %v1209_v52 = vsub.f32 %v1177_v61, %v1197_v49  ;;  %v1188_v10 = vpop.xlane.xlu0 %1187 }
 0x688   : > { %6278 = vpow2.f32 %v1218_v55  ;;  %v1206_v6 = vsub.f32 %v1174_v59, %v1188_v10 }
 0x689   : > { %v1222_v57 = vmul.f32 1.442695, %v1209_v52 }
 0x68a   : > { %v1216_v58 = vmul.f32 1.442695, %v1206_v6  ;;  %v1203_v60 = vpop.xlane.xlu1 %1202 }
 0x68b   : > { %v1194_v62 = vpop.xlane.xlu0 %1193 }
 0x68c   : > { %6280 = vpow2.f32 %v1216_v58  ;;  %v1208_v48 = vsub.f32 %v1176_v63, %v1194_v62 }
 0x68d   : > { %v7003_v24 = vpop.eup %6274  ;;  %6282 = vpow2.f32 %v1222_v57 }
 0x68e   : > { %v7005_v50 = vpop.eup %6276  ;;  %v1220_v17 = vmul.f32 1.442695, %v1208_v48  ;;  %v5973_v2 = vpop.permute.xlu1 %5972  ;;  %v1231_v56 = vsel %vm761_vm3, %v7003_v24, 0.0 }
 0x68f   : > { %1232 = vadd.xlane.f32.xlu1 %v1231_v56  ;;  %v1200_v61 = vpop.xlane.xlu0 %1199  ;;  %v1228_v59 = vsel %vm761_vm3, %v7005_v50, 0.0  ;;  %v5975_v11 = vunpack.i.h.bf16 %v5973_v2  ;;  %v5974_v27 = vunpack.i.l.bf16 %v5973_v2 }
 0x690   : > { %1229 = vadd.xlane.f32.xlu0 %v1228_v59  ;;  %6284 = vpow2.f32 %v1220_v17 }
 0x691   : > { %v5582_v49 = vpack.c.bf16 %v5975_v11, %v5974_v27  ;;  %v1210_v11 = vsub.f32 %v6986_v31, %v1200_v61 }
 0x692   : > { %v7011_v5 = vpop.eup %6278  ;;  %v5978_v63 = vpop.permute.xlu1 %5977 }
 0x693   : > { %v5968_v53 = vpop.permute.xlu0 %5967  ;;  %v1237_v36 = vsel %vm761_vm3, %v7011_v5, 0.0  ;;  %v5980_v54 = vunpack.i.h.bf16 %v5978_v63  ;;  %v5979_v55 = vunpack.i.l.bf16 %v5978_v63  ;;  %v1224_v27 = vmul.f32 1.442695, %v1210_v11 }
 0x694   : > { %v5970_v13 = vunpack.i.h.bf16 %v5968_v53  ;;  %v5969_v14 = vunpack.i.l.bf16 %v5968_v53  ;;  %1238 = vadd.xlane.f32.xlu1 %v1237_v36  ;;  %v1211_v53 = vsub.f32 %v6982_v3, %v1203_v60 }
 0x695   : > { %v5586_v62 = vpack.c.bf16 %v5980_v54, %v5979_v55 }
 0x696   : > { %v7015_v15 = vpop.eup %6280  ;;  %v5578_v16 = vpack.c.bf16 %v5970_v13, %v5969_v14  ;;  %v5983_v52 = vpop.permute.xlu1 %5982  ;;  %v1226_v36 = vmul.f32 1.442695, %v1211_v53 }
 0x697   : > { %v1234_v44 = vsel %vm761_vm3, %v7015_v15, 0.0  ;;  %v7019_v4 = vpop.eup %6282  ;;  %v5985_v57 = vunpack.i.h.bf16 %v5983_v52  ;;  %v5984_v58 = vunpack.i.l.bf16 %v5983_v52  ;;  %v5988_v48 = vpop.permute.xlu0 %5987 }
 0x698   : > { %1235 = vadd.xlane.f32.xlu0 %v1234_v44  ;;  %5579 = vmatprep.subr.bf16.mxu1 %v5578_v16  ;;  %v1243_v10 = vsel %vm761_vm3, %v7019_v4, 0.0  ;;  %v5990_v2 = vunpack.i.h.bf16 %v5988_v48  ;;  %v5989_v56 = vunpack.i.l.bf16 %v5988_v48  ;;  %6286 = vpow2.f32 %v1226_v36 }
 0x699   : > { %5581 = vmatpush3.bf16.msra.mxu1 %v5578_v16  ;;  %v5590_v59 = vpack.c.bf16 %v5985_v57, %v5984_v58  ;;  %6288 = vpow2.f32 %v1224_v27 }
 0x69a   : > { %5583 = vmatprep.subr.bf16.mxu1 %v5582_v49  ;;  %v7023_v6 = vpop.eup %6284  ;;  %v5594_v63 = vpack.c.bf16 %v5990_v2, %v5989_v56  ;;  %v5993_v13 = vpop.permute.xlu1 %5992 }
 0x69b   : > { %v1240_v17 = vsel %vm761_vm3, %v7023_v6, 0.0  ;;  %v5995_v52 = vunpack.i.h.bf16 %v5993_v13 }
 0x69c   : > { %1244 = vadd.xlane.f32.xlu0 %v1243_v10  ;;  %v5994_v10 = vunpack.i.l.bf16 %v5993_v13 }
 0x69d   : > { %5585 = vmatpush3.bf16.msra.mxu1 %v5582_v49 }
 0x69e   : > { %5587 = vmatprep.subr.bf16.mxu1 %v5586_v62  ;;  %v5600_v48 = vpack.c.bf16 %v5995_v52, %v5994_v10 }
 0x6a0   : > { %1241 = vadd.xlane.f32.xlu0 %v1240_v17 }
 0x6a1   : > { %5589 = vmatpush3.bf16.msra.mxu1 %v5586_v62 }
 0x6a2   : > { %5591 = vmatprep.subr.bf16.mxu1 %v5590_v59  ;;  %v7041_v3 = vpop.eup %6286 }
 0x6a3   : > { %v1249_v31 = vsel %vm761_vm3, %v7041_v3, 0.0  ;;  %v7047_v60 = vpop.eup %6288 }
 0x6a4   : > { %v1246_v61 = vsel %vm761_vm3, %v7047_v60, 0.0 }
 0x6a5   : > { %6002 = vrot.lane.b32.xlu1 %v6801_v46, %s8014_s10  ;;  %5593 = vmatpush3.bf16.msra.mxu1 %v5590_v59 }
 0x6a6   : > { %5596 = vmatprep.subr.msk.bf16.mxu1 %vm6807_vm2, %v5594_v63 }
 0x6b6   : > { %5997 = vrot.lane.b32.xlu0 %v6791_v41, %s8014_s10 }
 0x6ba   : > { %1421 = vrot.lane.b32.xlu0 %v6765_v32, %s8013_s12 }
 0x6be   : > { %1425 = vrot.lane.b32.xlu0 %v6777_v34, %s8013_s12 }
 0x6c2   : > { %1429 = vrot.lane.b32.xlu0 %v6787_v40, %s8013_s12 }
 0x6c6   : > { %1433 = vrot.lane.b32.xlu0 %v6797_v43, %s8013_s12 }
 0x6c9   : > { %1250 = vadd.xlane.f32.xlu1 %v1249_v31 }
 0x6cd   : > { %1247 = vadd.xlane.f32.xlu1 %v1246_v61 }
 0x6de   : > { %1423 = vrot.lane.b32.xlu1 %v6763_v0, %s8013_s12 }
 0x6e2   : > { %1427 = vrot.lane.b32.xlu1 %v6775_v33, %s8013_s12 }
 0x6e6   : > { %1431 = vrot.lane.b32.xlu1 %v6785_v38, %s8013_s12 }
 0x6ea   : > { %1435 = vrot.lane.b32.xlu1 %v6795_v42, %s8013_s12 }
 0x71c   : > { %v1233_v14 = vpop.xlane.xlu1 %1232 }
 0x71d   : > { %6290 = vrcp.f32 %v1233_v14  ;;  %v1230_v16 = vpop.xlane.xlu0 %1229 }
 0x71e   : > { %6292 = vrcp.f32 %v1230_v16 }
 0x721   : > { %v1239_v44 = vpop.xlane.xlu1 %1238 }
 0x722   : > { %6294 = vrcp.f32 %v1239_v44 }
 0x725   : > { %v1236_v54 = vpop.xlane.xlu0 %1235 }
 0x726   : > { %6296 = vrcp.f32 %v1236_v54 }
 0x727   : > { %v6291_v55 = vpop.eup %6290 }
 0x728   : > { %v6293_v49 = vpop.eup %6292  ;;  %v1255_v62 = vmul.f32 %v6291_v55, %v7003_v24 }
 0x729   : > { %v1245_v57 = vpop.xlane.xlu0 %1244  ;;  %v1253_v58 = vmul.f32 %v6293_v49, %v7005_v50 }
 0x72a   : > { %6298 = vrcp.f32 %v1245_v57 }
 0x72b   : > { %5101 = vmatprep.mubr.msk.f32.mxu1 %vm761_vm3, %v1253_v58 }
 0x72c   : > { %5102 = vmatmul.mubr.msk.f32.vlgmr.msra.gmra.mrb[8].mxu1 %vm761_vm3, %v1255_v62  ;;  %v6295_v2 = vpop.eup %6294 }
 0x72d   : > { %5599 = vmatpush3.bf16.xpose.msk.msra.mxu1 %vm6807_vm2, %v5594_v63  ;;  %v1242_v17 = vpop.xlane.xlu0 %1241  ;;  %v1259_v36 = vmul.f32 %v6295_v2, %v7011_v5  ;;  %v6003_v63 = vpop.permute.xlu1 %6002 }
 0x72e   : > { %6300 = vrcp.f32 %v1242_v17  ;;  %5602 = vmatprep.subr.msk.bf16.mxu1 %vm6807_vm2, %v5600_v48  ;;  %v6005_v61 = vunpack.i.h.bf16 %v6003_v63 }
 0x730   : > { %v6297_v56 = vpop.eup %6296 }
 0x731   : > { %v5998_v59 = vpop.permute.xlu0 %5997  ;;  %v1257_v50 = vmul.f32 %v6297_v56, %v7015_v15  ;;  %v6004_v15 = vunpack.i.l.bf16 %v6003_v63 }
 0x732   : > { %v6000_v24 = vunpack.i.h.bf16 %v5998_v59  ;;  %v5999_v53 = vunpack.i.l.bf16 %v5998_v59 }
 0x733   : > { %5104 = vmatprep.mubr.msk.f32.mxu1 %vm761_vm3, %v1257_v50  ;;  %v5612_v14 = vpack.c.bf16 %v6005_v61, %v6004_v15 }
 0x734   : > { %v5606_v11 = vpack.c.bf16 %v6000_v24, %v5999_v53  ;;  %5105 = vmatmul.mubr.msk.f32.gmra.mrb[10].mxu1 %vm761_vm3, %v1259_v36  ;;  %v6299_v27 = vpop.eup %6298 }
 0x735   : > { %5605 = vmatpush3.bf16.xpose.msk.msra.mxu1 %vm6807_vm2, %v5600_v48  ;;  %v1263_v5 = vmul.f32 %v6299_v27, %v7019_v4 }
 0x736   : > { %5608 = vmatprep.subr.msk.bf16.mxu1 %vm6807_vm2, %v5606_v11 }
 0x738   : > { %v6301_v31 = vpop.eup %6300 }
 0x739   : > { %v1261_v13 = vmul.f32 %v6301_v31, %v7023_v6  ;;  %v1422_v6 = vpop.permute.xlu0 %1421 }
 0x73b   : > { %5107 = vmatprep.mubr.msk.f32.mxu1 %vm761_vm3, %v1261_v13 }
 0x73c   : > { %5108 = vmatmul.mubr.msk.f32.gmra.mrb[12].mxu1 %vm761_vm3, %v1263_v5 }
 0x73d   : > { %5611 = vmatpush3.bf16.xpose.msk.msra.mxu1 %vm6807_vm2, %v5606_v11  ;;  %v1426_v10 = vpop.permute.xlu0 %1425 }
 0x73e   : > { %5614 = vmatprep.subr.msk.bf16.mxu1 %vm6807_vm2, %v5612_v14 }
 0x741   : > { %v1430_v58 = vpop.permute.xlu0 %1429 }
 0x745   : > { %5617 = vmatpush3.bf16.xpose.msk.msra.mxu1 %vm6807_vm2, %v5612_v14 }
 0x756   : > { %v1251_v16 = vpop.xlane.xlu1 %1250 }
 0x757   : > { %6302 = vrcp.f32 %v1251_v16 }
 0x75a   : > { %v1248_v44 = vpop.xlane.xlu1 %1247 }
 0x75b   : > { %6304 = vrcp.f32 %v1248_v44 }
 0x75e   : > { %v1424_v55 = vpop.permute.xlu1 %1423 }
 0x761   : > { %v6303_v4 = vpop.eup %6302 }
 0x762   : > { %v1267_v52 = vmul.f32 %v6303_v4, %v7041_v3  ;;  %v1428_v57 = vpop.permute.xlu1 %1427 }
 0x765   : > { %v6305_v54 = vpop.eup %6304 }
 0x766   : > { %v1265_v49 = vmul.f32 %v6305_v54, %v7047_v60  ;;  %v1432_v62 = vpop.permute.xlu1 %1431  ;;  %v1434_v60 = vpop.permute.xlu0 %1433 }
 0x768   : > { %5110 = vmatprep.mubr.msk.f32.mxu1 %vm761_vm3, %v1265_v49 }
 0x769   : > { %5111 = vmatmul.mubr.msk.f32.gmra.mrb[14].mxu1 %vm761_vm3, %v1267_v52 }
 0x76a   : > { %5129 = vmatprep.mubr.msk.f32.mxu1 %vm615_vm1, %v1422_v6  ;;  %v1436_v3 = vpop.permute.xlu1 %1435 }
 0x76d   : > { %5130 = vmatmul.mubr.msk.f32.vlgmr.msra.gmra.mrb[16].mxu1 %vm615_vm1, %v1424_v55 }
 0x76e   : > { %5132 = vmatprep.mubr.msk.f32.mxu1 %vm615_vm1, %v1426_v10 }
 0x771   : > { %5133 = vmatmul.mubr.msk.f32.gmra.mrb[18].mxu1 %vm615_vm1, %v1428_v57 }
 0x772   : > { %5135 = vmatprep.mubr.msk.f32.mxu1 %vm615_vm1, %v1430_v58 }
 0x775   : > { %5136 = vmatmul.mubr.msk.f32.gmra.mrb[20].mxu1 %vm615_vm1, %v1432_v62 }
 0x776   : > { %5138 = vmatprep.mubr.msk.f32.mxu1 %vm615_vm1, %v1434_v60 }
 0x779   : > { %5139 = vmatmul.mubr.msk.f32.gmra.mrb[22].mxu1 %vm615_vm1, %v1436_v3 }
 0x7ff   : > { %v7097_v48 = vpop.f32.mrb[8].mxu1 }
 0x800   : > { %v7099_v17 = vpop.f32.mrb[9].mxu1 }
 0x807   : > { %v7101_v2 = vpop.f32.mrb[10].mxu1 }
 0x808   : > { %v7103_v56 = vpop.f32.mrb[11].mxu1 }
 0x80f   : > { %v7105_v59 = vpop.f32.mrb[12].mxu1 }
 0x810   : > { %v7107_v50 = vpop.f32.mrb[13].mxu1 }
 0x83c   : > { %v7109_v24 = vpop.f32.mrb[14].mxu1 }
 0x83d   : > { %v7111_v53 = vpop.f32.mrb[15].mxu1 }
 0x840   : > { %v5131_v36 = vpop.f32.mrb[16].mxu1 }
 0x841   : > { %v1591_v11 = vmul.f32 0.35355338, %v5131_v36  ;;  %v1551_v63 = vpop.f32.mrb[17].mxu1 }
 0x842   : > { %v1590_v27 = vmul.f32 0.35355338, %v1551_v63 }
 0x843   : > { %v1601_v31 = vsel %vm761_vm3, %v1591_v11, -inf }
 0x844   : > { %1602 = vmax.xlane.f32.xlu1 %v1601_v31  ;;  %v5134_v61 = vpop.f32.mrb[18].mxu1  ;;  %v1598_v15 = vsel %vm761_vm3, %v1590_v27, -inf }
 0x845   : > { %v1593_v13 = vmul.f32 0.35355338, %v5134_v61  ;;  %1599 = vmax.xlane.f32.xlu0 %v1598_v15  ;;  %v1561_v5 = vpop.f32.mrb[19].mxu1 }
 0x846   : > { %v1592_v16 = vmul.f32 0.35355338, %v1561_v5 }
 0x847   : > { %v1607_v14 = vsel %vm761_vm3, %v1593_v13, -inf }
 0x848   : > { %v5137_v44 = vpop.f32.mrb[20].mxu1  ;;  %v1604_v52 = vsel %vm761_vm3, %v1592_v16, -inf }
 0x849   : > { %v1595_v6 = vmul.f32 0.35355338, %v5137_v44  ;;  %1608 = vmax.xlane.f32.xlu0 %v1607_v14  ;;  %v1571_v4 = vpop.f32.mrb[21].mxu1 }
 0x84a   : > { %v1594_v55 = vmul.f32 0.35355338, %v1571_v4 }
 0x84b   : > { %v1613_v54 = vsel %vm761_vm3, %v1595_v6, -inf }
 0x84c   : > { %1614 = vmax.xlane.f32.xlu1 %v1613_v54  ;;  %v5140_v49 = vpop.f32.mrb[22].mxu1  ;;  %v1610_v60 = vsel %vm761_vm3, %v1594_v55, -inf }
 0x84d   : > { %v7118_v10 = vmul.f32 0.35355338, %v5140_v49  ;;  %1605 = vmax.xlane.f32.xlu0 %v1604_v52  ;;  %v1581_v57 = vpop.f32.mrb[23].mxu1 }
 0x84e   : > { %v7122_v62 = vmul.f32 0.35355338, %v1581_v57 }
 0x84f   : > { %v1619_v58 = vsel %vm761_vm3, %v7118_v10, -inf }
 0x850   : > { %1620 = vmax.xlane.f32.xlu1 %v1619_v58  ;;  %v1616_v3 = vsel %vm761_vm3, %v7122_v62, -inf }
 0x851   : > { %1611 = vmax.xlane.f32.xlu0 %v1610_v60 }
 0x855   : > { %1617 = vmax.xlane.f32.xlu0 %v1616_v3 }
 0x861   : > { %6012 = vrot.lane.b32.xlu1 %v6781_v35, %s8011_s13 }
 0x865   : > { %6017 = vrot.lane.b32.xlu1 %v6791_v41, %s8011_s13 }
 0x869   : > { %6022 = vrot.lane.b32.xlu1 %v6801_v46, %s8011_s13 }
 0x86b   : > { %6007 = vrot.lane.b32.xlu0 %v6771_v1, %s8011_s13 }
 0x86d   : > { %6032 = vrot.lane.b32.xlu1 %v6781_v35, %s8009_s17 }
 0x86f   : > { %6027 = vrot.lane.b32.xlu0 %v6771_v1, %s8009_s17 }
 0x8d1   : > { %v1603_v36 = vpop.xlane.xlu1 %1602 }
 0x8d2   : > { %v1623_v63 = vsub.f32 %v1591_v11, %v1603_v36  ;;  %v1600_v31 = vpop.xlane.xlu0 %1599 }
 0x8d3   : > { %v1622_v61 = vsub.f32 %v1590_v27, %v1600_v31 }
 0x8d4   : > { %v1632_v15 = vmul.f32 1.442695, %v1623_v63 }
 0x8d5   : > { %v1630_v5 = vmul.f32 1.442695, %v1622_v61 }
 0x8d6   : > { %6306 = vpow2.f32 %v1632_v15  ;;  %v1609_v14 = vpop.xlane.xlu0 %1608 }
 0x8d7   : > { %6308 = vpow2.f32 %v1630_v5  ;;  %v1625_v44 = vsub.f32 %v1593_v13, %v1609_v14 }
 0x8d9   : > { %v1636_v4 = vmul.f32 1.442695, %v1625_v44  ;;  %v1615_v54 = vpop.xlane.xlu1 %1614 }
 0x8da   : > { %v1627_v49 = vsub.f32 %v1595_v6, %v1615_v54  ;;  %v1606_v52 = vpop.xlane.xlu0 %1605 }
 0x8db   : > { %6310 = vpow2.f32 %v1636_v4  ;;  %v1624_v57 = vsub.f32 %v1592_v16, %v1606_v52 }
 0x8dc   : > { %v1640_v58 = vmul.f32 1.442695, %v1627_v49 }
 0x8dd   : > { %v1634_v60 = vmul.f32 1.442695, %v1624_v57  ;;  %v1621_v3 = vpop.xlane.xlu1 %1620 }
 0x8de   : > { %v1612_v47 = vpop.xlane.xlu0 %1611 }
 0x8df   : > { %6312 = vpow2.f32 %v1634_v60  ;;  %v1626_v11 = vsub.f32 %v1594_v55, %v1612_v47 }
 0x8e0   : > { %v7139_v36 = vpop.eup %6306  ;;  %6314 = vpow2.f32 %v1640_v58 }
 0x8e1   : > { %v7141_v27 = vpop.eup %6308  ;;  %v1638_v63 = vmul.f32 1.442695, %v1626_v11  ;;  %v6013_v31 = vpop.permute.xlu1 %6012  ;;  %v1649_v13 = vsel %vm761_vm3, %v7139_v36, 0.0 }
 0x8e2   : > { %1650 = vadd.xlane.f32.xlu1 %v1649_v13  ;;  %v1618_v6 = vpop.xlane.xlu0 %1617  ;;  %v1646_v16 = vsel %vm761_vm3, %v7141_v27, 0.0  ;;  %v6015_v5 = vunpack.i.h.bf16 %v6013_v31  ;;  %v6014_v14 = vunpack.i.l.bf16 %v6013_v31 }
 0x8e3   : > { %1647 = vadd.xlane.f32.xlu0 %v1646_v16  ;;  %6316 = vpow2.f32 %v1638_v63 }
 0x8e4   : > { %v5622_v11 = vpack.c.bf16 %v6015_v5, %v6014_v14 }
 0x8e5   : > { %v7147_v61 = vpop.eup %6310  ;;  %v6018_v47 = vpop.permute.xlu1 %6017 }
 0x8e6   : > { %v6008_v55 = vpop.permute.xlu0 %6007  ;;  %v1655_v15 = vsel %vm761_vm3, %v7147_v61, 0.0  ;;  %v6020_v58 = vunpack.i.h.bf16 %v6018_v47  ;;  %v6019_v60 = vunpack.i.l.bf16 %v6018_v47 }
 0x8e7   : > { %v6010_v44 = vunpack.i.h.bf16 %v6008_v55  ;;  %v6009_v4 = vunpack.i.l.bf16 %v6008_v55  ;;  %1656 = vadd.xlane.f32.xlu1 %v1655_v15 }
 0x8e8   : > { %v5626_v15 = vpack.c.bf16 %v6020_v58, %v6019_v60  ;;  %v1628_v60 = vsub.f32 %v7122_v62, %v1618_v6 }
 0x8e9   : > { %v7151_v54 = vpop.eup %6312  ;;  %v5618_v49 = vpack.c.bf16 %v6010_v44, %v6009_v4  ;;  %v6023_v63 = vpop.permute.xlu1 %6022 }
 0x8ea   : > { %v1652_v52 = vsel %vm761_vm3, %v7151_v54, 0.0  ;;  %v7155_v57 = vpop.eup %6314  ;;  %v6025_v16 = vunpack.i.h.bf16 %v6023_v63  ;;  %v6024_v55 = vunpack.i.l.bf16 %v6023_v63  ;;  %v6028_v44 = vpop.permute.xlu0 %6027 }
 0x8eb   : > { %1653 = vadd.xlane.f32.xlu0 %v1652_v52  ;;  %5619 = vmatprep.subr.bf16.mxu0 %v5618_v49  ;;  %v1661_v31 = vsel %vm761_vm3, %v7155_v57, 0.0  ;;  %v6030_v4 = vunpack.i.h.bf16 %v6028_v44  ;;  %v6029_v5 = vunpack.i.l.bf16 %v6028_v44  ;;  %v1629_v52 = vsub.f32 %v7118_v10, %v1621_v3 }
 0x8ec   : > { %5621 = vmatpush3.bf16.msra.mxu0 %v5618_v49  ;;  %v5630_v14 = vpack.c.bf16 %v6025_v16, %v6024_v55 }
 0x8ed   : > { %5623 = vmatprep.subr.bf16.mxu0 %v5622_v11  ;;  %v7159_v13 = vpop.eup %6316  ;;  %v5634_v49 = vpack.c.bf16 %v6030_v4, %v6029_v5  ;;  %v1644_v58 = vmul.f32 1.442695, %v1629_v52 }
 0x8ee   : > { %v1658_v47 = vsel %vm761_vm3, %v7159_v13, 0.0 }
 0x8ef   : > { %1662 = vadd.xlane.f32.xlu0 %v1661_v31  ;;  %6318 = vpow2.f32 %v1644_v58 }
 0x8f0   : > { %5625 = vmatpush3.bf16.msra.mxu0 %v5622_v11  ;;  %v1642_v11 = vmul.f32 1.442695, %v1628_v60 }
 0x8f1   : > { %5627 = vmatprep.subr.bf16.mxu0 %v5626_v15 }
 0x8f2   : > { %6320 = vpow2.f32 %v1642_v11 }
 0x8f3   : > { %1659 = vadd.xlane.f32.xlu0 %v1658_v47 }
 0x8f4   : > { %5629 = vmatpush3.bf16.msra.mxu0 %v5626_v15 }
 0x8f5   : > { %5631 = vmatprep.subr.bf16.mxu0 %v5630_v14 }
 0x8f8   : > { %6042 = vrot.lane.b32.xlu1 %v6801_v46, %s8009_s17  ;;  %5633 = vmatpush3.bf16.msra.mxu0 %v5630_v14 }
 0x8f9   : > { %5636 = vmatprep.subr.msk.bf16.mxu0 %vm6807_vm2, %v5634_v49  ;;  %v7177_v10 = vpop.eup %6318 }
 0x8fa   : > { %v1667_v62 = vsel %vm761_vm3, %v7177_v10, 0.0 }
 0x8fc   : > { %v7183_v3 = vpop.eup %6320 }
 0x909   : > { %6037 = vrot.lane.b32.xlu0 %v6791_v41, %s8009_s17  ;;  %s8026_s17 = smov 56  }
 0x90d   : > { %1839 = vrot.lane.b32.xlu0 %v6765_v32, %s8008_s19  ;;  %v1664_v32 = vsel %vm761_vm3, %v7183_v3, 0.0 }
 0x911   : > { %1843 = vrot.lane.b32.xlu0 %v6777_v34, %s8008_s19  ;;  %v6033_v34 = vpop.permute.xlu1 %6032 }
 0x912   : > { %v6035_v16 = vunpack.i.h.bf16 %v6033_v34  ;;  %v6034_v55 = vunpack.i.l.bf16 %v6033_v34 }
 0x915   : > { %1847 = vrot.lane.b32.xlu0 %v6787_v40, %s8008_s19 }
 0x919   : > { %1851 = vrot.lane.b32.xlu0 %v6797_v43, %s8008_s19 }
 0x91c   : > { %1668 = vadd.xlane.f32.xlu1 %v1667_v62 }
 0x920   : > { %1665 = vadd.xlane.f32.xlu1 %v1664_v32 }
 0x931   : > { %1841 = vrot.lane.b32.xlu1 %v6763_v0, %s8008_s19 }
 0x935   : > { %1845 = vrot.lane.b32.xlu1 %v6775_v33, %s8008_s19 }
 0x939   : > { %1849 = vrot.lane.b32.xlu1 %v6785_v38, %s8008_s19 }
 0x93d   : > { %1853 = vrot.lane.b32.xlu1 %v6795_v42, %s8008_s19  ;;  %v5640_v42 = vpack.c.bf16 %v6035_v16, %v6034_v55  ;;  %s8019_s19 = smov 24  }
 0x96f   : > { %v1651_v40 = vpop.xlane.xlu1 %1650 }
 0x970   : > { %6322 = vrcp.f32 %v1651_v40  ;;  %v1648_v43 = vpop.xlane.xlu0 %1647 }
 0x971   : > { %6324 = vrcp.f32 %v1648_v43 }
 0x974   : > { %v1657_v6 = vpop.xlane.xlu1 %1656 }
 0x975   : > { %6326 = vrcp.f32 %v1657_v6 }
 0x978   : > { %v1654_v63 = vpop.xlane.xlu0 %1653 }
 0x979   : > { %6328 = vrcp.f32 %v1654_v63 }
 0x97a   : > { %v6323_v31 = vpop.eup %6322 }
 0x97b   : > { %v6325_v0 = vpop.eup %6324  ;;  %v1673_v38 = vmul.f32 %v6323_v31, %v7139_v36 }
 0x97c   : > { %v1663_v33 = vpop.xlane.xlu0 %1662  ;;  %v1671_v15 = vmul.f32 %v6325_v0, %v7141_v27 }
 0x97d   : > { %6330 = vrcp.f32 %v1663_v33 }
 0x97e   : > { %5157 = vmatprep.mubr.msk.f32.mxu0 %vm761_vm3, %v1671_v15 }
 0x97f   : > { %5158 = vmatmul.mubr.msk.f32.vlgmr.msra.gmra.mrb[24].mxu0 %vm761_vm3, %v1673_v38  ;;  %v6327_v47 = vpop.eup %6326 }
 0x980   : > { %5639 = vmatpush3.bf16.xpose.msk.msra.mxu0 %vm6807_vm2, %v5634_v49  ;;  %v1660_v44 = vpop.xlane.xlu0 %1659  ;;  %v1677_v52 = vmul.f32 %v6327_v47, %v7147_v61  ;;  %v6043_v49 = vpop.permute.xlu1 %6042 }
 0x981   : > { %6332 = vrcp.f32 %v1660_v44  ;;  %5642 = vmatprep.subr.msk.bf16.mxu0 %vm6807_vm2, %v5640_v42  ;;  %v6045_v62 = vunpack.i.h.bf16 %v6043_v49 }
 0x983   : > { %v6329_v4 = vpop.eup %6328 }
 0x984   : > { %v6038_v5 = vpop.permute.xlu0 %6037  ;;  %v1675_v27 = vmul.f32 %v6329_v4, %v7151_v54  ;;  %v6044_v54 = vunpack.i.l.bf16 %v6043_v49 }
 0x985   : > { %v6040_v36 = vunpack.i.h.bf16 %v6038_v5  ;;  %v6039_v14 = vunpack.i.l.bf16 %v6038_v5 }
 0x986   : > { %5160 = vmatprep.mubr.msk.f32.mxu0 %vm761_vm3, %v1675_v27  ;;  %v5652_v34 = vpack.c.bf16 %v6045_v62, %v6044_v54 }
 0x987   : > { %v5646_v58 = vpack.c.bf16 %v6040_v36, %v6039_v14  ;;  %5161 = vmatmul.mubr.msk.f32.gmra.mrb[26].mxu0 %vm761_vm3, %v1677_v52  ;;  %v6331_v60 = vpop.eup %6330 }
 0x988   : > { %5645 = vmatpush3.bf16.xpose.msk.msra.mxu0 %vm6807_vm2, %v5640_v42  ;;  %v1681_v61 = vmul.f32 %v6331_v60, %v7155_v57 }
 0x989   : > { %5648 = vmatprep.subr.msk.bf16.mxu0 %vm6807_vm2, %v5646_v58 }
 0x98b   : > { %v6333_v11 = vpop.eup %6332 }
 0x98c   : > { %v1679_v32 = vmul.f32 %v6333_v11, %v7159_v13  ;;  %v1840_v13 = vpop.permute.xlu0 %1839 }
 0x98e   : > { %5163 = vmatprep.mubr.msk.f32.mxu0 %vm761_vm3, %v1679_v32 }
 0x98f   : > { %5164 = vmatmul.mubr.msk.f32.gmra.mrb[28].mxu0 %vm761_vm3, %v1681_v61 }
 0x990   : > { %5651 = vmatpush3.bf16.xpose.msk.msra.mxu0 %vm6807_vm2, %v5646_v58  ;;  %v1844_v16 = vpop.permute.xlu0 %1843 }
 0x991   : > { %5654 = vmatprep.subr.msk.bf16.mxu0 %vm6807_vm2, %v5652_v34 }
 0x994   : > { %v1848_v33 = vpop.permute.xlu0 %1847 }
 0x998   : > { %5657 = vmatpush3.bf16.xpose.msk.msra.mxu0 %vm6807_vm2, %v5652_v34 }
 0x9a9   : > { %v1669_v40 = vpop.xlane.xlu1 %1668 }
 0x9aa   : > { %6334 = vrcp.f32 %v1669_v40 }
 0x9ad   : > { %v1666_v43 = vpop.xlane.xlu1 %1665 }
 0x9ae   : > { %6336 = vrcp.f32 %v1666_v43 }
 0x9b1   : > { %v1842_v63 = vpop.permute.xlu1 %1841 }
 0x9b4   : > { %v6335_v57 = vpop.eup %6334 }
 0x9b5   : > { %v1685_v0 = vmul.f32 %v6335_v57, %v7177_v10  ;;  %v1846_v55 = vpop.permute.xlu1 %1845 }
 0x9b8   : > { %v6337_v6 = vpop.eup %6336 }
 0x9b9   : > { %v1683_v31 = vmul.f32 %v6337_v6, %v7183_v3  ;;  %v1850_v15 = vpop.permute.xlu1 %1849  ;;  %v1852_v3 = vpop.permute.xlu0 %1851 }
 0x9bb   : > { %5166 = vmatprep.mubr.msk.f32.mxu0 %vm761_vm3, %v1683_v31 }
 0x9bc   : > { %5167 = vmatmul.mubr.msk.f32.gmra.mrb[30].mxu0 %vm761_vm3, %v1685_v0 }
 0x9bd   : > { %5185 = vmatprep.mubr.msk.f32.mxu0 %vm615_vm1, %v1840_v13  ;;  %v1854_v10 = vpop.permute.xlu1 %1853 }
 0x9c0   : > { %5186 = vmatmul.mubr.msk.f32.vlgmr.msra.gmra.mrb[32].mxu0 %vm615_vm1, %v1842_v63 }
 0x9c1   : > { %5188 = vmatprep.mubr.msk.f32.mxu0 %vm615_vm1, %v1844_v16 }
 0x9c4   : > { %5189 = vmatmul.mubr.msk.f32.gmra.mrb[34].mxu0 %vm615_vm1, %v1846_v55 }
 0x9c5   : > { %5191 = vmatprep.mubr.msk.f32.mxu0 %vm615_vm1, %v1848_v33 }
 0x9c8   : > { %5192 = vmatmul.mubr.msk.f32.gmra.mrb[36].mxu0 %vm615_vm1, %v1850_v15 }
 0x9c9   : > { %5194 = vmatprep.mubr.msk.f32.mxu0 %vm615_vm1, %v1852_v3 }
 0x9cc   : > { %5195 = vmatmul.mubr.msk.f32.gmra.mrb[38].mxu0 %vm615_vm1, %v1854_v10 }
 0xa52   : > { %v7233_v38 = vpop.f32.mrb[24].mxu0 }
 0xa53   : > { %v7235_v42 = vpop.f32.mrb[25].mxu0 }
 0xa5a   : > { %v7237_v44 = vpop.f32.mrb[26].mxu0 }
 0xa5b   : > { %v7239_v47 = vpop.f32.mrb[27].mxu0 }
 0xa62   : > { %v7241_v4 = vpop.f32.mrb[28].mxu0 }
 0xa63   : > { %v7243_v5 = vpop.f32.mrb[29].mxu0 }
 0xa8f   : > { %v7245_v27 = vpop.f32.mrb[30].mxu0 }
 0xa90   : > { %v7247_v36 = vpop.f32.mrb[31].mxu0 }
 0xa93   : > { %v5187_v14 = vpop.f32.mrb[32].mxu0 }
 0xa94   : > { %v2009_v52 = vmul.f32 0.35355338, %v5187_v14  ;;  %v1969_v58 = vpop.f32.mrb[33].mxu0 }
 0xa95   : > { %v2008_v49 = vmul.f32 0.35355338, %v1969_v58 }
 0xa96   : > { %v2019_v60 = vsel %vm761_vm3, %v2009_v52, -inf }
 0xa97   : > { %2020 = vmax.xlane.f32.xlu1 %v2019_v60  ;;  %v5190_v11 = vpop.f32.mrb[34].mxu0  ;;  %v2016_v62 = vsel %vm761_vm3, %v2008_v49, -inf }
 0xa98   : > { %v2011_v54 = vmul.f32 0.35355338, %v5190_v11  ;;  %2017 = vmax.xlane.f32.xlu0 %v2016_v62  ;;  %v1979_v32 = vpop.f32.mrb[35].mxu0 }
 0xa99   : > { %v2010_v34 = vmul.f32 0.35355338, %v1979_v32 }
 0xa9a   : > { %v2025_v61 = vsel %vm761_vm3, %v2011_v54, -inf }
 0xa9b   : > { %v5193_v40 = vpop.f32.mrb[36].mxu0  ;;  %v2022_v31 = vsel %vm761_vm3, %v2010_v34, -inf }
 0xa9c   : > { %v2013_v43 = vmul.f32 0.35355338, %v5193_v40  ;;  %2026 = vmax.xlane.f32.xlu0 %v2025_v61  ;;  %v1989_v13 = vpop.f32.mrb[37].mxu0 }
 0xa9d   : > { %v2012_v6 = vmul.f32 0.35355338, %v1989_v13 }
 0xa9e   : > { %v2031_v57 = vsel %vm761_vm3, %v2013_v43, -inf }
 0xa9f   : > { %2032 = vmax.xlane.f32.xlu1 %v2031_v57  ;;  %v5196_v63 = vpop.f32.mrb[38].mxu0  ;;  %v2028_v15 = vsel %vm761_vm3, %v2012_v6, -inf }
 0xaa0   : > { %v7254_v0 = vmul.f32 0.35355338, %v5196_v63  ;;  %2023 = vmax.xlane.f32.xlu0 %v2022_v31  ;;  %v1999_v16 = vpop.f32.mrb[39].mxu0 }
 0xaa1   : > { %v7258_v33 = vmul.f32 0.35355338, %v1999_v16 }
 0xaa2   : > { %v2037_v55 = vsel %vm761_vm3, %v7254_v0, -inf }
 0xaa3   : > { %2038 = vmax.xlane.f32.xlu1 %v2037_v55  ;;  %v2034_v3 = vsel %vm761_vm3, %v7258_v33, -inf }
 0xaa4   : > { %2029 = vmax.xlane.f32.xlu0 %v2028_v15 }
 0xaa8   : > { %2035 = vmax.xlane.f32.xlu0 %v2034_v3 }
 0xab4   : > { %6052 = vrot.lane.b32.xlu1 %v6781_v35, %s8006_s18 }
 0xabe   : > { %6047 = vrot.lane.b32.xlu0 %v6771_v1, %s8006_s18 }
 0xb24   : > { %v2021_v10 = vpop.xlane.xlu1 %2020 }
 0xb25   : > { %v2041_v14 = vsub.f32 %v2009_v52, %v2021_v10  ;;  %v2018_v58 = vpop.xlane.xlu0 %2017 }
 0xb26   : > { %v2040_v60 = vsub.f32 %v2008_v49, %v2018_v58 }
 0xb27   : > { %v2050_v11 = vmul.f32 1.442695, %v2041_v14 }
 0xb28   : > { %v2048_v62 = vmul.f32 1.442695, %v2040_v60 }
 0xb29   : > { %6338 = vpow2.f32 %v2050_v11  ;;  %v2027_v32 = vpop.xlane.xlu0 %2026 }
 0xb2a   : > { %6340 = vpow2.f32 %v2048_v62  ;;  %v2043_v61 = vsub.f32 %v2011_v54, %v2027_v32 }
 0xb2c   : > { %v2054_v40 = vmul.f32 1.442695, %v2043_v61  ;;  %v2033_v13 = vpop.xlane.xlu1 %2032 }
 0xb2d   : > { %v2045_v57 = vsub.f32 %v2013_v43, %v2033_v13  ;;  %v2024_v63 = vpop.xlane.xlu0 %2023 }
 0xb2e   : > { %6342 = vpow2.f32 %v2054_v40  ;;  %v2042_v31 = vsub.f32 %v2010_v34, %v2024_v63 }
 0xb2f   : > { %v2058_v35 = vmul.f32 1.442695, %v2045_v57 }
 0xb30   : > { %v2052_v16 = vmul.f32 1.442695, %v2042_v31  ;;  %v2039_v55 = vpop.xlane.xlu1 %2038 }
 0xb31   : > { %v2030_v1 = vpop.xlane.xlu0 %2029 }
 0xb32   : > { %6344 = vpow2.f32 %v2052_v16  ;;  %v2044_v52 = vsub.f32 %v2012_v6, %v2030_v1  ;;  %v2047_v1 = vsub.f32 %v7254_v0, %v2039_v55 }
 0xb33   : > { %v7267_v15 = vpop.eup %6338  ;;  %6346 = vpow2.f32 %v2058_v35 }
 0xb34   : > { %v7269_v49 = vpop.eup %6340  ;;  %v2056_v3 = vmul.f32 1.442695, %v2044_v52  ;;  %v2067_v54 = vsel %vm761_vm3, %v7267_v15, 0.0  ;;  %v6053_v10 = vpop.permute.xlu1 %6052 }
 0xb35   : > { %2068 = vadd.xlane.f32.xlu1 %v2067_v54  ;;  %v2036_v43 = vpop.xlane.xlu0 %2035  ;;  %v2064_v34 = vsel %vm761_vm3, %v7269_v49, 0.0  ;;  %v6055_v60 = vunpack.i.h.bf16 %v6053_v10  ;;  %v6054_v11 = vunpack.i.l.bf16 %v6053_v10 }
 0xb36   : > { %6348 = vpow2.f32 %v2056_v3  ;;  %2065 = vadd.xlane.f32.xlu0 %v2064_v34  ;;  %v2046_v52 = vsub.f32 %v7258_v33, %v2036_v43  ;;  %v2062_v3 = vmul.f32 1.442695, %v2047_v1 }
 0xb37   : > { %v5662_v63 = vpack.c.bf16 %v6055_v60, %v6054_v11 }
 0xb38   : > { %v7275_v14 = vpop.eup %6342  ;;  %v2060_v54 = vmul.f32 1.442695, %v2046_v52  ;;  %6350 = vpow2.f32 %v2062_v3 }
 0xb39   : > { %v6048_v6 = vpop.permute.xlu0 %6047  ;;  %v2073_v58 = vsel %vm761_vm3, %v7275_v14, 0.0 }
 0xb3a   : > { %v6050_v62 = vunpack.i.h.bf16 %v6048_v6  ;;  %v6049_v32 = vunpack.i.l.bf16 %v6048_v6  ;;  %2074 = vadd.xlane.f32.xlu1 %v2073_v58  ;;  %6352 = vpow2.f32 %v2060_v54  ;;  %v2381_v54 = vld [vmem:[%s7999_s3 + $0x10] sm:$0xff] }
 0xb3c   : > { %v7279_v61 = vpop.eup %6344  ;;  %v5658_v40 = vpack.c.bf16 %v6050_v62, %v6049_v32 }
 0xb3d   : > { %v2070_v13 = vsel %vm761_vm3, %v7279_v61, 0.0  ;;  %v7283_v57 = vpop.eup %6346 }
 0xb3e   : > { %2071 = vadd.xlane.f32.xlu0 %v2070_v13  ;;  %5659 = vmatprep.subr.bf16.mxu1 %v5658_v40  ;;  %v2079_v16 = vsel %vm761_vm3, %v7283_v57, 0.0 }
 0xb3f   : > { %5661 = vmatpush3.bf16.msra.mxu1 %v5658_v40 }
 0xb40   : > { %v7285_v31 = vpop.eup %6348  ;;  %5663 = vmatprep.subr.bf16.mxu1 %v5662_v63 }
 0xb41   : > { %v2076_v35 = vsel %vm761_vm3, %v7285_v31, 0.0 }
 0xb42   : > { %2077 = vadd.xlane.f32.xlu1 %v2076_v35  ;;  %2080 = vadd.xlane.f32.xlu0 %v2079_v16  ;;  %v7297_v34 = vpop.eup %6350 }
 0xb43   : > { %5665 = vmatpush3.bf16.msra.mxu1 %v5662_v63  ;;  %v2085_v6 = vsel %vm761_vm3, %v7297_v34, 0.0 }
 0xb44   : > { %v7299_v10 = vpop.eup %6352 }
 0xb53   : > { %6062 = vrot.lane.b32.xlu1 %v6801_v46, %s8006_s18  ;;  %v2082_v46 = vsel %vm761_vm3, %v7299_v10, 0.0 }
 0xb58   : > { %6057 = vrot.lane.b32.xlu0 %v6791_v41, %s8006_s18  ;;  %s8029_s18 = smov 48  }
 0xb77   : > { %2086 = vadd.xlane.f32.xlu0 %v2085_v6  ;;  %2083 = vadd.xlane.f32.xlu1 %v2082_v46 }
 0xb88   : > { %2267 = vrot.lane.b32.xlu1 %v7097_v48, %s6515_s20 }
 0xb8c   : > { %2297 = vrot.lane.b32.xlu1 %v7235_v42, %s6516_s21 }
 0xb8d   : > { %2265 = vrot.lane.b32.xlu0 %v7099_v17, %s6515_s20 }
 0xb90   : > { %2299 = vrot.lane.b32.xlu1 %v7233_v38, %s6516_s21 }
 0xb91   : > { %2269 = vrot.lane.b32.xlu0 %v7103_v56, %s6515_s20 }
 0xb94   : > { %2271 = vrot.lane.b32.xlu1 %v7101_v2, %s6515_s20 }
 0xb95   : > { %2301 = vrot.lane.b32.xlu0 %v7239_v47, %s6516_s21 }
 0xb98   : > { %2303 = vrot.lane.b32.xlu1 %v7237_v44, %s6516_s21 }
 0xb99   : > { %2273 = vrot.lane.b32.xlu0 %v7107_v50, %s6515_s20 }
 0xb9c   : > { %2275 = vrot.lane.b32.xlu1 %v7105_v59, %s6515_s20 }
 0xbc2   : > { %v2069_v48 = vpop.xlane.xlu1 %2068 }
 0xbc3   : > { %v2066_v41 = vpop.xlane.xlu0 %2065 }
 0xbc4   : > { %6354 = vrcp.f32 %v2066_v41 }
 0xbc5   : > { %6356 = vrcp.f32 %v2069_v48 }
 0xbc7   : > { %v2075_v17 = vpop.xlane.xlu1 %2074 }
 0xbcb   : > { %v2072_v56 = vpop.xlane.xlu0 %2071 }
 0xbcc   : > { %6358 = vrcp.f32 %v2072_v56 }
 0xbcd   : > { %6360 = vrcp.f32 %v2075_v17 }
 0xbce   : > { %v6355_v38 = vpop.eup %6354 }
 0xbcf   : > { %v2078_v42 = vpop.xlane.xlu1 %2077  ;;  %v2081_v2 = vpop.xlane.xlu0 %2080  ;;  %v2089_v0 = vmul.f32 %v6355_v38, %v7269_v49 }
 0xbd0   : > { %6362 = vrcp.f32 %v2078_v42  ;;  %v6357_v60 = vpop.eup %6356 }
 0xbd1   : > { %5213 = vmatprep.mubr.msk.f32.mxu1 %vm761_vm3, %v2089_v0  ;;  %6364 = vrcp.f32 %v2081_v2  ;;  %v2091_v11 = vmul.f32 %v6357_v60, %v7267_v15 }
 0xbd3   : > { %v6063_v44 = vpop.permute.xlu1 %6062  ;;  %v6058_v47 = vpop.permute.xlu0 %6057 }
 0xbd4   : > { %v6065_v50 = vunpack.i.h.bf16 %v6063_v44  ;;  %v6064_v33 = vunpack.i.l.bf16 %v6063_v44  ;;  %v6060_v55 = vunpack.i.h.bf16 %v6058_v47  ;;  %v6059_v59 = vunpack.i.l.bf16 %v6058_v47 }
 0xbd6   : > { %v5666_v43 = vpack.c.bf16 %v6060_v55, %v6059_v59  ;;  %v5670_v58 = vpack.c.bf16 %v6065_v50, %v6064_v33  ;;  %v6359_v49 = vpop.eup %6358 }
 0xbd7   : > { %v6361_v62 = vpop.eup %6360  ;;  %v2093_v32 = vmul.f32 %v6359_v49, %v7279_v61 }
 0xbd8   : > { %5667 = vmatprep.subr.bf16.mxu1 %v5666_v43  ;;  %v2095_v13 = vmul.f32 %v6361_v62, %v7275_v14 }
 0xbd9   : > { %5669 = vmatpush3.bf16.msra.mxu1 %v5666_v43 }
 0xbda   : > { %5671 = vmatprep.subr.bf16.mxu1 %v5670_v58  ;;  %v6363_v40 = vpop.eup %6362 }
 0xbdb   : > { %v6365_v63 = vpop.eup %6364  ;;  %v2097_v35 = vmul.f32 %v6363_v40, %v7285_v31  ;;  %v2380_v31 = vld [vmem:[%s7999_s3 + $0x8] sm:$0xff] }
 0xbdc   : > { %v2099_v16 = vmul.f32 %v6365_v63, %v7283_v57  ;;  %v2379_v57 = vld [vmem:[%s7999_s3] sm:$0xff] }
 0xbdd   : > { %5673 = vmatpush3.bf16.msra.mxu1 %v5670_v58  ;;  %v5674_v6 = vpack.c.bf16 %v2380_v31, %v2379_v57 }
 0xbdf   : > { %5675 = vmatprep.subr.bf16.mxu1 %v5674_v6 }
 0xbe0   : > { %5214 = vmatmul.mubr.msk.f32.vlgmr.msra.gmra.mrb[24].mxu1 %vm761_vm3, %v2091_v11 }
 0xbe1   : > { %5216 = vmatprep.mubr.msk.f32.mxu1 %vm761_vm3, %v2093_v32  ;;  %5677 = vmatpush3.bf16.msra.mxu1 %v5674_v6 }
 0xbe4   : > { %5217 = vmatmul.mubr.msk.f32.gmra.mrb[26].mxu1 %vm761_vm3, %v2095_v13 }
 0xbe5   : > { %5219 = vmatprep.mubr.msk.f32.mxu1 %vm761_vm3, %v2097_v35 }
 0xbe8   : > { %5220 = vmatmul.mubr.msk.f32.gmra.mrb[28].mxu1 %vm761_vm3, %v2099_v16 }
 0xc04   : > { %v2084_v15 = vpop.xlane.xlu1 %2083  ;;  %v2087_v61 = vpop.xlane.xlu0 %2086 }
 0xc05   : > { %6366 = vrcp.f32 %v2084_v15 }
 0xc06   : > { %6368 = vrcp.f32 %v2087_v61 }
 0xc0f   : > { %v6367_v1 = vpop.eup %6366 }
 0xc10   : > { %v6369_v52 = vpop.eup %6368  ;;  %v2101_v3 = vmul.f32 %v6367_v1, %v7299_v10 }
 0xc11   : > { %v2103_v14 = vmul.f32 %v6369_v52, %v7297_v34  ;;  %v2382_v34 = vld [vmem:[%s7999_s3 + $0x18] sm:$0xff] }
 0xc12   : > { %5222 = vmatprep.mubr.msk.f32.mxu1 %vm761_vm3, %v2101_v3  ;;  %v5678_v10 = vpack.c.bf16 %v2382_v34, %v2381_v54 }
 0xc13   : > { %5223 = vmatmul.mubr.msk.f32.gmra.mrb[30].mxu1 %vm761_vm3, %v2103_v14 }
 0xc14   : > { %5679 = vmatprep.subr.bf16.mxu1 %v5678_v10 }
 0xc15   : > { %5681 = vmatpush3.bf16.msra.mxu1 %v5678_v10 }
 0xcb3   : > { %v5215_v46 = vpop.f32.mrb[24].mxu1 }
 0xcb4   : > { %2331 = vrot.lane.b32.xlu1 %v5215_v46, %s8019_s19  ;;  %v2218_v41 = vpop.f32.mrb[25].mxu1 }
 0xcb5   : > { %2329 = vrot.lane.b32.xlu0 %v2218_v41, %s8019_s19 }
 0xcb7   : > { %v5218_v48 = vpop.f32.mrb[26].mxu1 }
 0xcb8   : > { %2307 = vrot.lane.b32.xlu1 %v7241_v4, %s6516_s21  ;;  %v2228_v17 = vpop.f32.mrb[27].mxu1 }
 0xcb9   : > { %2305 = vrot.lane.b32.xlu0 %v7243_v5, %s6516_s21 }
 0xcbb   : > { %v5221_v56 = vpop.f32.mrb[28].mxu1 }
 0xcbc   : > { %2335 = vrot.lane.b32.xlu1 %v5218_v48, %s8019_s19  ;;  %v2238_v38 = vpop.f32.mrb[29].mxu1 }
 0xcbd   : > { %2333 = vrot.lane.b32.xlu0 %v2228_v17, %s8019_s19 }
 0xcc0   : > { %2279 = vrot.lane.b32.xlu1 %v7109_v24, %s6515_s20  ;;  %v2268_v24 = vpop.permute.xlu1 %2267 }
 0xcc1   : > { %2277 = vrot.lane.b32.xlu0 %v7111_v53, %s6515_s20  ;;  %v2266_v53 = vpop.permute.xlu0 %2265  ;;  %v2354_v59 = vsel %vm615_vm1, %v6961_v37, %v2268_v24 }
 0xcc4   : > { %2339 = vrot.lane.b32.xlu1 %v5221_v56, %s8019_s19  ;;  %v2298_v42 = vpop.permute.xlu1 %2297 }
 0xcc5   : > { %2337 = vrot.lane.b32.xlu0 %v2238_v38, %s8019_s19  ;;  %v2270_v44 = vpop.permute.xlu0 %2269  ;;  %v2522_v38 = vsub.s32 2, %v6736_v30 }
 0xcc8   : > { %2311 = vrot.lane.b32.xlu1 %v7245_v27, %s6516_s21  ;;  %v2300_v2 = vpop.permute.xlu1 %2299  ;;  %v2353_v27 = vsel %vm615_vm1, %v6963_v18, %v2266_v53  ;;  %v2355_v18 = vsel %vm615_vm1, %v6967_v22, %v2270_v44 }
 0xcc9   : > { %2309 = vrot.lane.b32.xlu0 %v7247_v36, %s6516_s21  ;;  %v2302_v50 = vpop.permute.xlu0 %2301  ;;  %v2362_v43 = vsel %vm2361_vm4, %v2353_v27, %v2298_v42  ;;  %v2363_v60 = vsel %vm2361_vm4, %v2354_v59, %v2300_v2 }
 0xcca   : > { %v2364_v37 = vsel %vm2361_vm4, %v2355_v18, %v2302_v50 }
 0xccc   : > { %v2272_v0 = vpop.permute.xlu1 %2271 }
 0xccd   : > { %v2274_v55 = vpop.permute.xlu0 %2273  ;;  %v2356_v13 = vsel %vm615_vm1, %v6965_v19, %v2272_v0 }
 0xcce   : > { %v2357_v22 = vsel %vm615_vm1, %v6971_v45, %v2274_v55 }
 0xcd0   : > { %v2304_v47 = vpop.permute.xlu1 %2303 }
 0xcd1   : > { %v2365_v35 = vsel %vm2361_vm4, %v2356_v13, %v2304_v47 }
 0xcd4   : > { %v2276_v33 = vpop.permute.xlu1 %2275 }
 0xcd5   : > { %v2358_v19 = vsel %vm615_vm1, %v6969_v23, %v2276_v33 }
 0xce6   : > { %v5224_v4 = vpop.f32.mrb[30].mxu1 }
 0xce7   : > { %2343 = vrot.lane.b32.xlu1 %v5224_v4, %s8019_s19  ;;  %v2248_v5 = vpop.f32.mrb[31].mxu1 }
 0xce8   : > { %2341 = vrot.lane.b32.xlu0 %v2248_v5, %s8019_s19  ;;  %s8032_s19 = smov 40  }
 0xd26   : > { %v2332_v36 = vpop.permute.xlu1 %2331 }
 0xd27   : > { %v2330_v58 = vpop.permute.xlu0 %2329  ;;  %v2372_v11 = vsel %vm2370_vm5, %v2363_v60, %v2332_v36 }
 0xd28   : > { %v2371_v49 = vsel %vm2370_vm5, %v2362_v43, %v2330_v58 }
 0xd29   : > { %5233 = vmatprep.mubr.msk.f32.mxu1 %vm328_vm0, %v2371_v49 }
 0xd2a   : > { %v2308_v62 = vpop.permute.xlu1 %2307  ;;  %5234 = vmatmul.mubr.msk.f32.vlgmr.msra.gmra.mrb[32].mxu1 %vm328_vm0, %v2372_v11 }
 0xd2b   : > { %v2306_v32 = vpop.permute.xlu0 %2305  ;;  %v2367_v57 = vsel %vm2361_vm4, %v2358_v19, %v2308_v62 }
 0xd2c   : > { %v2366_v3 = vsel %vm2361_vm4, %v2357_v22, %v2306_v32 }
 0xd2e   : > { %v2336_v40 = vpop.permute.xlu1 %2335 }
 0xd2f   : > { %v2334_v63 = vpop.permute.xlu0 %2333  ;;  %v2374_v15 = vsel %vm2370_vm5, %v2365_v35, %v2336_v40 }
 0xd30   : > { %v2373_v16 = vsel %vm2370_vm5, %v2364_v37, %v2334_v63 }
 0xd31   : > { %5236 = vmatprep.mubr.msk.f32.mxu1 %vm328_vm0, %v2373_v16 }
 0xd32   : > { %v2280_v61 = vpop.permute.xlu1 %2279  ;;  %5237 = vmatmul.mubr.msk.f32.gmra.mrb[34].mxu1 %vm328_vm0, %v2374_v15 }
 0xd33   : > { %v2278_v1 = vpop.permute.xlu0 %2277  ;;  %v2360_v23 = vsel %vm615_vm1, %v6973_v25, %v2280_v61 }
 0xd34   : > { %v2359_v45 = vsel %vm615_vm1, %v6975_v26, %v2278_v1  ;;  %v7417_v26 = vld [vmem:[%s8002_s6] sm:$0x3f] }
 0xd35   : > { %v2523_v25 = vrot.slane %v7417_v26, %v2522_v38 }
 0xd36   : > { %v2340_v52 = vpop.permute.xlu1 %2339 }
 0xd37   : > { %v2338_v14 = vpop.permute.xlu0 %2337  ;;  %v2376_v54 = vsel %vm2370_vm5, %v2367_v57, %v2340_v52 }
 0xd38   : > { %v2375_v31 = vsel %vm2370_vm5, %v2366_v3, %v2338_v14 }
 0xd39   : > { %5239 = vmatprep.mubr.msk.f32.mxu1 %vm328_vm0, %v2375_v31 }
 0xd3a   : > { %5240 = vmatmul.mubr.msk.f32.gmra.mrb[36].mxu1 %vm328_vm0, %v2376_v54  ;;  %v2312_v6 = vpop.permute.xlu1 %2311 }
 0xd3b   : > { %v2310_v34 = vpop.permute.xlu0 %2309  ;;  %v2369_v48 = vsel %vm2361_vm4, %v2360_v23, %v2312_v6 }
 0xd3c   : > { %v2368_v46 = vsel %vm2361_vm4, %v2359_v45, %v2310_v34 }
 0xd59   : > { %v2344_v10 = vpop.permute.xlu1 %2343 }
 0xd5a   : > { %v2342_v41 = vpop.permute.xlu0 %2341  ;;  %v2378_v56 = vsel %vm2370_vm5, %v2369_v48, %v2344_v10 }
 0xd5b   : > { %v2377_v17 = vsel %vm2370_vm5, %v2368_v46, %v2342_v41 }
 0xd5c   : > { %5242 = vmatprep.mubr.msk.f32.mxu1 %vm328_vm0, %v2377_v17 }
 0xd5d   : > { %5243 = vmatmul.mubr.msk.f32.gmra.mrb[38].mxu1 %vm328_vm0, %v2378_v56 }
 0xdfd   : > { %v5235_v4 = vpop.f32.mrb[32].mxu1 }
 0xdfe   : > { %v2513_v5 = vadd.f32 %v5235_v4, %v6636_v9  ;;  %v2473_v24 = vpop.f32.mrb[33].mxu1 }
 0xdff   : > { %v2512_v42 = vadd.f32 %v2473_v24, %v6632_v7  ;;  %v2532_v24 = vld [vmem:[%s8000_s4] sm:$0xff] }
 0xe00   : > { %v7422_v2 = vadd.f32 %v2523_v25, %v2513_v5 }
 0xe01   : > { %v7424_v53 = vadd.f32 %v2523_v25, %v2512_v42  ;;  %v2533_v42 = vld [vmem:[%s8000_s4 + $0x8] sm:$0xff] }
 0xe02   : > { %v2548_v0 = vsel %vm328_vm0, %v7422_v2, 0.0 }
 0xe03   : > { %2549 = vadd.xlane.f32.xlu1 %v2548_v0  ;;  %v2545_v44 = vsel %vm328_vm0, %v7424_v53, 0.0  ;;  %v5682_v0 = vpack.c.bf16 %v2533_v42, %v2532_v24 }
 0xe04   : > { %2546 = vadd.xlane.f32.xlu0 %v2545_v44  ;;  %v2534_v44 = vld [vmem:[%s8000_s4 + $0x10] sm:$0xff] }
 0xe05   : > { %v5238_v47 = vpop.f32.mrb[34].mxu1  ;;  %5683 = vmatprep.subr.bf16.mxu0 %v5682_v0 }
 0xe06   : > { %v2483_v50 = vpop.f32.mrb[35].mxu1  ;;  %v2515_v33 = vadd.f32 %v5238_v47, %v6641_v12  ;;  %5685 = vmatpush3.bf16.msra.mxu0 %v5682_v0  ;;  %v2535_v47 = vld [vmem:[%s8000_s4 + $0x18] sm:$0xff] }
 0xe07   : > { %v2514_v9 = vadd.f32 %v2483_v50, %v6634_v8  ;;  %v5686_v50 = vpack.c.bf16 %v2535_v47, %v2534_v44 }
 0xe08   : > { %v7434_v7 = vadd.f32 %v2523_v25, %v2515_v33 }
 0xe09   : > { %v7432_v55 = vadd.f32 %v2523_v25, %v2514_v9  ;;  %5687 = vmatprep.subr.bf16.mxu0 %v5686_v50 }
 0xe0a   : > { %v2554_v60 = vsel %vm328_vm0, %v7434_v7, 0.0  ;;  %5689 = vmatpush3.bf16.msra.mxu0 %v5686_v50 }
 0xe0b   : > { %v2551_v27 = vsel %vm328_vm0, %v7432_v55, 0.0 }
 0xe0c   : > { %2552 = vadd.xlane.f32.xlu0 %v2551_v27 }
 0xe0d   : > { %v5241_v36 = vpop.f32.mrb[36].mxu1 }
 0xe0e   : > { %v2517_v59 = vadd.f32 %v5241_v36, %v6656_v21  ;;  %v2493_v43 = vpop.f32.mrb[37].mxu1 }
 0xe0f   : > { %v2516_v58 = vadd.f32 %v2493_v43, %v6654_v20 }
 0xe10   : > { %v7442_v12 = vadd.f32 %v2523_v25, %v2517_v59  ;;  %2555 = vadd.xlane.f32.xlu0 %v2554_v60 }
 0xe11   : > { %v7444_v8 = vadd.f32 %v2523_v25, %v2516_v58 }
 0xe12   : > { %v2560_v49 = vsel %vm328_vm0, %v7442_v12, 0.0 }
 0xe13   : > { %2561 = vadd.xlane.f32.xlu1 %v2560_v49  ;;  %v2557_v11 = vsel %vm328_vm0, %v7444_v8, 0.0 }
 0xe14   : > { %2558 = vadd.xlane.f32.xlu0 %v2557_v11 }
 0xe30   : > { %v5244_v21 = vpop.f32.mrb[38].mxu1 }
 0xe31   : > { %v2519_v62 = vadd.f32 %v5244_v21, %v6670_v29  ;;  %v2503_v20 = vpop.f32.mrb[39].mxu1 }
 0xe32   : > { %v2518_v32 = vadd.f32 %v2503_v20, %v6668_v28 }
 0xe33   : > { %v7452_v18 = vadd.f32 %v2523_v25, %v2519_v62 }
 0xe34   : > { %v7454_v40 = vadd.f32 %v2523_v25, %v2518_v32 }
 0xe35   : > { %v2566_v37 = vsel %vm328_vm0, %v7452_v18, 0.0 }
 0xe36   : > { %2567 = vadd.xlane.f32.xlu1 %v2566_v37  ;;  %v2563_v13 = vsel %vm328_vm0, %v7454_v40, 0.0 }
 0xe37   : > { %2564 = vadd.xlane.f32.xlu0 %v2563_v13 }
 0xe90   : > { %v2550_v63 = vpop.xlane.xlu1 %2549 }
 0xe91   : > { %v2570_v35 = vmul.f32 0.03125, %v2550_v63  ;;  %v2547_v16 = vpop.xlane.xlu0 %2546 }
 0xe92   : > { %v2569_v15 = vmul.f32 0.03125, %v2547_v16 }
 0xe93   : > { %v7461_v29 = vsub.f32 %v7422_v2, %v2570_v35  ;;  %v2651_v35 = vsub.s32 3, %v6736_v30 }
 0xe94   : > { %v7464_v28 = vsub.f32 %v7424_v53, %v2569_v15 }
 0xe95   : > { %v2586_v61 = vmul.f32 %v7461_v29, %v7461_v29 }
 0xe96   : > { %v2585_v1 = vmul.f32 %v7464_v28, %v7464_v28 }
 0xe97   : > { %v2596_v22 = vsel %vm328_vm0, %v2586_v61, 0.0  ;;  %v2663_v61 = vsub.s32 4, %v6736_v30 }
 0xe98   : > { %2597 = vadd.xlane.f32.xlu1 %v2596_v22  ;;  %v2593_v52 = vsel %vm328_vm0, %v2585_v1, 0.0  ;;  %v2652_v22 = vrot.slane %v7417_v26, %v2651_v35 }
 0xe99   : > { %v2553_v19 = vpop.xlane.xlu0 %2552  ;;  %2594 = vadd.xlane.f32.xlu0 %v2593_v52 }
 0xe9a   : > { %v2571_v3 = vmul.f32 0.03125, %v2553_v19 }
 0xe9c   : > { %v7473_v14 = vsub.f32 %v7432_v55, %v2571_v3 }
 0xe9d   : > { %v2556_v57 = vpop.xlane.xlu0 %2555 }
 0xe9e   : > { %v2572_v31 = vmul.f32 0.03125, %v2556_v57  ;;  %v2587_v54 = vmul.f32 %v7473_v14, %v7473_v14 }
 0xea0   : > { %v7478_v6 = vsub.f32 %v7434_v7, %v2572_v31  ;;  %v2562_v34 = vpop.xlane.xlu1 %2561  ;;  %v2599_v45 = vsel %vm328_vm0, %v2587_v54, 0.0  ;;  %v2664_v54 = vrot.slane %v7417_v26, %v2663_v61  ;;  %v2537_v61 = vld [vmem:[%s8001_s5] sm:$0xff] }
 0xea1   : > { %v2574_v10 = vmul.f32 0.03125, %v2562_v34  ;;  %v2559_v23 = vpop.xlane.xlu0 %2558  ;;  %2600 = vadd.xlane.f32.xlu0 %v2599_v45 }
 0xea2   : > { %v2573_v46 = vmul.f32 0.03125, %v2559_v23  ;;  %v2588_v41 = vmul.f32 %v7478_v6, %v7478_v6 }
 0xea3   : > { %v7484_v48 = vsub.f32 %v7442_v12, %v2574_v10 }
 0xea4   : > { %v7487_v17 = vsub.f32 %v7444_v8, %v2573_v46  ;;  %v2602_v56 = vsel %vm328_vm0, %v2588_v41, 0.0 }
 0xea5   : > { %2603 = vadd.xlane.f32.xlu1 %v2602_v56  ;;  %v2590_v38 = vmul.f32 %v7484_v48, %v7484_v48 }
 0xea6   : > { %v2589_v25 = vmul.f32 %v7487_v17, %v7487_v17 }
 0xea7   : > { %v2608_v4 = vsel %vm328_vm0, %v2590_v38, 0.0 }
 0xea8   : > { %v2605_v5 = vsel %vm328_vm0, %v2589_v25, 0.0 }
 0xea9   : > { %2609 = vadd.xlane.f32.xlu1 %v2608_v4  ;;  %2606 = vadd.xlane.f32.xlu0 %v2605_v5 }
 0xec3   : > { %v2568_v33 = vpop.xlane.xlu1 %2567 }
 0xec4   : > { %v2576_v9 = vmul.f32 0.03125, %v2568_v33  ;;  %v2565_v27 = vpop.xlane.xlu0 %2564 }
 0xec5   : > { %v2575_v36 = vmul.f32 0.03125, %v2565_v27 }
 0xec6   : > { %v7509_v59 = vsub.f32 %v7452_v18, %v2576_v9 }
 0xec7   : > { %v7512_v43 = vsub.f32 %v7454_v40, %v2575_v36 }
 0xec8   : > { %v2592_v58 = vmul.f32 %v7509_v59, %v7509_v59 }
 0xec9   : > { %v2591_v60 = vmul.f32 %v7512_v43, %v7512_v43 }
 0xeca   : > { %v2614_v49 = vsel %vm328_vm0, %v2592_v58, 0.0 }
 0xecb   : > { %2615 = vadd.xlane.f32.xlu1 %v2614_v49  ;;  %v2611_v11 = vsel %vm328_vm0, %v2591_v60, 0.0 }
 0xecc   : > { %2612 = vadd.xlane.f32.xlu0 %v2611_v11 }
 0xf25   : > { %v2598_v21 = vpop.xlane.xlu1 %2597 }
 0xf26   : > { %v2618_v62 = vmul.f32 0.03125, %v2598_v21  ;;  %v2595_v20 = vpop.xlane.xlu0 %2594 }
 0xf27   : > { %v2617_v32 = vmul.f32 0.03125, %v2595_v20 }
 0xf28   : > { %v2626_v37 = vadd.f32 1e-05, %v2618_v62 }
 0xf29   : > { %v2625_v13 = vadd.f32 1e-05, %v2617_v32 }
 0xf2a   : > { %6370 = vrsqrt.f32 %v2626_v37 }
 0xf2b   : > { %6372 = vrsqrt.f32 %v2625_v13 }
 0xf2e   : > { %v2601_v63 = vpop.xlane.xlu0 %2600 }
 0xf2f   : > { %v2619_v16 = vmul.f32 0.03125, %v2601_v63 }
 0xf31   : > { %v2627_v15 = vadd.f32 1e-05, %v2619_v16 }
 0xf32   : > { %v2604_v1 = vpop.xlane.xlu1 %2603 }
 0xf33   : > { %6374 = vrsqrt.f32 %v2627_v15  ;;  %v2620_v52 = vmul.f32 0.03125, %v2604_v1  ;;  %v2538_v1 = vld [vmem:[%s8001_s5 + $0x8] sm:$0xff] }
 0xf34   : > { %v6371_v19 = vpop.eup %6370 }
 0xf35   : > { %v6373_v3 = vpop.eup %6372  ;;  %v2642_v57 = vmul.f32 %v6371_v19, %v7461_v29  ;;  %v2628_v31 = vadd.f32 1e-05, %v2620_v52  ;;  %v5690_v52 = vpack.c.bf16 %v2538_v1, %v2537_v61  ;;  %v2541_v19 = vld [vmem:[%s8001_s5 + $0x20] sm:$0xff] }
 0xf36   : > { %v2610_v34 = vpop.xlane.xlu1 %2609  ;;  %v2607_v45 = vpop.xlane.xlu0 %2606  ;;  %v2641_v10 = vmul.f32 %v6373_v3, %v7464_v28  ;;  %v2542_v3 = vld [vmem:[%s8001_s5 + $0x28] sm:$0xff] }
 0xf37   : > { %v2654_v23 = vmul.f32 %v2652_v22, %v2642_v57  ;;  %6376 = vrsqrt.f32 %v2628_v31  ;;  %v2622_v46 = vmul.f32 0.03125, %v2610_v34  ;;  %v2621_v41 = vmul.f32 0.03125, %v2607_v45  ;;  %5691 = vmatprep.subr.bf16.mxu1 %v5690_v52  ;;  %v2543_v31 = vld [vmem:[%s8001_s5 + $0x30] sm:$0xff]  ;;  %v4604_v45 = vld [vmem:[%s8003_s7] ss:$0 sm:$0xff] }
 0xf38   : > { %v2653_v56 = vmul.f32 %v2652_v22, %v2641_v10  ;;  %5693 = vmatpush3.bf16.msra.mxu1 %v5690_v52  ;;  %v5698_v57 = vpack.c.bf16 %v2542_v3, %v2541_v19 }
 0xf39   : > { %v2630_v38 = vadd.f32 1e-05, %v2622_v46  ;;  %v2629_v25 = vadd.f32 1e-05, %v2621_v41  ;;  %v2666_v5 = vadd.f32 %v2664_v54, %v2654_v23 }
 0xf3a   : > { %v2665_v4 = vadd.f32 %v2664_v54, %v2653_v56 }
 0xf3b   : > { %6378 = vrsqrt.f32 %v2630_v38 }
 0xf3c   : > { %6380 = vrsqrt.f32 %v2629_v25  ;;  %5253 = vmatprep.mubr.msk.f32.mxu0 %vm328_vm0, %v2665_v4 }
 0xf3d   : > { %v6375_v29 = vpop.eup %6374  ;;  %5254 = vmatmul.mubr.msk.f32.vlgmr.msra.gmra.mrb[40].mxu0 %vm328_vm0, %v2666_v5 }
 0xf3e   : > { %v2643_v24 = vmul.f32 %v6375_v29, %v7473_v14 }
 0xf40   : > { %v2655_v42 = vmul.f32 %v2652_v22, %v2643_v24 }
 0xf41   : > { %v6377_v28 = vpop.eup %6376 }
 0xf42   : > { %v2667_v0 = vadd.f32 %v2664_v54, %v2655_v42  ;;  %v2644_v44 = vmul.f32 %v6377_v28, %v7478_v6 }
 0xf44   : > { %5256 = vmatprep.mubr.msk.f32.mxu0 %vm328_vm0, %v2667_v0  ;;  %v2656_v47 = vmul.f32 %v2652_v22, %v2644_v44 }
 0xf45   : > { %v6379_v50 = vpop.eup %6378 }
 0xf46   : > { %v6381_v33 = vpop.eup %6380  ;;  %v2668_v9 = vadd.f32 %v2664_v54, %v2656_v47  ;;  %v2646_v27 = vmul.f32 %v6379_v50, %v7484_v48 }
 0xf47   : > { %v2645_v36 = vmul.f32 %v6381_v33, %v7487_v17 }
 0xf48   : > { %5257 = vmatmul.mubr.msk.f32.gmra.mrb[42].mxu0 %vm328_vm0, %v2668_v9  ;;  %v2658_v58 = vmul.f32 %v2652_v22, %v2646_v27 }
 0xf49   : > { %v2657_v60 = vmul.f32 %v2652_v22, %v2645_v36 }
 0xf4a   : > { %v2670_v14 = vadd.f32 %v2664_v54, %v2658_v58 }
 0xf4b   : > { %v2669_v49 = vadd.f32 %v2664_v54, %v2657_v60 }
 0xf4d   : > { %5259 = vmatprep.mubr.msk.f32.mxu0 %vm328_vm0, %v2669_v49 }
 0xf4e   : > { %5260 = vmatmul.mubr.msk.f32.gmra.mrb[44].mxu0 %vm328_vm0, %v2670_v14 }
 0xf58   : > { %v2616_v6 = vpop.xlane.xlu1 %2615 }
 0xf59   : > { %v2624_v11 = vmul.f32 0.03125, %v2616_v6  ;;  %v2613_v21 = vpop.xlane.xlu0 %2612 }
 0xf5a   : > { %v2623_v62 = vmul.f32 0.03125, %v2613_v21 }
 0xf5b   : > { %v2632_v20 = vadd.f32 1e-05, %v2624_v11 }
 0xf5c   : > { %v2631_v32 = vadd.f32 1e-05, %v2623_v62 }
 0xf5d   : > { %6382 = vrsqrt.f32 %v2632_v20 }
 0xf5e   : > { %6384 = vrsqrt.f32 %v2631_v32 }
 0xf67   : > { %v6383_v48 = vpop.eup %6382 }
 0xf68   : > { %v6385_v17 = vpop.eup %6384  ;;  %v2648_v37 = vmul.f32 %v6383_v48, %v7509_v59  ;;  %v2539_v59 = vld [vmem:[%s8001_s5 + $0x10] sm:$0xff] }
 0xf69   : > { %v2647_v13 = vmul.f32 %v6385_v17, %v7512_v43  ;;  %v2540_v43 = vld [vmem:[%s8001_s5 + $0x18] sm:$0xff] }
 0xf6a   : > { %v2660_v63 = vmul.f32 %v2652_v22, %v2648_v37 }
 0xf6b   : > { %v2659_v35 = vmul.f32 %v2652_v22, %v2647_v13  ;;  %v5694_v22 = vpack.c.bf16 %v2540_v43, %v2539_v59 }
 0xf6c   : > { %v2672_v15 = vadd.f32 %v2664_v54, %v2660_v63 }
 0xf6d   : > { %v2671_v16 = vadd.f32 %v2664_v54, %v2659_v35  ;;  %5695 = vmatprep.subr.bf16.mxu1 %v5694_v22  ;;  %v2544_v54 = vld [vmem:[%s8001_s5 + $0x38] sm:$0xff] }
 0xf6e   : > { %5697 = vmatpush3.bf16.msra.mxu1 %v5694_v22  ;;  %v5702_v34 = vpack.c.bf16 %v2544_v54, %v2543_v31 }
 0xf6f   : > { %5262 = vmatprep.mubr.msk.f32.mxu0 %vm328_vm0, %v2671_v16  ;;  %5699 = vmatprep.subr.bf16.mxu1 %v5698_v57 }
 0xf70   : > { %5263 = vmatmul.mubr.msk.f32.gmra.mrb[46].mxu0 %vm328_vm0, %v2672_v15 }
 0xf72   : > { %5701 = vmatpush3.bf16.msra.mxu1 %v5698_v57 }
 0xf73   : > { %5703 = vmatprep.subr.bf16.mxu1 %v5702_v34 }
 0xf76   : > { %5705 = vmatpush3.bf16.msra.mxu1 %v5702_v34 }
0x1010   : > { %v5255_v10 = vpop.f32.mrb[40].mxu0 }
0x1011   : > { %v2775_v23 = vadd.f32 %v5255_v10, %v4604_v45  ;;  %v2769_v46 = vpop.f32.mrb[41].mxu0 }
0x1012   : > { %v2770_v41 = vadd.f32 %v4604_v45, %v2769_v46 }
0x1013   : > { %v2817_v56 = vmul.f32 0.70710677, %v2775_v23  ;;  %v2809_v9 = vmul.f32 0.5, %v2775_v23 }
0x1014   : > { %v2816_v38 = vmul.f32 0.70710677, %v2770_v41  ;;  %v2808_v47 = vmul.f32 0.5, %v2770_v41 }
0x1015   : > { %6386 = verf.f32 %v2817_v56 }
0x1016   : > { %6388 = verf.f32 %v2816_v38  ;;  %v2987_v38 = vsub.s32 5, %v6736_v30 }
0x101b   : > { %v5258_v25 = vpop.f32.mrb[42].mxu0 }
0x101c   : > { %v2785_v4 = vadd.f32 %v5258_v25, %v4604_v45  ;;  %v2779_v5 = vpop.f32.mrb[43].mxu0 }
0x101d   : > { %v2780_v29 = vadd.f32 %v4604_v45, %v2779_v5 }
0x101e   : > { %v2819_v24 = vmul.f32 0.70710677, %v2785_v4  ;;  %v2811_v48 = vmul.f32 0.5, %v2785_v4 }
0x101f   : > { %v6387_v42 = vpop.eup %6386  ;;  %v2818_v28 = vmul.f32 0.70710677, %v2780_v29  ;;  %v2810_v20 = vmul.f32 0.5, %v2780_v29 }
0x1020   : > { %v6389_v0 = vpop.eup %6388  ;;  %v2833_v44 = vadd.f32 1.0, %v6387_v42  ;;  %6390 = verf.f32 %v2819_v24 }
0x1021   : > { %v2832_v50 = vadd.f32 1.0, %v6389_v0  ;;  %6392 = verf.f32 %v2818_v28  ;;  %v5261_v33 = vpop.f32.mrb[44].mxu0 }
0x1022   : > { %v2795_v27 = vadd.f32 %v5261_v33, %v4604_v45  ;;  %v2789_v36 = vpop.f32.mrb[45].mxu0  ;;  %v2841_v14 = vmul.f32 %v2833_v44, %v2809_v9 }
0x1023   : > { %v2840_v58 = vmul.f32 %v2832_v50, %v2808_v47  ;;  %v2790_v60 = vadd.f32 %v4604_v45, %v2789_v36 }
0x1024   : > { %v2821_v49 = vmul.f32 0.70710677, %v2795_v27  ;;  %v2813_v61 = vmul.f32 0.5, %v2795_v27 }
0x1025   : > { %v2820_v6 = vmul.f32 0.70710677, %v2790_v60  ;;  %5281 = vmatprep.mubr.msk.f32.mxu1 %vm761_vm3, %v2840_v58  ;;  %v2812_v16 = vmul.f32 0.5, %v2790_v60 }
0x1026   : > { %6394 = verf.f32 %v2821_v49  ;;  %5282 = vmatmul.mubr.msk.f32.vlgmr.msra.gmra.mrb[40].mxu1 %vm761_vm3, %v2841_v14 }
0x1027   : > { %6396 = verf.f32 %v2820_v6 }
0x102a   : > { %v6391_v11 = vpop.eup %6390 }
0x102b   : > { %v6393_v21 = vpop.eup %6392  ;;  %v2835_v62 = vadd.f32 1.0, %v6391_v11 }
0x102c   : > { %v2834_v32 = vadd.f32 1.0, %v6393_v21 }
0x102d   : > { %v2843_v37 = vmul.f32 %v2835_v62, %v2811_v48 }
0x102e   : > { %v2842_v17 = vmul.f32 %v2834_v32, %v2810_v20 }
0x1030   : > { %v6395_v13 = vpop.eup %6394  ;;  %5284 = vmatprep.mubr.msk.f32.mxu1 %vm761_vm3, %v2842_v17 }
0x1031   : > { %v6397_v63 = vpop.eup %6396  ;;  %v2837_v35 = vadd.f32 1.0, %v6395_v13  ;;  %5285 = vmatmul.mubr.msk.f32.gmra.mrb[42].mxu1 %vm761_vm3, %v2843_v37 }
0x1032   : > { %v2836_v15 = vadd.f32 1.0, %v6397_v63 }
0x1033   : > { %v2845_v52 = vmul.f32 %v2837_v35, %v2813_v61 }
0x1034   : > { %v2844_v1 = vmul.f32 %v2836_v15, %v2812_v16 }
0x1036   : > { %5287 = vmatprep.mubr.msk.f32.mxu1 %vm761_vm3, %v2844_v1 }
0x1037   : > { %5288 = vmatmul.mubr.msk.f32.gmra.mrb[44].mxu1 %vm761_vm3, %v2845_v52 }
0x1043   : > { %v5264_v59 = vpop.f32.mrb[46].mxu0 }
0x1044   : > { %v2805_v43 = vadd.f32 %v5264_v59, %v4604_v45  ;;  %v2799_v22 = vpop.f32.mrb[47].mxu0 }
0x1045   : > { %v2800_v19 = vadd.f32 %v4604_v45, %v2799_v22  ;;  %v2988_v45 = vrot.slane %v7417_v26, %v2987_v38 }
0x1046   : > { %v2823_v3 = vmul.f32 0.70710677, %v2805_v43  ;;  %v2815_v46 = vmul.f32 0.5, %v2805_v43 }
0x1047   : > { %v2822_v57 = vmul.f32 0.70710677, %v2800_v19  ;;  %v2814_v10 = vmul.f32 0.5, %v2800_v19 }
0x1048   : > { %6398 = verf.f32 %v2823_v3 }
0x1049   : > { %6400 = verf.f32 %v2822_v57 }
0x1052   : > { %v6399_v31 = vpop.eup %6398 }
0x1053   : > { %v6401_v54 = vpop.eup %6400  ;;  %v2839_v34 = vadd.f32 1.0, %v6399_v31 }
0x1054   : > { %v2838_v23 = vadd.f32 1.0, %v6401_v54 }
0x1055   : > { %v2847_v56 = vmul.f32 %v2839_v34, %v2815_v46 }
0x1056   : > { %v2846_v41 = vmul.f32 %v2838_v23, %v2814_v10 }
0x1058   : > { %5290 = vmatprep.mubr.msk.f32.mxu1 %vm761_vm3, %v2846_v41 }
0x1059   : > { %5291 = vmatmul.mubr.msk.f32.gmra.mrb[46].mxu1 %vm761_vm3, %v2847_v56 }
0x10f9   : > { %v5283_v25 = vpop.f32.mrb[40].mxu1 }
0x10fa   : > { %v2978_v4 = vadd.f32 %v5283_v25, %v7422_v2  ;;  %v2938_v5 = vpop.f32.mrb[41].mxu1 }
0x10fb   : > { %v2977_v29 = vadd.f32 %v2938_v5, %v7424_v53  ;;  %v4623_v5 = vld [vmem:[%s7998_s2 + $0x28] sm:$0xff] }
0x10fc   : > { %v2990_v24 = vadd.f32 %v2988_v45, %v2978_v4  ;;  %v4622_v4 = vld [vmem:[%s7998_s2 + $0x20] sm:$0xff] }
0x10fd   : > { %v7579_v42 = vadd.f32 %v2988_v45, %v2977_v29  ;;  %v5706_v29 = vpack.c.bf16 %v4623_v5, %v4622_v4 }
0x10fe   : > { %v3002_v28 = vsel %vm328_vm0, %v2990_v24, 0.0 }
0x10ff   : > { %3003 = vadd.xlane.f32.xlu1 %v3002_v28  ;;  %v2999_v0 = vsel %vm328_vm0, %v7579_v42, 0.0  ;;  %5707 = vmatprep.subr.bf16.mxu0 %v5706_v29  ;;  %v4625_v28 = vld [vmem:[%s7998_s2 + $0x38] sm:$0xff] }
0x1100   : > { %3000 = vadd.xlane.f32.xlu0 %v2999_v0  ;;  %5709 = vmatpush3.bf16.msra.mxu0 %v5706_v29 }
0x1104   : > { %v5286_v44 = vpop.f32.mrb[42].mxu1 }
0x1105   : > { %v2980_v47 = vadd.f32 %v5286_v44, %v7434_v7  ;;  %v2948_v26 = vpop.f32.mrb[43].mxu1 }
0x1106   : > { %v2979_v50 = vadd.f32 %v2948_v26, %v7432_v55 }
0x1107   : > { %v2992_v2 = vadd.f32 %v2988_v45, %v2980_v47 }
0x1108   : > { %v2991_v33 = vadd.f32 %v2988_v45, %v2979_v50 }
0x1109   : > { %v3008_v53 = vsel %vm328_vm0, %v2992_v2, 0.0 }
0x110a   : > { %v5289_v9 = vpop.f32.mrb[44].mxu1  ;;  %3009 = vadd.xlane.f32.xlu1 %v3008_v53  ;;  %v3005_v27 = vsel %vm328_vm0, %v2991_v33, 0.0 }
0x110b   : > { %v2982_v36 = vadd.f32 %v5289_v9, %v7442_v12  ;;  %v2958_v58 = vpop.f32.mrb[45].mxu1  ;;  %3006 = vadd.xlane.f32.xlu0 %v3005_v27 }
0x110c   : > { %v2981_v60 = vadd.f32 %v2958_v58, %v7444_v8 }
0x110d   : > { %v2994_v14 = vadd.f32 %v2988_v45, %v2982_v36 }
0x110e   : > { %v2993_v49 = vadd.f32 %v2988_v45, %v2981_v60 }
0x110f   : > { %v3014_v7 = vsel %vm328_vm0, %v2994_v14, 0.0 }
0x1110   : > { %3015 = vadd.xlane.f32.xlu1 %v3014_v7  ;;  %v3011_v55 = vsel %vm328_vm0, %v2993_v49, 0.0 }
0x1111   : > { %3012 = vadd.xlane.f32.xlu0 %v3011_v55 }
0x112c   : > { %v5292_v6 = vpop.f32.mrb[46].mxu1 }
0x112d   : > { %v2984_v11 = vadd.f32 %v5292_v6, %v7452_v18  ;;  %v2968_v21 = vpop.f32.mrb[47].mxu1  ;;  %v7652_v6 = vld [vmem:[%s8002_s6 + $0x8] sm:$0x3f] }
0x112e   : > { %v2983_v62 = vadd.f32 %v2968_v21, %v7454_v40 }
0x112f   : > { %v2996_v20 = vadd.f32 %v2988_v45, %v2984_v11 }
0x1130   : > { %v2995_v12 = vadd.f32 %v2988_v45, %v2983_v62 }
0x1131   : > { %v3020_v32 = vsel %vm328_vm0, %v2996_v20, 0.0 }
0x1132   : > { %3021 = vadd.xlane.f32.xlu1 %v3020_v32  ;;  %v3017_v8 = vsel %vm328_vm0, %v2995_v12, 0.0 }
0x1133   : > { %3018 = vadd.xlane.f32.xlu0 %v3017_v8 }
0x118c   : > { %v3004_v48 = vpop.xlane.xlu1 %3003 }
0x118d   : > { %v3024_v17 = vmul.f32 0.03125, %v3004_v48  ;;  %v3001_v37 = vpop.xlane.xlu0 %3000 }
0x118e   : > { %v3023_v13 = vmul.f32 0.03125, %v3001_v37  ;;  %v8024_v37 = vsub.s32 1, %v6736_v30 }
0x118f   : > { %v7596_v63 = vsub.f32 %v2990_v24, %v3024_v17  ;;  %v4624_v24 = vld [vmem:[%s7998_s2 + $0x30] sm:$0xff] }
0x1190   : > { %v7599_v35 = vsub.f32 %v7579_v42, %v3023_v13  ;;  %v5710_v0 = vpack.c.bf16 %v4625_v28, %v4624_v24  ;;  %v3118_v13 = vrot.slane %v7652_v6, %v8024_v37 }
0x1191   : > { %v3040_v18 = vmul.f32 %v7596_v63, %v7596_v63 }
0x1192   : > { %v3039_v40 = vmul.f32 %v7599_v35, %v7599_v35  ;;  %5711 = vmatprep.subr.bf16.mxu0 %v5710_v0 }
0x1193   : > { %v3050_v16 = vsel %vm328_vm0, %v3040_v18, 0.0  ;;  %5713 = vmatpush3.bf16.msra.mxu0 %v5710_v0 }
0x1194   : > { %3051 = vadd.xlane.f32.xlu1 %v3050_v16  ;;  %v3047_v15 = vsel %vm328_vm0, %v3039_v40, 0.0 }
0x1195   : > { %3048 = vadd.xlane.f32.xlu0 %v3047_v15 }
0x1197   : > { %v3010_v61 = vpop.xlane.xlu1 %3009 }
0x1198   : > { %v3026_v1 = vmul.f32 0.03125, %v3010_v61  ;;  %v3007_v52 = vpop.xlane.xlu0 %3006 }
0x1199   : > { %v3025_v59 = vmul.f32 0.03125, %v3007_v52 }
0x119a   : > { %v7607_v43 = vsub.f32 %v2992_v2, %v3026_v1 }
0x119b   : > { %v7609_v22 = vsub.f32 %v2991_v33, %v3025_v59 }
0x119c   : > { %v3042_v19 = vmul.f32 %v7607_v43, %v7607_v43 }
0x119d   : > { %v3016_v3 = vpop.xlane.xlu1 %3015  ;;  %v3041_v57 = vmul.f32 %v7609_v22, %v7609_v22 }
0x119e   : > { %v3028_v31 = vmul.f32 0.03125, %v3016_v3  ;;  %v3013_v54 = vpop.xlane.xlu0 %3012  ;;  %v3056_v34 = vsel %vm328_vm0, %v3042_v19, 0.0 }
0x119f   : > { %v3027_v10 = vmul.f32 0.03125, %v3013_v54  ;;  %3057 = vadd.xlane.f32.xlu1 %v3056_v34  ;;  %v3053_v23 = vsel %vm328_vm0, %v3041_v57, 0.0 }
0x11a0   : > { %v7617_v46 = vsub.f32 %v2994_v14, %v3028_v31  ;;  %3054 = vadd.xlane.f32.xlu0 %v3053_v23 }
0x11a1   : > { %v7619_v41 = vsub.f32 %v2993_v49, %v3027_v10 }
0x11a2   : > { %v3044_v56 = vmul.f32 %v7617_v46, %v7617_v46 }
0x11a3   : > { %v3043_v38 = vmul.f32 %v7619_v41, %v7619_v41 }
0x11a4   : > { %v3062_v45 = vsel %vm328_vm0, %v3044_v56, 0.0 }
0x11a5   : > { %3063 = vadd.xlane.f32.xlu1 %v3062_v45  ;;  %v3059_v25 = vsel %vm328_vm0, %v3043_v38, 0.0 }
0x11a6   : > { %3060 = vadd.xlane.f32.xlu0 %v3059_v25 }
0x11bf   : > { %v3022_v44 = vpop.xlane.xlu1 %3021 }
0x11c0   : > { %v3030_v47 = vmul.f32 0.03125, %v3022_v44  ;;  %v3019_v26 = vpop.xlane.xlu0 %3018 }
0x11c1   : > { %v3029_v50 = vmul.f32 0.03125, %v3019_v26 }
0x11c2   : > { %v7639_v2 = vsub.f32 %v2996_v20, %v3030_v47 }
0x11c3   : > { %v7641_v33 = vsub.f32 %v2995_v12, %v3029_v50  ;;  %v3106_v12 = vrot.slane %v7652_v6, %v436_v39 }
0x11c4   : > { %v3046_v53 = vmul.f32 %v7639_v2, %v7639_v2 }
0x11c5   : > { %v3045_v9 = vmul.f32 %v7641_v33, %v7641_v33 }
0x11c6   : > { %v3068_v27 = vsel %vm328_vm0, %v3046_v53, 0.0 }
0x11c7   : > { %3069 = vadd.xlane.f32.xlu1 %v3068_v27  ;;  %v3065_v36 = vsel %vm328_vm0, %v3045_v9, 0.0 }
0x11c8   : > { %3066 = vadd.xlane.f32.xlu0 %v3065_v36 }
0x1221   : > { %v3052_v58 = vpop.xlane.xlu1 %3051 }
0x1222   : > { %v3072_v60 = vmul.f32 0.03125, %v3052_v58  ;;  %v3049_v14 = vpop.xlane.xlu0 %3048  ;;  %v6518_v58 = vmov 0.0|0.0  }
0x1223   : > { %v3071_v49 = vmul.f32 0.03125, %v3049_v14  ;;  %5714 = vmatprep.subr.bf16.mxu1 %v6518_v58  ;;  %5730 = vmatprep.subr.bf16.mxu0 %v6518_v58 }
0x1224   : > { %v3080_v7 = vadd.f32 1e-05, %v3072_v60 }
0x1225   : > { %v3079_v55 = vadd.f32 1e-05, %v3071_v49 }
0x1226   : > { %6402 = vrsqrt.f32 %v3080_v7 }
0x1227   : > { %6404 = vrsqrt.f32 %v3079_v55 }
0x122c   : > { %v3058_v11 = vpop.xlane.xlu1 %3057 }
0x122d   : > { %v3074_v21 = vmul.f32 0.03125, %v3058_v11  ;;  %v3055_v62 = vpop.xlane.xlu0 %3054 }
0x122e   : > { %v3073_v20 = vmul.f32 0.03125, %v3055_v62 }
0x122f   : > { %v3082_v32 = vadd.f32 1e-05, %v3074_v21 }
0x1230   : > { %v6403_v8 = vpop.eup %6402  ;;  %v3081_v48 = vadd.f32 1e-05, %v3073_v20 }
0x1231   : > { %v6405_v17 = vpop.eup %6404  ;;  %v3096_v18 = vmul.f32 %v6403_v8, %v7596_v63  ;;  %6406 = vrsqrt.f32 %v3082_v32  ;;  %v6520_v32 = vmov 0.0  }
0x1232   : > { %6408 = vrsqrt.f32 %v3081_v48  ;;  %v3064_v40 = vpop.xlane.xlu1 %3063  ;;  %v3095_v16 = vmul.f32 %v6405_v17, %v7599_v35  ;;  %5329 = vmatprep.mubr.msk.f32.mxu1 %vm6519_vm6, %v6520_v32 }
0x1233   : > { %v3108_v15 = vmul.f32 %v3106_v12, %v3096_v18  ;;  %v3076_v61 = vmul.f32 0.03125, %v3064_v40  ;;  %v3061_v1 = vpop.xlane.xlu0 %3060 }
0x1234   : > { %v3075_v52 = vmul.f32 0.03125, %v3061_v1  ;;  %v3107_v39 = vmul.f32 %v3106_v12, %v3095_v16 }
0x1235   : > { %v3120_v59 = vadd.f32 %v3118_v13, %v3108_v15  ;;  %v3084_v19 = vadd.f32 1e-05, %v3076_v61 }
0x1236   : > { %v3083_v3 = vadd.f32 1e-05, %v3075_v52  ;;  %v3119_v57 = vadd.f32 %v3118_v13, %v3107_v39 }
0x1237   : > { %6410 = vrsqrt.f32 %v3084_v19 }
0x1238   : > { %6412 = vrsqrt.f32 %v3083_v3  ;;  %5301 = vmatprep.mubr.msk.f32.mxu0 %vm328_vm0, %v3119_v57 }
0x1239   : > { %5302 = vmatmul.mubr.msk.f32.vlgmr.msra.gmra.mrb[48].mxu0 %vm328_vm0, %v3120_v59 }
0x123b   : > { %v6407_v30 = vpop.eup %6406 }
0x123c   : > { %v6409_v63 = vpop.eup %6408  ;;  %v3098_v31 = vmul.f32 %v6407_v30, %v7607_v43 }
0x123d   : > { %v3097_v35 = vmul.f32 %v6409_v63, %v7609_v22 }
0x123e   : > { %v3110_v54 = vmul.f32 %v3106_v12, %v3098_v31 }
0x123f   : > { %v3109_v34 = vmul.f32 %v3106_v12, %v3097_v35 }
0x1240   : > { %v3122_v10 = vadd.f32 %v3118_v13, %v3110_v54 }
0x1241   : > { %v6411_v23 = vpop.eup %6410  ;;  %v3121_v56 = vadd.f32 %v3118_v13, %v3109_v34 }
0x1242   : > { %v6413_v38 = vpop.eup %6412  ;;  %v3100_v45 = vmul.f32 %v6411_v23, %v7617_v46 }
0x1243   : > { %5304 = vmatprep.mubr.msk.f32.mxu0 %vm328_vm0, %v3121_v56  ;;  %v3099_v25 = vmul.f32 %v6413_v38, %v7619_v41 }
0x1244   : > { %5305 = vmatmul.mubr.msk.f32.gmra.mrb[50].mxu0 %vm328_vm0, %v3122_v10  ;;  %v3112_v4 = vmul.f32 %v3106_v12, %v3100_v45 }
0x1245   : > { %v3111_v5 = vmul.f32 %v3106_v12, %v3099_v25 }
0x1246   : > { %v3124_v29 = vadd.f32 %v3118_v13, %v3112_v4 }
0x1247   : > { %v3123_v43 = vadd.f32 %v3118_v13, %v3111_v5 }
0x1249   : > { %5307 = vmatprep.mubr.msk.f32.mxu0 %vm328_vm0, %v3123_v43 }
0x124a   : > { %5308 = vmatmul.mubr.msk.f32.gmra.mrb[52].mxu0 %vm328_vm0, %v3124_v29 }
0x1254   : > { %v3070_v22 = vpop.xlane.xlu1 %3069 }
0x1255   : > { %v3078_v24 = vmul.f32 0.03125, %v3070_v22  ;;  %v3067_v28 = vpop.xlane.xlu0 %3066 }
0x1256   : > { %v3077_v0 = vmul.f32 0.03125, %v3067_v28 }
0x1257   : > { %v3086_v44 = vadd.f32 1e-05, %v3078_v24 }
0x1258   : > { %v3085_v46 = vadd.f32 1e-05, %v3077_v0 }
0x1259   : > { %6414 = vrsqrt.f32 %v3086_v44 }
0x125a   : > { %6416 = vrsqrt.f32 %v3085_v46 }
0x1263   : > { %v6415_v47 = vpop.eup %6414 }
0x1264   : > { %v6417_v41 = vpop.eup %6416  ;;  %v3102_v26 = vmul.f32 %v6415_v47, %v7639_v2 }
0x1265   : > { %v3101_v50 = vmul.f32 %v6417_v41, %v7641_v33 }
0x1266   : > { %v3114_v53 = vmul.f32 %v3106_v12, %v3102_v26 }
0x1267   : > { %v3113_v9 = vmul.f32 %v3106_v12, %v3101_v50 }
0x1268   : > { %v3126_v27 = vadd.f32 %v3118_v13, %v3114_v53 }
0x1269   : > { %v3125_v36 = vadd.f32 %v3118_v13, %v3113_v9 }
0x126b   : > { %5310 = vmatprep.mubr.msk.f32.mxu0 %vm328_vm0, %v3125_v36 }
0x126c   : > { %5311 = vmatmul.mubr.msk.f32.gmra.mrb[54].mxu0 %vm328_vm0, %v3126_v27 }
0x126d   : > { %5348 = vmatprep.mubr.msk.f32.mxu0 %vm6519_vm6, %v6520_v32 }
0x130c   : > { %v5303_v60 = vpop.f32.mrb[48].mxu0 }
0x130d   : > { %v7678_v14 = vpop.f32.mrb[49].mxu0 }
0x130e   : > { %v7681_v2 = vpack.i.bf16 %v5303_v60, %v7678_v14 }
0x1310   : > { %6067 = vrot.lane.b32.xlu0 %v7681_v2, %s6504_s22 }
0x1317   : > { %v5306_v33 = vpop.f32.mrb[50].mxu0 }
0x1318   : > { %v3232_v49 = vpop.f32.mrb[51].mxu0 }
0x1319   : > { %v7685_v7 = vpack.i.bf16 %v5306_v33, %v3232_v49 }
0x131b   : > { %6072 = vrot.lane.b32.xlu1 %v7685_v7, %s6504_s22 }
0x131d   : > { %v5309_v55 = vpop.f32.mrb[52].mxu0 }
0x131e   : > { %v3242_v11 = vpop.f32.mrb[53].mxu0 }
0x131f   : > { %v7689_v21 = vpack.i.bf16 %v5309_v55, %v3242_v11 }
0x1321   : > { %6077 = vrot.lane.b32.xlu1 %v7689_v21, %s6504_s22 }
0x133f   : > { %v5312_v62 = vpop.f32.mrb[54].mxu0 }
0x1340   : > { %v3252_v20 = vpop.f32.mrb[55].mxu0 }
0x1341   : > { %v7693_v12 = vpack.i.bf16 %v5312_v62, %v3252_v20 }
0x1343   : > { %6082 = vrot.lane.b32.xlu1 %v7693_v12, %s6504_s22  ;;  %s8025_s22 = smov 120  }
0x1347   : > { %6092 = vrot.lane.b32.xlu1 %v7685_v7, %s6505_s23 }
0x134b   : > { %6102 = vrot.lane.b32.xlu1 %v7693_v12, %s6505_s23 }
0x1382   : > { %v6068_v8 = vpop.permute.xlu0 %6067 }
0x1383   : > { %v6070_v48 = vunpack.i.h.bf16 %v6068_v8  ;;  %v6069_v17 = vunpack.i.l.bf16 %v6068_v8 }
0x1385   : > { %v5715_v37 = vpack.c.bf16 %v6070_v48, %v6069_v17 }
0x1387   : > { %5717 = vmatpush3.bf16.xpose.msk.msra.mxu1 %vm6807_vm2, %v5715_v37 }
0x1388   : > { %5718 = vmatprep.subr.bf16.mxu1 %v6518_v58 }
0x138d   : > { %v6073_v13 = vpop.permute.xlu1 %6072 }
0x138e   : > { %v6075_v18 = vunpack.i.h.bf16 %v6073_v13  ;;  %v6074_v40 = vunpack.i.l.bf16 %v6073_v13 }
0x1390   : > { %v5719_v16 = vpack.c.bf16 %v6075_v18, %v6074_v40 }
0x1392   : > { %5721 = vmatpush3.bf16.xpose.msk.msra.mxu1 %vm6807_vm2, %v5719_v16 }
0x1393   : > { %v6078_v15 = vpop.permute.xlu1 %6077  ;;  %5722 = vmatprep.subr.bf16.mxu1 %v6518_v58 }
0x1394   : > { %v6080_v61 = vunpack.i.h.bf16 %v6078_v15  ;;  %v6079_v1 = vunpack.i.l.bf16 %v6078_v15 }
0x1396   : > { %v5723_v52 = vpack.c.bf16 %v6080_v61, %v6079_v1 }
0x139a   : > { %5725 = vmatpush3.bf16.xpose.msk.msra.mxu1 %vm6807_vm2, %v5723_v52 }
0x139b   : > { %5726 = vmatprep.subr.bf16.mxu1 %v6518_v58 }
0x13b5   : > { %v6083_v39 = vpop.permute.xlu1 %6082 }
0x13b6   : > { %v6085_v59 = vunpack.i.h.bf16 %v6083_v39  ;;  %v6084_v19 = vunpack.i.l.bf16 %v6083_v39 }
0x13b8   : > { %v5727_v3 = vpack.c.bf16 %v6085_v59, %v6084_v19 }
0x13b9   : > { %v6093_v10 = vpop.permute.xlu1 %6092 }
0x13ba   : > { %5729 = vmatpush3.bf16.xpose.msk.msra.mxu1 %vm6807_vm2, %v5727_v3  ;;  %v6095_v45 = vunpack.i.h.bf16 %v6093_v10  ;;  %v6094_v25 = vunpack.i.l.bf16 %v6093_v10 }
0x13bb   : > { %5758 = vmatprep.subr.bf16.mxu1 %v6518_v58 }
0x13bc   : > { %v5734_v29 = vpack.c.bf16 %v6095_v45, %v6094_v25 }
0x13bd   : > { %v6103_v24 = vpop.permute.xlu1 %6102 }
0x13be   : > { %v6105_v44 = vunpack.i.h.bf16 %v6103_v24  ;;  %v6104_v46 = vunpack.i.l.bf16 %v6103_v24 }
0x13c0   : > { %v5740_v50 = vpack.c.bf16 %v6105_v44, %v6104_v46 }
0x13c1   : > { %5330 = vmatmul.mubr.msk.f32.vlgmr.msra.gmra.mrb[48].mxu1 %vm615_vm1, %v7678_v14 }
0x13c2   : > { %5386 = vmatprep.mubr.msk.f32.mxu1 %vm6519_vm6, %v6520_v32 }
0x1494   : > { %v3369_v57 = vpop.f32.mrb[48].mxu1 }
0x1495   : > { %v3373_v30 = vmul.f32 0.35355338, %v3369_v57  ;;  %v5331_v63 = vpop.f32.mrb[49].mxu1 }
0x1497   : > { %v3375_v31 = vsel %vm3374_vm7, %v3373_v30, -inf }
0x1498   : > { %3376 = vmax.xlane.f32.xlu0 %v3375_v31 }
0x14ae   : > { %6087 = vrot.lane.b32.xlu0 %v7681_v2, %s6505_s23 }
0x14b2   : > { %6097 = vrot.lane.b32.xlu0 %v7689_v21, %s6505_s23  ;;  %s8027_s23 = smov 80  }
0x14b6   : > { %6107 = vrot.lane.b32.xlu0 %v7681_v2, %s6506_s24 }
0x14ba   : > { %6117 = vrot.lane.b32.xlu0 %v7689_v21, %s6506_s24 }
0x14be   : > { %3483 = vrot.lane.b32.xlu0 %v7678_v14, %s8025_s22 }
0x14c2   : > { %6127 = vrot.lane.b32.xlu0 %v7681_v2, %s8026_s17 }
0x1525   : > { %v3377_v35 = vpop.xlane.xlu0 %3376 }
0x1526   : > { %v3378_v54 = vsub.f32 %v3373_v30, %v3377_v35 }
0x1528   : > { %v3379_v34 = vmul.f32 1.442695, %v3378_v54 }
0x1529   : > { %v6088_v23 = vpop.permute.xlu0 %6087 }
0x152a   : > { %6418 = vpow2.f32 %v3379_v34  ;;  %v6090_v56 = vunpack.i.h.bf16 %v6088_v23  ;;  %v6089_v38 = vunpack.i.l.bf16 %v6088_v23 }
0x152c   : > { %v5731_v4 = vpack.c.bf16 %v6090_v56, %v6089_v38 }
0x152d   : > { %v6098_v5 = vpop.permute.xlu0 %6097 }
0x152e   : > { %5732 = vmatpush3.bf16.msra.mxu0 %v5731_v4  ;;  %v6100_v43 = vunpack.i.h.bf16 %v6098_v5  ;;  %v6099_v22 = vunpack.i.l.bf16 %v6098_v5 }
0x152f   : > { %5733 = vmatprep.subr.bf16.mxu0 %v6518_v58 }
0x1530   : > { %v5737_v47 = vpack.c.bf16 %v6100_v43, %v6099_v22 }
0x1531   : > { %v6108_v28 = vpop.permute.xlu0 %6107 }
0x1532   : > { %5735 = vmatpush3.bf16.msra.mxu0 %v5734_v29  ;;  %v6110_v49 = vunpack.i.h.bf16 %v6108_v28  ;;  %v6109_v55 = vunpack.i.l.bf16 %v6108_v28 }
0x1533   : > { %5736 = vmatprep.subr.bf16.mxu0 %v6518_v58 }
0x1534   : > { %v6419_v0 = vpop.eup %6418  ;;  %v5743_v20 = vpack.c.bf16 %v6110_v49, %v6109_v55 }
0x1535   : > { %v6118_v41 = vpop.permute.xlu0 %6117  ;;  %v3381_v26 = vsel %vm3374_vm7, %v6419_v0, 0.0 }
0x1536   : > { %3382 = vadd.xlane.f32.xlu1 %v3381_v26  ;;  %5738 = vmatpush3.bf16.msra.mxu0 %v5737_v47  ;;  %v6120_v13 = vunpack.i.h.bf16 %v6118_v41  ;;  %v6119_v18 = vunpack.i.l.bf16 %v6118_v41 }
0x1537   : > { %5739 = vmatprep.subr.bf16.mxu0 %v6518_v58 }
0x1538   : > { %v5751_v40 = vpack.c.bf16 %v6120_v13, %v6119_v18 }
0x1539   : > { %v3484_v53 = vpop.permute.xlu0 %3483 }
0x153a   : > { %5741 = vmatpush3.bf16.msra.mxu0 %v5740_v50 }
0x153b   : > { %5742 = vmatprep.subr.bf16.mxu0 %v6518_v58 }
0x153d   : > { %v6128_v9 = vpop.permute.xlu0 %6127 }
0x153e   : > { %v6130_v27 = vunpack.i.h.bf16 %v6128_v9  ;;  %v6129_v36 = vunpack.i.l.bf16 %v6128_v9 }
0x1540   : > { %v5759_v60 = vpack.c.bf16 %v6130_v27, %v6129_v36 }
0x1542   : > { %5760 = vmatpush3.bf16.msra.mxu1 %v5759_v60 }
0x1543   : > { %5761 = vmatprep.subr.bf16.mxu1 %v6518_v58 }
0x1547   : > { %6112 = vrot.lane.b32.xlu1 %v7685_v7, %s6506_s24 }
0x154b   : > { %6122 = vrot.lane.b32.xlu1 %v7693_v12, %s6506_s24  ;;  %s8028_s24 = smov 112  }
0x15c3   : > { %v3383_v33 = vpop.xlane.xlu1 %3382 }
0x15c4   : > { %6420 = vrcp.f32 %v3383_v33 }
0x15c7   : > { %v6113_v8 = vpop.permute.xlu1 %6112 }
0x15c8   : > { %v6115_v48 = vunpack.i.h.bf16 %v6113_v8  ;;  %v6114_v17 = vunpack.i.l.bf16 %v6113_v8 }
0x15ca   : > { %v5747_v37 = vpack.c.bf16 %v6115_v48, %v6114_v17 }
0x15cb   : > { %v6123_v16 = vpop.permute.xlu1 %6122 }
0x15cc   : > { %v6125_v15 = vunpack.i.h.bf16 %v6123_v16  ;;  %v6124_v61 = vunpack.i.l.bf16 %v6123_v16 }
0x15ce   : > { %v6421_v11 = vpop.eup %6420  ;;  %v5755_v1 = vpack.c.bf16 %v6125_v15, %v6124_v61 }
0x15cf   : > { %v3385_v62 = vmul.f32 %v6421_v11, %v6419_v0 }
0x15d1   : > { %5349 = vmatmul.mubr.msk.f32.vlgmr.msra.gmra.mrb[56].mxu0 %vm761_vm3, %v3385_v62 }
0x15d2   : > { %5745 = vmatpush3.bf16.xpose.msk.msra.mxu0 %vm6807_vm2, %v5743_v20  ;;  %5367 = vmatprep.mubr.msk.f32.mxu0 %vm6519_vm6, %v6520_v32 }
0x15d3   : > { %5746 = vmatprep.subr.bf16.mxu0 %v6518_v58 }
0x15da   : > { %5749 = vmatpush3.bf16.xpose.msk.msra.mxu0 %vm6807_vm2, %v5747_v37 }
0x15db   : > { %5750 = vmatprep.subr.bf16.mxu0 %v6518_v58 }
0x15e2   : > { %5753 = vmatpush3.bf16.xpose.msk.msra.mxu0 %vm6807_vm2, %v5751_v40 }
0x15e3   : > { %5754 = vmatprep.subr.bf16.mxu0 %v6518_v58 }
0x15ea   : > { %5757 = vmatpush3.bf16.xpose.msk.msra.mxu0 %vm6807_vm2, %v5755_v1 }
0x15eb   : > { %5786 = vmatprep.subr.bf16.mxu0 %v6518_v58 }
0x15f1   : > { %5368 = vmatmul.mubr.msk.f32.vlgmr.msra.gmra.mrb[58].mxu0 %vm615_vm1, %v3484_v53 }
0x15f2   : > { %5424 = vmatprep.mubr.msk.f32.mxu0 %vm6519_vm6, %v6520_v32 }
0x16a4   : > { %v7762_v52 = vpop.f32.mrb[56].mxu0 }
0x16a5   : > { %v5350_v39 = vpop.f32.mrb[57].mxu0 }
0x16c4   : > { %v3585_v59 = vpop.f32.mrb[58].mxu0 }
0x16c5   : > { %v3589_v19 = vmul.f32 0.35355338, %v3585_v59  ;;  %v5369_v3 = vpop.f32.mrb[59].mxu0 }
0x16c7   : > { %v3590_v57 = vsel %vm3374_vm7, %v3589_v19, -inf }
0x16c8   : > { %3591 = vmax.xlane.f32.xlu1 %v3590_v57 }
0x16d9   : > { %6132 = vrot.lane.b32.xlu1 %v7685_v7, %s8026_s17 }
0x16dd   : > { %6137 = vrot.lane.b32.xlu1 %v7689_v21, %s8026_s17 }
0x16e1   : > { %6147 = vrot.lane.b32.xlu1 %v7681_v2, %s8027_s23 }
0x16e5   : > { %6157 = vrot.lane.b32.xlu1 %v7689_v21, %s8027_s23 }
0x16e9   : > { %3698 = vrot.lane.b32.xlu1 %v7678_v14, %s8028_s24  ;;  %s8033_s24 = smov 24  }
0x16ed   : > { %6172 = vrot.lane.b32.xlu1 %v7685_v7, %s8029_s18 }
0x16f1   : > { %6182 = vrot.lane.b32.xlu1 %v7693_v12, %s8029_s18 }
0x1755   : > { %v3592_v30 = vpop.xlane.xlu1 %3591 }
0x1756   : > { %v3593_v63 = vsub.f32 %v3589_v19, %v3592_v30 }
0x1758   : > { %v3594_v31 = vmul.f32 1.442695, %v3593_v63 }
0x1759   : > { %v6133_v35 = vpop.permute.xlu1 %6132 }
0x175a   : > { %6422 = vpow2.f32 %v3594_v31  ;;  %v6135_v54 = vunpack.i.h.bf16 %v6133_v35  ;;  %v6134_v34 = vunpack.i.l.bf16 %v6133_v35 }
0x175c   : > { %v5762_v10 = vpack.c.bf16 %v6135_v54, %v6134_v34 }
0x175d   : > { %v6138_v23 = vpop.permute.xlu1 %6137 }
0x175e   : > { %v6140_v56 = vunpack.i.h.bf16 %v6138_v23  ;;  %v6139_v38 = vunpack.i.l.bf16 %v6138_v23  ;;  %5763 = vmatpush3.bf16.msra.mxu1 %v5762_v10 }
0x175f   : > { %5764 = vmatprep.subr.bf16.mxu1 %v6518_v58 }
0x1760   : > { %v5765_v45 = vpack.c.bf16 %v6140_v56, %v6139_v38 }
0x1761   : > { %v6148_v28 = vpop.permute.xlu1 %6147 }
0x1762   : > { %5766 = vmatpush3.bf16.msra.mxu1 %v5765_v45  ;;  %v6150_v44 = vunpack.i.h.bf16 %v6148_v28  ;;  %v6149_v46 = vunpack.i.l.bf16 %v6148_v28 }
0x1763   : > { %5767 = vmatprep.subr.bf16.mxu1 %v6518_v58 }
0x1764   : > { %v6423_v25 = vpop.eup %6422  ;;  %v5771_v41 = vpack.c.bf16 %v6150_v44, %v6149_v46 }
0x1765   : > { %v3596_v4 = vsel %vm3374_vm7, %v6423_v25, 0.0  ;;  %v6158_v27 = vpop.permute.xlu1 %6157 }
0x1766   : > { %3597 = vadd.xlane.f32.xlu0 %v3596_v4  ;;  %v6160_v36 = vunpack.i.h.bf16 %v6158_v27  ;;  %v6159_v60 = vunpack.i.l.bf16 %v6158_v27 }
0x1768   : > { %v5779_v33 = vpack.c.bf16 %v6160_v36, %v6159_v60 }
0x1769   : > { %v3699_v20 = vpop.permute.xlu1 %3698 }
0x176d   : > { %v6173_v61 = vpop.permute.xlu1 %6172 }
0x176e   : > { %v6175_v19 = vunpack.i.h.bf16 %v6173_v61  ;;  %v6174_v3 = vunpack.i.l.bf16 %v6173_v61 }
0x1770   : > { %v5790_v63 = vpack.c.bf16 %v6175_v19, %v6174_v3 }
0x1771   : > { %v6183_v35 = vpop.permute.xlu1 %6182 }
0x1772   : > { %v6185_v34 = vunpack.i.h.bf16 %v6183_v35  ;;  %v6184_v10 = vunpack.i.l.bf16 %v6183_v35  ;;  %v4676_v35 = vld [vmem:[%s7999_s3 + $0x30] sm:$0xff] }
0x1774   : > { %v5796_v45 = vpack.c.bf16 %v6185_v34, %v6184_v10 }
0x177c   : > { %6142 = vrot.lane.b32.xlu0 %v7693_v12, %s8026_s17  ;;  %s6521_s17 = smov [#allocation2]  }
0x1780   : > { %6152 = vrot.lane.b32.xlu0 %v7685_v7, %s8027_s23 }
0x1784   : > { %6162 = vrot.lane.b32.xlu0 %v7693_v12, %s8027_s23  ;;  %s6444_s23 = sshll.u32 %s6521_s17, 4  ;;  %s6445_s23 = int_to_ptr.vmem [resolvable:$false] %s6444_s23 }
0x17f3   : > { %v3598_v5 = vpop.xlane.xlu0 %3597 }
0x17f4   : > { %6424 = vrcp.f32 %v3598_v5 }
0x17f7   : > { %v6143_v29 = vpop.permute.xlu0 %6142 }
0x17f8   : > { %v6145_v43 = vunpack.i.h.bf16 %v6143_v29  ;;  %v6144_v22 = vunpack.i.l.bf16 %v6143_v29 }
0x17fa   : > { %v5768_v24 = vpack.c.bf16 %v6145_v43, %v6144_v22 }
0x17fb   : > { %v6153_v26 = vpop.permute.xlu0 %6152 }
0x17fc   : > { %5769 = vmatpush3.bf16.msra.mxu1 %v5768_v24  ;;  %v6155_v50 = vunpack.i.h.bf16 %v6153_v26  ;;  %v6154_v53 = vunpack.i.l.bf16 %v6153_v26 }
0x17fd   : > { %5770 = vmatprep.subr.bf16.mxu1 %v6518_v58 }
0x17fe   : > { %v6425_v0 = vpop.eup %6424  ;;  %v5775_v9 = vpack.c.bf16 %v6155_v50, %v6154_v53 }
0x17ff   : > { %v3600_v47 = vmul.f32 %v6425_v0, %v6423_v25  ;;  %v6163_v49 = vpop.permute.xlu0 %6162 }
0x1800   : > { %v6165_v55 = vunpack.i.h.bf16 %v6163_v49  ;;  %v6164_v11 = vunpack.i.l.bf16 %v6163_v49 }
0x1801   : > { %5387 = vmatmul.mubr.msk.f32.vlgmr.msra.gmra.mrb[50].mxu1 %vm761_vm3, %v3600_v47 }
0x1802   : > { %5405 = vmatprep.mubr.msk.f32.mxu1 %vm6519_vm6, %v6520_v32  ;;  %v5783_v62 = vpack.c.bf16 %v6165_v55, %v6164_v11 }
0x1805   : > { %5773 = vmatpush3.bf16.xpose.msk.msra.mxu1 %vm6807_vm2, %v5771_v41 }
0x1806   : > { %5774 = vmatprep.subr.bf16.mxu1 %v6518_v58 }
0x180d   : > { %5777 = vmatpush3.bf16.xpose.msk.msra.mxu1 %vm6807_vm2, %v5775_v9 }
0x180e   : > { %5778 = vmatprep.subr.bf16.mxu1 %v6518_v58 }
0x1815   : > { %5781 = vmatpush3.bf16.xpose.msk.msra.mxu1 %vm6807_vm2, %v5779_v33 }
0x1816   : > { %5782 = vmatprep.subr.bf16.mxu1 %v6518_v58 }
0x181d   : > { %5785 = vmatpush3.bf16.xpose.msk.msra.mxu1 %vm6807_vm2, %v5783_v62 }
0x181e   : > { %5814 = vmatprep.subr.bf16.mxu1 %v6518_v58 }
0x1824   : > { %5406 = vmatmul.mubr.msk.f32.vlgmr.msra.gmra.mrb[52].mxu1 %vm615_vm1, %v3699_v20 }
0x1825   : > { %5462 = vmatprep.mubr.msk.f32.mxu1 %vm6519_vm6, %v6520_v32 }
0x18d4   : > { %v7807_v8 = vpop.f32.mrb[50].mxu1 }
0x18d5   : > { %v5388_v48 = vpop.f32.mrb[51].mxu1 }
0x18f7   : > { %v3800_v17 = vpop.f32.mrb[52].mxu1 }
0x18f8   : > { %v3804_v37 = vmul.f32 0.35355338, %v3800_v17  ;;  %v5407_v13 = vpop.f32.mrb[53].mxu1 }
0x18fa   : > { %v3805_v18 = vsel %vm3374_vm7, %v3804_v37, -inf }
0x18fb   : > { %3806 = vmax.xlane.f32.xlu0 %v3805_v18 }
0x1911   : > { %6167 = vrot.lane.b32.xlu0 %v7681_v2, %s8029_s18 }
0x1915   : > { %6177 = vrot.lane.b32.xlu0 %v7689_v21, %s8029_s18  ;;  %s296_s18 = sand.u32 1, %s6494_s28  }
0x1916   : > { %s4419_s22 = scalar_lea.sflag [#allocation3], %s296_s18 }
0x1919   : > { %6187 = vrot.lane.b32.xlu0 %v7681_v2, %s8030_s25 }
0x191d   : > { %6197 = vrot.lane.b32.xlu0 %v7689_v21, %s8030_s25 }
0x1921   : > { %3913 = vrot.lane.b32.xlu0 %v7678_v14, %s8031_s26 }
0x1925   : > { %6207 = vrot.lane.b32.xlu0 %v7681_v2, %s8032_s19 }
0x1988   : > { %v3807_v40 = vpop.xlane.xlu0 %3806 }
0x1989   : > { %v3808_v16 = vsub.f32 %v3804_v37, %v3807_v40 }
0x198b   : > { %v3809_v15 = vmul.f32 1.442695, %v3808_v16 }
0x198c   : > { %v6168_v1 = vpop.permute.xlu0 %6167 }
0x198d   : > { %6426 = vpow2.f32 %v3809_v15  ;;  %v6170_v39 = vunpack.i.h.bf16 %v6168_v1  ;;  %v6169_v59 = vunpack.i.l.bf16 %v6168_v1 }
0x198f   : > { %v5787_v57 = vpack.c.bf16 %v6170_v39, %v6169_v59 }
0x1990   : > { %v6178_v30 = vpop.permute.xlu0 %6177 }
0x1991   : > { %5788 = vmatpush3.bf16.msra.mxu0 %v5787_v57  ;;  %v6180_v14 = vunpack.i.h.bf16 %v6178_v30  ;;  %v6179_v31 = vunpack.i.l.bf16 %v6178_v30 }
0x1992   : > { %5789 = vmatprep.subr.bf16.mxu0 %v6518_v58 }
0x1993   : > { %v5793_v23 = vpack.c.bf16 %v6180_v14, %v6179_v31  ;;  %v4675_v31 = vld [vmem:[%s7999_s3 + $0x28] sm:$0xff] }
0x1994   : > { %v6188_v2 = vpop.permute.xlu0 %6187 }
0x1995   : > { %5791 = vmatpush3.bf16.msra.mxu0 %v5790_v63  ;;  %v6190_v24 = vunpack.i.h.bf16 %v6188_v2  ;;  %v6189_v28 = vunpack.i.l.bf16 %v6188_v2 }
0x1996   : > { %5792 = vmatprep.subr.bf16.mxu0 %v6518_v58 }
0x1997   : > { %v6427_v54 = vpop.eup %6426  ;;  %v5799_v46 = vpack.c.bf16 %v6190_v24, %v6189_v28 }
0x1998   : > { %v6198_v56 = vpop.permute.xlu0 %6197  ;;  %v3811_v38 = vsel %vm3374_vm7, %v6427_v54, 0.0 }
0x1999   : > { %3812 = vadd.xlane.f32.xlu1 %v3811_v38  ;;  %5794 = vmatpush3.bf16.msra.mxu0 %v5793_v23  ;;  %v6200_v53 = vunpack.i.h.bf16 %v6198_v56  ;;  %v6199_v9 = vunpack.i.l.bf16 %v6198_v56 }
0x199a   : > { %5795 = vmatprep.subr.bf16.mxu0 %v6518_v58 }
0x199b   : > { %v5807_v27 = vpack.c.bf16 %v6200_v53, %v6199_v9  ;;  %v4682_v53 = vld [vmem:[%s8000_s4 + $0x38] sm:$0xff] }
0x199c   : > { %v3914_v25 = vpop.permute.xlu0 %3913 }
0x199d   : > { %5797 = vmatpush3.bf16.msra.mxu0 %v5796_v45 }
0x199e   : > { %5798 = vmatprep.subr.bf16.mxu0 %v6518_v58 }
0x19a0   : > { %v6208_v4 = vpop.permute.xlu0 %6207 }
0x19a1   : > { %v6210_v5 = vunpack.i.h.bf16 %v6208_v4  ;;  %v6209_v29 = vunpack.i.l.bf16 %v6208_v4 }
0x19a3   : > { %v5815_v43 = vpack.c.bf16 %v6210_v5, %v6209_v29  ;;  %v4223_v29 = vrot.slane %v7652_v6, 2 }
0x19a5   : > { %5816 = vmatpush3.bf16.msra.mxu1 %v5815_v43 }
0x19a6   : > { %5817 = vmatprep.subr.bf16.mxu1 %v6518_v58 }
0x19aa   : > { %6192 = vrot.lane.b32.xlu1 %v7685_v7, %s8030_s25 }
0x19ae   : > { %6202 = vrot.lane.b32.xlu1 %v7693_v12, %s8030_s25 }
0x1a26   : > { %v3813_v22 = vpop.xlane.xlu1 %3812 }
0x1a27   : > { %6428 = vrcp.f32 %v3813_v22 }
0x1a2a   : > { %v6193_v47 = vpop.permute.xlu1 %6192 }
0x1a2b   : > { %v6195_v41 = vunpack.i.h.bf16 %v6193_v47  ;;  %v6194_v26 = vunpack.i.l.bf16 %v6193_v47 }
0x1a2d   : > { %v5803_v50 = vpack.c.bf16 %v6195_v41, %v6194_v26  ;;  %v4680_v41 = vld [vmem:[%s8000_s4 + $0x28] sm:$0xff] }
0x1a2e   : > { %v6203_v36 = vpop.permute.xlu1 %6202 }
0x1a2f   : > { %v6205_v60 = vunpack.i.h.bf16 %v6203_v36  ;;  %v6204_v33 = vunpack.i.l.bf16 %v6203_v36 }
0x1a31   : > { %v6429_v0 = vpop.eup %6428  ;;  %v5811_v49 = vpack.c.bf16 %v6205_v60, %v6204_v33  ;;  %v4256_v33 = vrot.slane %v7652_v6, 3 }
0x1a32   : > { %v3815_v44 = vmul.f32 %v6429_v0, %v6427_v54  ;;  %v4677_v54 = vld [vmem:[%s7999_s3 + $0x38] sm:$0xff] }
0x1a33   : > { %v5830_v34 = vpack.c.bf16 %v4677_v54, %v4676_v35 }
0x1a34   : > { %5425 = vmatmul.mubr.msk.f32.vlgmr.msra.gmra.mrb[60].mxu0 %vm761_vm3, %v3815_v44 }
0x1a35   : > { %5801 = vmatpush3.bf16.xpose.msk.msra.mxu0 %vm6807_vm2, %v5799_v46  ;;  %5443 = vmatprep.mubr.msk.f32.mxu0 %vm6519_vm6, %v6520_v32 }
0x1a36   : > { %5802 = vmatprep.subr.bf16.mxu0 %v6518_v58 }
0x1a3d   : > { %5805 = vmatpush3.bf16.xpose.msk.msra.mxu0 %vm6807_vm2, %v5803_v50  ;;  %v4681_v50 = vld [vmem:[%s8000_s4 + $0x30] sm:$0xff] }
0x1a3e   : > { %5806 = vmatprep.subr.bf16.mxu0 %v6518_v58  ;;  %v5836_v9 = vpack.c.bf16 %v4682_v53, %v4681_v50 }
0x1a45   : > { %5809 = vmatpush3.bf16.xpose.msk.msra.mxu0 %vm6807_vm2, %v5807_v27 }
0x1a46   : > { %5810 = vmatprep.subr.bf16.mxu0 %v6518_v58 }
0x1a4d   : > { %5813 = vmatpush3.bf16.xpose.msk.msra.mxu0 %vm6807_vm2, %v5811_v49 }
0x1a4e   : > { %5832 = vmatprep.subr.bf16.mxu0 %v6518_v58 }
0x1a54   : > { %5444 = vmatmul.mubr.msk.f32.vlgmr.msra.gmra.mrb[62].mxu0 %vm615_vm1, %v3914_v25 }
0x1a55   : > { %5484 = vmatprep.mubr.msk.f32.mxu0 %vm6519_vm6, %v6520_v32 }
0x1b07   : > { %v3909_v55 = vpop.f32.mrb[60].mxu0 }
0x1b08   : > { %v5426_v11 = vpop.f32.mrb[61].mxu0 }
0x1b09   : > { %v4259_v11 = vrot.slane %v7652_v6, 4  ;;  %v4686_v6 = vld [vmem:[%s8001_s5 + $0x50] sm:$0xff] }
0x1b27   : > { %v4015_v62 = vpop.f32.mrb[62].mxu0 }
0x1b28   : > { %v4019_v20 = vmul.f32 0.35355338, %v4015_v62  ;;  %v5445_v48 = vpop.f32.mrb[63].mxu0 }
0x1b29   : > { %v4684_v48 = vld [vmem:[%s8001_s5 + $0x40] sm:$0xff] }
0x1b2a   : > { %v4020_v17 = vsel %vm3374_vm7, %v4019_v20, -inf }
0x1b2b   : > { %4021 = vmax.xlane.f32.xlu1 %v4020_v17  ;;  %v4685_v17 = vld [vmem:[%s8001_s5 + $0x48] sm:$0xff] }
0x1b3c   : > { %6212 = vrot.lane.b32.xlu1 %v7685_v7, %s8032_s19 }
0x1b40   : > { %6217 = vrot.lane.b32.xlu1 %v7689_v21, %s8032_s19 }
0x1b44   : > { %4129 = vrot.lane.b32.xlu1 %v7807_v8, %s6515_s20  ;;  %s297_s20 = scalar_lea.vmem [#allocation2], %s296_s18 }
0x1b45   : > { %s4431_s10 = sshll.u32 %s297_s20, 4  ;;  %s7955_s10 = int_to_ptr.vmem [resolvable:$true] %s4431_s10 }
0x1b46   : > { %p6447_p0 = scmp.lt.s32.totalorder %s7955_s10, %s6445_s23 }
0x1bb8   : > { %v4022_v51 = vpop.xlane.xlu1 %4021 }
0x1bb9   : > { %v4023_v37 = vsub.f32 %v4019_v20, %v4022_v51  ;;  %v5839_v51 = vpack.c.bf16 %v4685_v17, %v4684_v48 }
0x1bbb   : > { %v4024_v13 = vmul.f32 1.442695, %v4023_v37  ;;  %v4687_v37 = vld [vmem:[%s8001_s5 + $0x58] sm:$0xff] }
0x1bbc   : > { %v6213_v18 = vpop.permute.xlu1 %6212 }
0x1bbd   : > { %6430 = vpow2.f32 %v4024_v13  ;;  %v6215_v40 = vunpack.i.h.bf16 %v6213_v18  ;;  %v6214_v16 = vunpack.i.l.bf16 %v6213_v18  ;;  %v5842_v13 = vpack.c.bf16 %v4687_v37, %v4686_v6  ;;  %v4688_v18 = vld [vmem:[%s8001_s5 + $0x60] sm:$0xff] }
0x1bbf   : > { %v5818_v15 = vpack.c.bf16 %v6215_v40, %v6214_v16  ;;  %v4689_v40 = vld [vmem:[%s8001_s5 + $0x68] sm:$0xff] }
0x1bc0   : > { %v6218_v61 = vpop.permute.xlu1 %6217  ;;  %v5845_v16 = vpack.c.bf16 %v4689_v40, %v4688_v18 }
0x1bc1   : > { %v6220_v1 = vunpack.i.h.bf16 %v6218_v61  ;;  %v6219_v39 = vunpack.i.l.bf16 %v6218_v61  ;;  %5819 = vmatpush3.bf16.msra.mxu1 %v5818_v15  ;;  %v4690_v15 = vld [vmem:[%s8001_s5 + $0x70] sm:$0xff]  ;;  %v4691_v61 = vld [vmem:[%s8001_s5 + $0x78] sm:$0xff] }
0x1bc2   : > { %5820 = vmatprep.subr.bf16.mxu1 %v6518_v58 }
0x1bc3   : > { %v5821_v7 = vpack.c.bf16 %v6220_v1, %v6219_v39  ;;  %v5848_v1 = vpack.c.bf16 %v4691_v61, %v4690_v15  ;;  %v4683_v39 = vld [vmem:[%s8003_s7 + $0x1] sm:$0x1] }
0x1bc4   : > { %v4130_v56 = vpop.permute.xlu1 %4129 }
0x1bc5   : > { %5822 = vmatpush3.bf16.msra.mxu1 %v5821_v7  ;;  %v4140_v45 = vsel %vm615_vm1, %v7762_v52, %v4130_v56 }
0x1bc6   : > { %5823 = vmatprep.subr.bf16.mxu1 %v6518_v58 }
0x1bc7   : > { %v6431_v21 = vpop.eup %6430 }
0x1bc8   : > { %v4026_v8 = vsel %vm3374_vm7, %v6431_v21, 0.0 }
0x1bc9   : > { %4027 = vadd.xlane.f32.xlu0 %v4026_v8 }
0x1bdf   : > { %6222 = vrot.lane.b32.xlu0 %v7693_v12, %s8032_s19  ;;  %v4674_v12 = vld [vmem:[%s7999_s3 + $0x20] sm:$0xff]  ;;  %s4694_s19 = sshll.u32 %s6588_s9, 4  ;;  %s6440_s9 = scalar_lea.vmem %s7955_s10, 16 }
0x1be0   : > { %v5827_v2 = vpack.c.bf16 %v4675_v31, %v4674_v12  ;;  %s7953_s13 = scalar_lea.hbm %s8004_s8, %s4694_s19  ;;  %p6441_p11 = scmp.ne.s32.totalorder %s7955_s10, %s6440_s9 }
0x1be2   : > { %p6442_p12 = pnand %p6441_p11, %p6605_p5 }
0x1be3   : > { %4133 = vrot.lane.b32.xlu0 %v3909_v55, %s6516_s21 }
0x1be4   : > { %p6443_p13 = pneg %p6442_p12 }
0x1c56   : > { %v4028_v59 = vpop.xlane.xlu0 %4027 }
0x1c57   : > { %6432 = vrcp.f32 %v4028_v59 }
0x1c5a   : > { %v6223_v19 = vpop.permute.xlu0 %6222 }
0x1c5b   : > { %v6225_v3 = vunpack.i.h.bf16 %v6223_v19  ;;  %v6224_v57 = vunpack.i.l.bf16 %v6223_v19 }
0x1c5d   : > { %v5824_v30 = vpack.c.bf16 %v6225_v3, %v6224_v57 }
0x1c5e   : > { %v4134_v38 = vpop.permute.xlu0 %4133 }
0x1c5f   : > { %5825 = vmatpush3.bf16.msra.mxu1 %v5824_v30  ;;  %v4141_v25 = vsel %vm2361_vm4, %v4140_v45, %v4134_v38  ;;  %v6439_v30 = vld [vmem:[%s8002_s6 + $0x8] sm:$0x3f] }
0x1c60   : > { %5826 = vmatprep.subr.bf16.mxu1 %v6518_v58 }
0x1c61   : > { %v6433_v63 = vpop.eup %6432 }
0x1c62   : > { %v4030_v14 = vmul.f32 %v6433_v63, %v6431_v21  ;;  %v4414_v63 = vrot.slane %v6439_v30, 5 }
0x1c64   : > { %5463 = vmatmul.mubr.msk.f32.vlgmr.msra.gmra.mrb[54].mxu1 %vm761_vm3, %v4030_v14 }
0x1c65   : > { %5473 = vmatprep.mubr.msk.f32.mxu1 %vm6519_vm6, %v6520_v32  ;;  %5828 = vmatpush3.bf16.msra.mxu1 %v5827_v2 }
0x1c66   : > { %5829 = vmatprep.subr.bf16.mxu1 %v6518_v58 }
0x1c69   : > { %5831 = vmatpush3.bf16.msra.mxu1 %v5830_v34 }
0x1c6a   : > { %5838 = vmatprep.subr.bf16.mxu1 %v6518_v58 }
0x1d37   : > { %v4124_v10 = vpop.f32.mrb[54].mxu1 }
0x1d38   : > { %4137 = vrot.lane.b32.xlu1 %v4124_v10, %s8033_s24  ;;  %v5464_v23 = vpop.f32.mrb[55].mxu1  ;;  %s6446_s24 = scalar_lea.vmem %s6445_s23, 32 }
0x1d39   : > { %p6448_p1 = scmp.lt.s32.totalorder %s6446_s24, %s6440_s9 }
0x1d3b   : > { %p6449_p2 = por %p6448_p1, %p6447_p0 }
0x1d3d   : > { %p6450_p3 = pnand %p6449_p2, %p6443_p13 }
0x1daa   : > { %v4138_v4 = vpop.permute.xlu1 %4137 }
0x1dab   : > { %v4142_v5 = vsel %vm2370_vm5, %v4141_v25, %v4138_v4 }
0x1dac   : > { %5474 = vmatmul.mubr.msk.f32.vlgmr.msra.gmra.mrb[56].mxu1 %vm328_vm0, %v4142_v5 }
0x1dad   : > { %5503 = vmatprep.mubr.msk.f32.mxu1 %vm6519_vm6, %v6520_v32  ;;  %5840 = vmatpush3.bf16.msra.mxu1 %v5839_v51 }
0x1dae   : > { %5841 = vmatprep.subr.bf16.mxu1 %v6518_v58 }
0x1db1   : > { %5843 = vmatpush3.bf16.msra.mxu1 %v5842_v13 }
0x1db2   : > { %5844 = vmatprep.subr.bf16.mxu1 %v6518_v58 }
0x1db5   : > { %5846 = vmatpush3.bf16.msra.mxu1 %v5845_v16 }
0x1db6   : > { %5847 = vmatprep.subr.bf16.mxu1 %v6518_v58 }
0x1db9   : > { %5849 = vmatpush3.bf16.msra.mxu1 %v5848_v1 }
0x1e7f   : > { %v4217_v43 = vpop.f32.mrb[56].mxu1 }
0x1e80   : > { %v4221_v22 = vadd.f32 %v4217_v43, %v7579_v42  ;;  %v5475_v24 = vpop.f32.mrb[57].mxu1  ;;  %v4679_v42 = vld [vmem:[%s8000_s4 + $0x20] sm:$0xff] }
0x1e81   : > { %v5833_v26 = vpack.c.bf16 %v4680_v41, %v4679_v42 }
0x1e82   : > { %v7891_v28 = vadd.f32 %v4223_v29, %v4221_v22 }
0x1e83   : > { %5834 = vmatpush3.bf16.msra.mxu0 %v5833_v26 }
0x1e84   : > { %v4243_v52 = vsel %vm4242_vm8, %v7891_v28, 0.0  ;;  %5835 = vmatprep.subr.bf16.mxu0 %v6518_v58 }
0x1e85   : > { %4244 = vadd.xlane.f32.xlu0 %v4243_v52 }
0x1e87   : > { %5837 = vmatpush3.bf16.msra.mxu0 %v5836_v9 }
0x1f12   : > { %v4245_v0 = vpop.xlane.xlu0 %4244 }
0x1f13   : > { %v4246_v44 = vmul.f32 0.03125, %v4245_v0 }
0x1f15   : > { %v4247_v46 = vsub.f32 %v7891_v28, %v4246_v44 }
0x1f17   : > { %v4248_v47 = vmul.f32 %v4247_v46, %v4247_v46 }
0x1f19   : > { %v4249_v32 = vsel %vm4242_vm8, %v4248_v47, 0.0 }
0x1f1a   : > { %4250 = vadd.xlane.f32.xlu1 %v4249_v32 }
0x1fa7   : > { %v4251_v27 = vpop.xlane.xlu1 %4250 }
0x1fa8   : > { %v4252_v36 = vmul.f32 0.03125, %v4251_v27 }
0x1faa   : > { %v4253_v60 = vadd.f32 1e-05, %v4252_v36 }
0x1fac   : > { %6434 = vrsqrt.f32 %v4253_v60 }
0x1fb6   : > { %v6435_v49 = vpop.eup %6434 }
0x1fb7   : > { %v4255_v55 = vmul.f32 %v6435_v49, %v4247_v46 }
0x1fb9   : > { %v4258_v62 = vmul.f32 %v4256_v33, %v4255_v55 }
0x1fbb   : > { %v4261_v20 = vadd.f32 %v4259_v11, %v4258_v62 }
0x1fbd   : > { %5485 = vmatmul.mubr.msk.f32.vlgmr.msra.gmra.mrb[64].mxu0 %vm328_vm0, %v4261_v20 }
0x2090   : > { %v4331_v7 = vpop.f32.mrb[64].mxu0 }
0x2091   : > { %v4332_v21 = vadd.f32 %v4683_v39, %v4331_v7  ;;  %v5486_v8 = vpop.f32.mrb[65].mxu0 }
0x2093   : > { %v4336_v58 = vmul.f32 0.70710677, %v4332_v21  ;;  %v4335_v19 = vmul.f32 0.5, %v4332_v21 }
0x2095   : > { %6436 = verf.f32 %v4336_v58 }
0x209f   : > { %v6437_v59 = vpop.eup %6436 }
0x20a0   : > { %v4338_v3 = vadd.f32 1.0, %v6437_v59 }
0x20a2   : > { %v4339_v57 = vmul.f32 %v4338_v3, %v4335_v19 }
0x20a4   : > { %5504 = vmatmul.mubr.msk.f32.vlgmr.msra.gmra.mrb[58].mxu1 %vm761_vm3, %v4339_v57 }
0x2177   : > { %v4409_v14 = vpop.f32.mrb[58].mxu1 }
0x2178   : > { %v4413_v12 = vadd.f32 %v4409_v14, %v7891_v28  ;;  %v5505_v31 = vpop.f32.mrb[59].mxu1 }
0x217a   : > { %v4416_v35 = vadd.f32 %v4414_v63, %v4413_v12 }
0x217c   : > { %4417 = vst.msk [vmem:[%s297_s20] sm:$0x1] %vm4242_vm8, %v4416_v35 }
0x217d   : > { %6453 = shalt.err (!%p6450_p3)
}
0x217e   : > { %s6454_s18 = scalar_lea.hbm %s7953_s13, 16  ;;  %s6458_s19 = scalar_lea.hbm %s8004_s8, 32 }
0x217f   : > { %p6455_p4 = scmp.ne.s32.totalorder %s7953_s13, %s6454_s18  ;;  %p6459_p9 = scmp.lt.u32.totalorder %s7953_s13, %s8004_s8 }
0x2180   : > { %p6460_p10 = scmp.lt.u32.totalorder %s6458_s19, %s6454_s18  ;;  %p6462_p12 = scmp.lt.u32.totalorder %s6454_s18, %s7953_s13 }
0x2181   : > { %p6456_p7 = pnand %p6455_p4, %p6605_p5 }
0x2182   : > { %p6461_p11 = por %p6460_p10, %p6459_p9 }
0x2183   : > { %p6457_p8 = pneg %p6456_p7 }
0x2184   : > { %p6463_p13 = por %p6462_p12, %p6461_p11 }
0x2186   : > { %p6464_p0 = pnand %p6463_p13, %p6457_p8 }
0x2188   : > { %6467 = shalt.err (!%p6464_p0)
}
0x2189   : > { %5850 = dma.vmem_to_hbm [thread:$0]  (%p6605_p5), %s7955_s10, 16, %s7953_s13, %s4419_s22  }
0x218a PF: > { %p5856_p1 = scmp.ge.s32.totalorder %s6502_s30, 2  ;;  %s4443_s12 = sand.u32 1, %s6490_s27  }
0x218b   : > { %s4444_s9 = scalar_lea.sflag [#allocation3], %s4443_s12 }
0x218c   : > { %p5853_p2 = pnand %p5856_p1, %p6609_p6 }
0x218e   : > { %6485 = dma.done.wait (!%p5853_p2), %s4444_s9, 16  }
0x218f   : > { %6487 = vsyncadd (!%p5853_p2), %s4444_s9, 4294967280  ;;  %p18_p3 = scmp.ge.s32.totalorder %s6592_s11, 4   ;;  %s8034_s27 = smov %s6494_s28 }
0x2190   : > { %s8035_s28 = smov %s6498_s29  ;;  %s8036_s29 = smov %s6603_s14 }
0x2191   : > { %s8037_s30 = smov %s6592_s11  ;;  %20 = sbr.rel (!%p18_p3) target bundleno = 3 (0x3), region = 93 }
0x2198   :  { %4448 = vsyncpa [#allocation3], 1 }
0x2199   :  { %4450 = vsyncpa [#allocation3 + $0x1], 1 }

</bundles_post_ra>
